<compile_context>
chip_gen: v5e
topology: v5e:2x2
jax: 0.10.0
libtpu: 0.0.40
codegen_flags: <defaults>
</compile_context>

<pallas_src>
import functools

import numpy as np
import jax
import jax.numpy as jnp
from jax.experimental import pallas as pl
from jax.experimental.pallas import tpu as pltpu


# ----------------------------------------------------------------------------
# Host-side 0/1 constant matrices (numpy, baked as jit constants).
# ----------------------------------------------------------------------------
def _upsample_mat(H, W):
    """Nearest-neighbour 2x upsample as a (H*W, 4*H*W) 0/1 matrix."""
    H2, W2 = 2 * H, 2 * W
    U = np.zeros((H * W, H2 * W2), np.float32)
    for y2 in range(H2):
        for x2 in range(W2):
            U[(y2 // 2) * W + (x2 // 2), y2 * W2 + x2] = 1.0
    return jnp.asarray(U)


def _downsample_mat(H, W):
    """Stride-2 sampling (even rows / cols) as a (H*W, H*W//4) 0/1 matrix."""
    Ho, Wo = H // 2, W // 2
    D = np.zeros((H * W, Ho * Wo), np.float32)
    for yo in range(Ho):
        for xo in range(Wo):
            D[(2 * yo) * W + 2 * xo, yo * Wo + xo] = 1.0
    return jnp.asarray(D)


# ----------------------------------------------------------------------------
# Parameter construction / packing (PyTorch conv layout -> kernel layout)
# ----------------------------------------------------------------------------
def make_conv_params(key, cin, cout, k):
    kw, kb = jax.random.split(key)
    w = 0.1 * jax.random.normal(kw, (cout, cin, k, k), jnp.float32)
    b = 0.1 * jax.random.normal(kb, (cout,), jnp.float32)
    return w, b


def init_fpnpan_params(key, backbone_depths, channels, fusion="cat"):
    fin = 2 * channels if fusion == "cat" else channels
    specs = [
        ("align_c3", backbone_depths[0], channels, 1),
        ("align_c4", backbone_depths[1], channels, 1),
        ("align_c5", backbone_depths[2], channels, 1),
        ("sr_p3", channels, channels, 3),
        ("sr_p4", channels, channels, 3),
        ("c3b_c4", fin, channels, 3),
        ("c3b_c3", fin, channels, 3),
        ("c3b_p3", fin, channels, 3),
        ("c3b_p4", fin, channels, 3),
    ]
    keys = jax.random.split(key, len(specs))
    return {n: make_conv_params(k, ci, co, ks)
            for k, (n, ci, co, ks) in zip(keys, specs)}


def _pack_w3x3(w):
    # (Cout, Cin, 3, 3) -> (Cout, 9*Cin); column = (ky*3+kx)*Cin + cin,
    # matching the im2col row order emit_taps() writes in the kernel.
    # For 'cat' fusion Cin = 2*C and columns [..:C] multiply the FIRST cat
    # operand — emit_taps() writes the first operand at group offset 0, so the
    # orders stay tied together structurally.
    co, ci = w.shape[0], w.shape[1]
    return jnp.transpose(w, (0, 2, 3, 1)).reshape(co, 9 * ci)


def _const_index_map(ndim):
    return lambda b: (0,) * ndim


# ----------------------------------------------------------------------------
# Fused FPNPAN forward (one batch element per grid step, NCHW -> (C, H*W))
# ----------------------------------------------------------------------------
def fpnpan_forward(params, C3, C4, C5, channels, fusion="cat"):
    """C3/C4/C5: NCHW float32.  Returns [P3, P4, P5] in NCHW."""
    B = C3.shape[0]
    Cin3, H3, W3 = C3.shape[1:]
    Cin4, H4, W4 = C4.shape[1:]
    Cin5, H5, W5 = C5.shape[1:]
    HW3, HW4, HW5 = H3 * W3, H4 * W4, H5 * W5
    C = channels
    fin = 2 * C if fusion == "cat" else C
    KCAT, KSR = 9 * fin, 9 * C
    HW_SUM = HW3 + HW4 + HW5
    OUT_W = ((HW_SUM + 127) // 128) * 128          # lane-dense padded slab

    # flatten spatial only (no transpose): channel-major, lane axis = H*W
    c3f = C3.reshape(B, Cin3, HW3)
    c4f = C4.reshape(B, Cin4, HW4)
    c5f = C5.reshape(B, Cin5, HW5)

    # ---- packed weights / biases / aux constants ---------------------------
    wa3 = params["align_c3"][0][:, :, 0, 0]        # (C, Cin3)
    wa4 = params["align_c4"][0][:, :, 0, 0]
    wa5 = params["align_c5"][0][:, :, 0, 0]
    wcat = jnp.stack([_pack_w3x3(params[n][0])
                      for n in ("c3b_c4", "c3b_c3", "c3b_p3", "c3b_p4")])
    wsr = jnp.stack([_pack_w3x3(params[n][0]) for n in ("sr_p3", "sr_p4")])
    bias = jnp.stack([params[n][1] for n in
                      ("align_c3", "align_c4", "align_c5", "c3b_c4", "c3b_c3",
                       "sr_p3", "c3b_p3", "sr_p4", "c3b_p4")]).reshape(9, C, 1)
    u54 = _upsample_mat(H5, W5)                    # (HW5, HW4)
    u43 = _upsample_mat(H4, W4)                    # (HW4, HW3)
    d3 = _downsample_mat(H3, W3)                   # (HW3, HW4)
    d4 = _downsample_mat(H4, W4)                   # (HW4, HW5)

    # ---- kernel -------------------------------------------------------------
    def kernel(c3_ref, c4_ref, c5_ref,
               wa3_ref, wa4_ref, wa5_ref,
               wcat_ref, wsr_ref, bias_ref,
               u54_ref, u43_ref, d3_ref, d4_ref,
               out_ref,
               pad3_ref, pad4_ref, pad5_ref, col_ref):

        def dot(a, b):
            return jnp.dot(a, b, preferred_element_type=jnp.float32)

        def border_masks(HW, W):
            # 0/1 masks over output lanes for the dx = -1 / +1 taps — the only
            # invalid reads the zero halo cannot catch (row wrap-around).
            x = jax.lax.broadcasted_iota(jnp.int32, (1, HW), 1) % W
            m_l = jnp.where(x != 0, 1.0, 0.0).astype(jnp.float32)
            m_r = jnp.where(x != W - 1, 1.0, 0.0).astype(jnp.float32)
            return m_l, m_r

        def emit_taps(pad_ref, x, W, HW, masks, gstride, goff):
            # Write the 9 shifted (border-masked) copies of x into the im2col
            # scratch: rows [k*gstride + goff : +C] hold tap k (ky*3 + kx).
            P = W + 1
            m_l, m_r = masks
            pad_ref[:, P:P + HW] = x
            for k in range(9):
                dy, dx = k // 3 - 1, k % 3 - 1
                off = P + dy * W + dx
                t = pad_ref[:, off:off + HW]
                if dx == -1:
                    t = t * m_l
                elif dx == 1:
                    t = t * m_r
                r0 = k * gstride + goff
                col_ref[r0:r0 + C, :HW] = t

        def conv_fuse(w, bias_v, a, bsrc, pad_ref, W, HW, masks):
            # 3x3 stride-1 conv of fuse(a, bsrc) (cat or add), bias + ReLU.
            if fusion == "cat":
                emit_taps(pad_ref, a, W, HW, masks, 2 * C, 0)
                emit_taps(pad_ref, bsrc, W, HW, masks, 2 * C, C)
            else:
                emit_taps(pad_ref, a + bsrc, W, HW, masks, C, 0)
            col = col_ref[0:KCAT, :HW]
            return jnp.maximum(dot(w, col) + bias_v, 0.0)

        def conv3x3_full(w, a, pad_ref, W, HW, masks):
            # 3x3 stride-1 conv, no bias/ReLU (stride-2 = downsample afterwards).
            emit_taps(pad_ref, a, W, HW, masks, C, 0)
            return dot(w, col_ref[0:KSR, :HW])

        # zero the halo columns of the shift scratches (they stay zero after).
        pad3_ref[...] = jnp.zeros(pad3_ref.shape, jnp.float32)
        pad4_ref[...] = jnp.zeros(pad4_ref.shape, jnp.float32)
        pad5_ref[...] = jnp.zeros(pad5_ref.shape, jnp.float32)

        m3 = border_masks(HW3, W3)
        m4 = border_masks(HW4, W4)
        m5 = border_masks(HW5, W5)

        # channel alignment (1x1 convs)
        c3 = jnp.maximum(dot(wa3_ref[...], c3_ref[0]) + bias_ref[0], 0.0)
        c4 = jnp.maximum(dot(wa4_ref[...], c4_ref[0]) + bias_ref[1], 0.0)
        c5 = jnp.maximum(dot(wa5_ref[...], c5_ref[0]) + bias_ref[2], 0.0)

        # top-down (FPN) path
        c5u = dot(c5, u54_ref[...])                                   # (C, HW4)
        c4n = conv_fuse(wcat_ref[0], bias_ref[3], c4, c5u, pad4_ref, W4, HW4, m4)
        c4u = dot(c4n, u43_ref[...])                                  # (C, HW3)
        p3 = conv_fuse(wcat_ref[1], bias_ref[4], c3, c4u, pad3_ref, W3, HW3, m3)

        # bottom-up (PAN) path
        t3 = conv3x3_full(wsr_ref[0], p3, pad3_ref, W3, HW3, m3)
        p3s = jnp.maximum(dot(t3, d3_ref[...]) + bias_ref[5], 0.0)    # (C, HW4)
        p4 = conv_fuse(wcat_ref[2], bias_ref[6], p3s, c4n, pad4_ref, W4, HW4, m4)
        t4 = conv3x3_full(wsr_ref[1], p4, pad4_ref, W4, HW4, m4)
        p4s = jnp.maximum(dot(t4, d4_ref[...]) + bias_ref[7], 0.0)    # (C, HW5)
        p5 = conv_fuse(wcat_ref[3], bias_ref[8], p4s, c5, pad5_ref, W5, HW5, m5)

        # packed lane-dense output slab:  P3 | P4 | P5 | zero pad
        out_ref[0, :, 0:HW3] = p3
        out_ref[0, :, HW3:HW3 + HW4] = p4
        out_ref[0, :, HW3 + HW4:HW_SUM] = p5
        if OUT_W > HW_SUM:
            out_ref[0, :, HW_SUM:OUT_W] = jnp.zeros((C, OUT_W - HW_SUM),
                                                    jnp.float32)

    act_specs = [
        pl.BlockSpec((1, Cin3, HW3), lambda b: (b, 0, 0)),
        pl.BlockSpec((1, Cin4, HW4), lambda b: (b, 0, 0)),
        pl.BlockSpec((1, Cin5, HW5), lambda b: (b, 0, 0)),
    ]
    const_inputs = [wa3, wa4, wa5, wcat, wsr, bias, u54, u43, d3, d4]
    const_specs = [pl.BlockSpec(a.shape, _const_index_map(a.ndim))
                   for a in const_inputs]

    scratch_shapes = [
        pltpu.VMEM((C, HW3 + 2 * (W3 + 1)), jnp.float32),   # shift halo buf P3 res
        pltpu.VMEM((C, HW4 + 2 * (W4 + 1)), jnp.float32),   # shift halo buf P4 res
        pltpu.VMEM((C, HW5 + 2 * (W5 + 1)), jnp.float32),   # shift halo buf P5 res
        pltpu.VMEM((max(KCAT, KSR), HW3), jnp.float32),     # shared im2col scratch
    ]

    packed = pl.pallas_call(
        kernel,
        out_shape=jax.ShapeDtypeStruct((B, C, OUT_W), jnp.float32),
        grid=(B,),
        in_specs=act_specs + const_specs,
        out_specs=pl.BlockSpec((1, C, OUT_W), lambda b: (b, 0, 0)),
        scratch_shapes=scratch_shapes,
        compiler_params=pltpu.CompilerParams(
            dimension_semantics=("parallel",),      # v7x: both TCs busy for B>=2
            vmem_limit_bytes=32 * 1024 * 1024),
    )(c3f, c4f, c5f, *const_inputs)

    p3 = packed[:, :, 0:HW3].reshape(B, C, H3, W3)
    p4 = packed[:, :, HW3:HW3 + HW4].reshape(B, C, H4, W4)
    p5 = packed[:, :, HW3 + HW4:HW_SUM].reshape(B, C, H5, W5)
    return [p3, p4, p5]


# ----------------------------------------------------------------------------
# Pure-JAX reference (NCHW), mirroring the PyTorch forward, for validation.
# ----------------------------------------------------------------------------
def _conv_ref(x, w, b, stride, pad):
    y = jax.lax.conv_general_dilated(
        x, w, window_strides=(stride, stride),
        padding=((pad, pad), (pad, pad)),
        dimension_numbers=("NCHW", "OIHW", "NCHW"),
        precision=jax.lax.Precision.HIGHEST)
    return jnp.maximum(y + b[None, :, None, None], 0.0)


def _upsample_ref(x):
    return jnp.repeat(jnp.repeat(x, 2, axis=2), 2, axis=3)


def fpnpan_reference(params, C3, C4, C5, fusion="cat"):
    def cv(name, x, s, p):
        w, b = params[name]
        return _conv_ref(x, w, b, s, p)

    def fuse(a, b):
        return jnp.concatenate((a, b), axis=1) if fusion == "cat" else a + b

    C3 = cv("align_c3", C3, 1, 0)
    C4 = cv("align_c4", C4, 1, 0)
    C5 = cv("align_c5", C5, 1, 0)
    C5p = _upsample_ref(C5)
    C4 = cv("c3b_c4", fuse(C4, C5p), 1, 1)
    C4p = _upsample_ref(C4)
    P3 = cv("c3b_c3", fuse(C3, C4p), 1, 1)
    P3p = cv("sr_p3", P3, 2, 1)
    P4 = cv("c3b_p3", fuse(P3p, C4), 1, 1)
    P4p = cv("sr_p4", P4, 2, 1)
    P5 = cv("c3b_p4", fuse(P4p, C5), 1, 1)
    return [P3, P4, P5]


# ----------------------------------------------------------------------------
if __name__ == "__main__":
    key = jax.random.PRNGKey(0)
    k_p, k3, k4, k5 = jax.random.split(key, 4)

    backbone_depths = (4, 8, 16)   # channels of C3, C4, C5 from the backbone
    channels = 8
    B, H = 2, 16
    fusion = "cat"

    # PyTorch-convention NCHW inputs (C3 is the highest-resolution level)
    C3 = jax.random.normal(k3, (B, backbone_depths[0], H, H), jnp.float32)
    C4 = jax.random.normal(k4, (B, backbone_depths[1], H // 2, H // 2), jnp.float32)
    C5 = jax.random.normal(k5, (B, backbone_depths[2], H // 4, H // 4), jnp.float32)

    params = init_fpnpan_params(k_p, backbone_depths, channels, fusion)

    fwd = jax.jit(functools.partial(fpnpan_forward, channels=channels, fusion=fusion))
    P3, P4, P5 = fwd(params, C3, C4, C5)
    jax.block_until_ready((P3, P4, P5))

    assert P3.shape == (B, channels, H, H), P3.shape
    assert P4.shape == (B, channels, H // 2, H // 2), P4.shape
    assert P5.shape == (B, channels, H // 4, H // 4), P5.shape
    assert all(bool(jnp.all(jnp.isfinite(p))) for p in (P3, P4, P5))

    # numerical check against the pure-JAX NCHW reference
    # (in-kernel matmuls use the TPU default matmul precision; tolerance is
    #  set accordingly vs. the Precision.HIGHEST reference)
    R3, R4, R5 = fpnpan_reference(params, C3, C4, C5, fusion)
    for p, r in ((P3, R3), (P4, R4), (P5, R5)):
        scale = float(jnp.max(jnp.abs(r))) + 1.0
        err = float(jnp.max(jnp.abs(p - r)))
        assert err <= 2e-2 * scale, (err, scale)

    print("KERNEL_OK")
</pallas_src>

<mosaic_0001>
module attributes {stable_mosaic.version = 11 : i64} {
  func.func @kernel(%arg0: i32, %arg1: memref<1x4x256xf32, #tpu.memory_space<vmem>>, %arg2: memref<1x8x64xf32, #tpu.memory_space<vmem>>, %arg3: memref<1x16x16xf32, #tpu.memory_space<vmem>>, %arg4: memref<8x4xf32, #tpu.memory_space<vmem>>, %arg5: memref<8x8xf32, #tpu.memory_space<vmem>>, %arg6: memref<8x16xf32, #tpu.memory_space<vmem>>, %arg7: memref<4x8x144xf32, #tpu.memory_space<vmem>>, %arg8: memref<2x8x72xf32, #tpu.memory_space<vmem>>, %arg9: memref<9x8x1xf32, #tpu.memory_space<vmem>>, %arg10: memref<16x64xf32, #tpu.memory_space<vmem>>, %arg11: memref<64x256xf32, #tpu.memory_space<vmem>>, %arg12: memref<256x64xf32, #tpu.memory_space<vmem>>, %arg13: memref<64x16xf32, #tpu.memory_space<vmem>>, %arg14: memref<1x8x384xf32, #tpu.memory_space<vmem>>, %arg15: memref<8x290xf32, #tpu.memory_space<vmem>>, %arg16: memref<8x82xf32, #tpu.memory_space<vmem>>, %arg17: memref<8x26xf32, #tpu.memory_space<vmem>>, %arg18: memref<144x256xf32, #tpu.memory_space<vmem>>) attributes {dimension_semantics = [#tpu.dimension_semantics<parallel>], iteration_bounds = array<i64: 2>, scalar_prefetch = 0 : i64, scratch_operands = 4 : i64, tpu.core_type = #tpu.core_type<tc>, window_params = [{transform_indices = @transform_0, window_bounds = array<i64: 1, 4, 256>}, {transform_indices = @transform_1, window_bounds = array<i64: 1, 8, 64>}, {transform_indices = @transform_2, window_bounds = array<i64: 1, 16, 16>}, {pipeline_mode = #tpu.pipeline_mode<synchronous>, transform_indices = @transform_3, window_bounds = array<i64: 8, 4>}, {pipeline_mode = #tpu.pipeline_mode<synchronous>, transform_indices = @transform_4, window_bounds = array<i64: 8, 8>}, {pipeline_mode = #tpu.pipeline_mode<synchronous>, transform_indices = @transform_5, window_bounds = array<i64: 8, 16>}, {pipeline_mode = #tpu.pipeline_mode<synchronous>, transform_indices = @transform_6, window_bounds = array<i64: 4, 8, 144>}, {pipeline_mode = #tpu.pipeline_mode<synchronous>, transform_indices = @transform_7, window_bounds = array<i64: 2, 8, 72>}, {pipeline_mode = #tpu.pipeline_mode<synchronous>, transform_indices = @transform_8, window_bounds = array<i64: 9, 8, 1>}, {pipeline_mode = #tpu.pipeline_mode<synchronous>, transform_indices = @transform_9, window_bounds = array<i64: 16, 64>}, {pipeline_mode = #tpu.pipeline_mode<synchronous>, transform_indices = @transform_10, window_bounds = array<i64: 64, 256>}, {pipeline_mode = #tpu.pipeline_mode<synchronous>, transform_indices = @transform_11, window_bounds = array<i64: 256, 64>}, {pipeline_mode = #tpu.pipeline_mode<synchronous>, transform_indices = @transform_12, window_bounds = array<i64: 64, 16>}, {transform_indices = @transform_13, window_bounds = array<i64: 1, 8, 384>}]} {
    %cst = arith.constant 0.000000e+00 : f32
    %0 = vector.broadcast %cst : f32 to vector<8x290xf32>
    %c0 = arith.constant 0 : index
    %c0_0 = arith.constant 0 : index
    %1 = vector.load %arg15[%c0, %c0_0] : memref<8x290xf32, #tpu.memory_space<vmem>>, vector<8x290xf32>
    tpu.vector_store %arg15[%c0, %c0_0], %0 {strides = array<i32>} : memref<8x290xf32, #tpu.memory_space<vmem>>, vector<8x290xf32>,
    %cst_1 = arith.constant 0.000000e+00 : f32
    %2 = vector.broadcast %cst_1 : f32 to vector<8x82xf32>
    %c0_2 = arith.constant 0 : index
    %c0_3 = arith.constant 0 : index
    %3 = vector.load %arg16[%c0_2, %c0_3] : memref<8x82xf32, #tpu.memory_space<vmem>>, vector<8x82xf32>
    tpu.vector_store %arg16[%c0_2, %c0_3], %2 {strides = array<i32>} : memref<8x82xf32, #tpu.memory_space<vmem>>, vector<8x82xf32>,
    %cst_4 = arith.constant 0.000000e+00 : f32
    %4 = vector.broadcast %cst_4 : f32 to vector<8x26xf32>
    %c0_5 = arith.constant 0 : index
    %c0_6 = arith.constant 0 : index
    %5 = vector.load %arg17[%c0_5, %c0_6] : memref<8x26xf32, #tpu.memory_space<vmem>>, vector<8x26xf32>
    tpu.vector_store %arg17[%c0_5, %c0_6], %4 {strides = array<i32>} : memref<8x26xf32, #tpu.memory_space<vmem>>, vector<8x26xf32>,
    %6 = tpu.iota {dimensions = array<i32: 1>} : vector<1x256xi32>
    %c16_i32 = arith.constant 16 : i32
    %c0_i32 = arith.constant 0 : i32
    %7 = arith.cmpi eq, %c16_i32, %c0_i32 : i32
    %c1_i32 = arith.constant 1 : i32
    %8 = arith.select %7, %c1_i32, %c16_i32 : i32
    %9 = vector.broadcast %8 : i32 to vector<1x256xi32>
    %10 = arith.remsi %6, %9 : vector<1x256xi32>
    %c0_i32_7 = arith.constant 0 : i32
    %11 = vector.broadcast %c0_i32_7 : i32 to vector<1x256xi32>
    %12 = arith.cmpi ne, %10, %11 : vector<1x256xi32>
    %c0_i32_8 = arith.constant 0 : i32
    %13 = vector.broadcast %c0_i32_8 : i32 to vector<1x256xi32>
    %14 = arith.cmpi slt, %10, %13 : vector<1x256xi32>
    %c0_i32_9 = arith.constant 0 : i32
    %15 = arith.cmpi slt, %8, %c0_i32_9 : i32
    %16 = vector.broadcast %15 : i1 to vector<1x256xi1>
    %17 = vector.broadcast %16 : vector<1x256xi1> to vector<1x256xi1>
    %18 = arith.xori %14, %17 : vector<1x256xi1>
    %19 = arith.andi %18, %12 : vector<1x256xi1>
    %20 = vector.broadcast %8 : i32 to vector<1x256xi32>
    %21 = arith.addi %10, %20 : vector<1x256xi32>
    %22 = arith.select %19, %21, %10 : vector<1x256xi1>, vector<1x256xi32>
    %c0_i32_10 = arith.constant 0 : i32
    %23 = vector.broadcast %c0_i32_10 : i32 to vector<1x256xi32>
    %24 = arith.cmpi ne, %22, %23 : vector<1x256xi32>
    %cst_11 = arith.constant 1.000000e+00 : f32
    %cst_12 = arith.constant 0.000000e+00 : f32
    %25 = vector.broadcast %cst_11 : f32 to vector<1x256xf32>
    %26 = vector.broadcast %cst_12 : f32 to vector<1x256xf32>
    %27 = arith.select %24, %25, %26 : vector<1x256xi1>, vector<1x256xf32>
    %c15_i32 = arith.constant 15 : i32
    %28 = vector.broadcast %c15_i32 : i32 to vector<1x256xi32>
    %29 = arith.cmpi ne, %22, %28 : vector<1x256xi32>
    %cst_13 = arith.constant 1.000000e+00 : f32
    %cst_14 = arith.constant 0.000000e+00 : f32
    %30 = vector.broadcast %cst_13 : f32 to vector<1x256xf32>
    %31 = vector.broadcast %cst_14 : f32 to vector<1x256xf32>
    %32 = arith.select %29, %30, %31 : vector<1x256xi1>, vector<1x256xf32>
    %33 = tpu.iota {dimensions = array<i32: 1>} : vector<1x64xi32>
    %c8_i32 = arith.constant 8 : i32
    %c0_i32_15 = arith.constant 0 : i32
    %34 = arith.cmpi eq, %c8_i32, %c0_i32_15 : i32
    %c1_i32_16 = arith.constant 1 : i32
    %35 = arith.select %34, %c1_i32_16, %c8_i32 : i32
    %36 = vector.broadcast %35 : i32 to vector<1x64xi32>
    %37 = arith.remsi %33, %36 : vector<1x64xi32>
    %c0_i32_17 = arith.constant 0 : i32
    %38 = vector.broadcast %c0_i32_17 : i32 to vector<1x64xi32>
    %39 = arith.cmpi ne, %37, %38 : vector<1x64xi32>
    %c0_i32_18 = arith.constant 0 : i32
    %40 = vector.broadcast %c0_i32_18 : i32 to vector<1x64xi32>
    %41 = arith.cmpi slt, %37, %40 : vector<1x64xi32>
    %c0_i32_19 = arith.constant 0 : i32
    %42 = arith.cmpi slt, %35, %c0_i32_19 : i32
    %43 = vector.broadcast %42 : i1 to vector<1x64xi1>
    %44 = vector.broadcast %43 : vector<1x64xi1> to vector<1x64xi1>
    %45 = arith.xori %41, %44 : vector<1x64xi1>
    %46 = arith.andi %45, %39 : vector<1x64xi1>
    %47 = vector.broadcast %35 : i32 to vector<1x64xi32>
    %48 = arith.addi %37, %47 : vector<1x64xi32>
    %49 = arith.select %46, %48, %37 : vector<1x64xi1>, vector<1x64xi32>
    %c0_i32_20 = arith.constant 0 : i32
    %50 = vector.broadcast %c0_i32_20 : i32 to vector<1x64xi32>
    %51 = arith.cmpi ne, %49, %50 : vector<1x64xi32>
    %cst_21 = arith.constant 1.000000e+00 : f32
    %cst_22 = arith.constant 0.000000e+00 : f32
    %52 = vector.broadcast %cst_21 : f32 to vector<1x64xf32>
    %53 = vector.broadcast %cst_22 : f32 to vector<1x64xf32>
    %54 = arith.select %51, %52, %53 : vector<1x64xi1>, vector<1x64xf32>
    %c7_i32 = arith.constant 7 : i32
    %55 = vector.broadcast %c7_i32 : i32 to vector<1x64xi32>
    %56 = arith.cmpi ne, %49, %55 : vector<1x64xi32>
    %cst_23 = arith.constant 1.000000e+00 : f32
    %cst_24 = arith.constant 0.000000e+00 : f32
    %57 = vector.broadcast %cst_23 : f32 to vector<1x64xf32>
    %58 = vector.broadcast %cst_24 : f32 to vector<1x64xf32>
    %59 = arith.select %56, %57, %58 : vector<1x64xi1>, vector<1x64xf32>
    %60 = tpu.iota {dimensions = array<i32: 1>} : vector<1x16xi32>
    %c4_i32 = arith.constant 4 : i32
    %c0_i32_25 = arith.constant 0 : i32
    %61 = arith.cmpi eq, %c4_i32, %c0_i32_25 : i32
    %c1_i32_26 = arith.constant 1 : i32
    %62 = arith.select %61, %c1_i32_26, %c4_i32 : i32
    %63 = vector.broadcast %62 : i32 to vector<1x16xi32>
    %64 = arith.remsi %60, %63 : vector<1x16xi32>
    %c0_i32_27 = arith.constant 0 : i32
    %65 = vector.broadcast %c0_i32_27 : i32 to vector<1x16xi32>
    %66 = arith.cmpi ne, %64, %65 : vector<1x16xi32>
    %c0_i32_28 = arith.constant 0 : i32
    %67 = vector.broadcast %c0_i32_28 : i32 to vector<1x16xi32>
    %68 = arith.cmpi slt, %64, %67 : vector<1x16xi32>
    %c0_i32_29 = arith.constant 0 : i32
    %69 = arith.cmpi slt, %62, %c0_i32_29 : i32
    %70 = vector.broadcast %69 : i1 to vector<1x16xi1>
    %71 = vector.broadcast %70 : vector<1x16xi1> to vector<1x16xi1>
    %72 = arith.xori %68, %71 : vector<1x16xi1>
    %73 = arith.andi %72, %66 : vector<1x16xi1>
    %74 = vector.broadcast %62 : i32 to vector<1x16xi32>
    %75 = arith.addi %64, %74 : vector<1x16xi32>
    %76 = arith.select %73, %75, %64 : vector<1x16xi1>, vector<1x16xi32>
    %c0_i32_30 = arith.constant 0 : i32
    %77 = vector.broadcast %c0_i32_30 : i32 to vector<1x16xi32>
    %78 = arith.cmpi ne, %76, %77 : vector<1x16xi32>
    %cst_31 = arith.constant 1.000000e+00 : f32
    %cst_32 = arith.constant 0.000000e+00 : f32
    %79 = vector.broadcast %cst_31 : f32 to vector<1x16xf32>
    %80 = vector.broadcast %cst_32 : f32 to vector<1x16xf32>
    %81 = arith.select %78, %79, %80 : vector<1x16xi1>, vector<1x16xf32>
    %c3_i32 = arith.constant 3 : i32
    %82 = vector.broadcast %c3_i32 : i32 to vector<1x16xi32>
    %83 = arith.cmpi ne, %76, %82 : vector<1x16xi32>
    %cst_33 = arith.constant 1.000000e+00 : f32
    %cst_34 = arith.constant 0.000000e+00 : f32
    %84 = vector.broadcast %cst_33 : f32 to vector<1x16xf32>
    %85 = vector.broadcast %cst_34 : f32 to vector<1x16xf32>
    %86 = arith.select %83, %84, %85 : vector<1x16xi1>, vector<1x16xf32>
    %c0_35 = arith.constant 0 : index
    %c0_36 = arith.constant 0 : index
    %87 = vector.load %arg4[%c0_35, %c0_36] : memref<8x4xf32, #tpu.memory_space<vmem>>, vector<8x4xf32>
    %c0_37 = arith.constant 0 : index
    %c0_38 = arith.constant 0 : index
    %c0_39 = arith.constant 0 : index
    %88 = vector.load %arg1[%c0_37, %c0_38, %c0_39] : memref<1x4x256xf32, #tpu.memory_space<vmem>>, vector<1x4x256xf32>
    %89 = vector.shape_cast %88 : vector<1x4x256xf32> to vector<4x256xf32>
    %cst_40 = arith.constant dense<0.000000e+00> : vector<8x256xf32>
    %90 = tpu.matmul %87, %89, %cst_40 {dimension_numbers = #tpu.dot_dimension_numbers<[1], [0], [0], [1], [0, 0, 1, 1], [], []>} : vector<8x4xf32>, vector<4x256xf32>, vector<8x256xf32> -> vector<8x256xf32>
    %c0_41 = arith.constant 0 : index
    %c0_42 = arith.constant 0 : index
    %c0_43 = arith.constant 0 : index
    %91 = vector.load %arg9[%c0_41, %c0_42, %c0_43] : memref<9x8x1xf32, #tpu.memory_space<vmem>>, vector<1x8x1xf32>
    %92 = vector.shape_cast %91 : vector<1x8x1xf32> to vector<8x1xf32>
    %93 = vector.broadcast %92 : vector<8x1xf32> to vector<8x256xf32>
    %94 = arith.addf %90, %93 : vector<8x256xf32>
    %cst_44 = arith.constant 0.000000e+00 : f32
    %95 = vector.broadcast %cst_44 : f32 to vector<8x256xf32>
    %96 = arith.maximumf %94, %95 : vector<8x256xf32>
    %c0_45 = arith.constant 0 : index
    %c0_46 = arith.constant 0 : index
    %97 = vector.load %arg5[%c0_45, %c0_46] : memref<8x8xf32, #tpu.memory_space<vmem>>, vector<8x8xf32>
    %c0_47 = arith.constant 0 : index
    %c0_48 = arith.constant 0 : index
    %c0_49 = arith.constant 0 : index
    %98 = vector.load %arg2[%c0_47, %c0_48, %c0_49] : memref<1x8x64xf32, #tpu.memory_space<vmem>>, vector<1x8x64xf32>
    %99 = vector.shape_cast %98 : vector<1x8x64xf32> to vector<8x64xf32>
    %cst_50 = arith.constant dense<0.000000e+00> : vector<8x64xf32>
    %100 = tpu.matmul %97, %99, %cst_50 {dimension_numbers = #tpu.dot_dimension_numbers<[1], [0], [0], [1], [0, 0, 1, 1], [], []>} : vector<8x8xf32>, vector<8x64xf32>, vector<8x64xf32> -> vector<8x64xf32>
    %c1 = arith.constant 1 : index
    %c0_51 = arith.constant 0 : index
    %c0_52 = arith.constant 0 : index
    %101 = vector.load %arg9[%c1, %c0_51, %c0_52] : memref<9x8x1xf32, #tpu.memory_space<vmem>>, vector<1x8x1xf32>
    %102 = vector.shape_cast %101 : vector<1x8x1xf32> to vector<8x1xf32>
    %103 = vector.broadcast %102 : vector<8x1xf32> to vector<8x64xf32>
    %104 = arith.addf %100, %103 : vector<8x64xf32>
    %cst_53 = arith.constant 0.000000e+00 : f32
    %105 = vector.broadcast %cst_53 : f32 to vector<8x64xf32>
    %106 = arith.maximumf %104, %105 : vector<8x64xf32>
    %c0_54 = arith.constant 0 : index
    %c0_55 = arith.constant 0 : index
    %107 = vector.load %arg6[%c0_54, %c0_55] : memref<8x16xf32, #tpu.memory_space<vmem>>, vector<8x16xf32>
    %c0_56 = arith.constant 0 : index
    %c0_57 = arith.constant 0 : index
    %c0_58 = arith.constant 0 : index
    %108 = vector.load %arg3[%c0_56, %c0_57, %c0_58] : memref<1x16x16xf32, #tpu.memory_space<vmem>>, vector<1x16x16xf32>
    %109 = vector.shape_cast %108 : vector<1x16x16xf32> to vector<16x16xf32>
    %cst_59 = arith.constant dense<0.000000e+00> : vector<8x16xf32>
    %110 = tpu.matmul %107, %109, %cst_59 {dimension_numbers = #tpu.dot_dimension_numbers<[1], [0], [0], [1], [0, 0, 1, 1], [], []>} : vector<8x16xf32>, vector<16x16xf32>, vector<8x16xf32> -> vector<8x16xf32>
    %c2 = arith.constant 2 : index
    %c0_60 = arith.constant 0 : index
    %c0_61 = arith.constant 0 : index
    %111 = vector.load %arg9[%c2, %c0_60, %c0_61] : memref<9x8x1xf32, #tpu.memory_space<vmem>>, vector<1x8x1xf32>
    %112 = vector.shape_cast %111 : vector<1x8x1xf32> to vector<8x1xf32>
    %113 = vector.broadcast %112 : vector<8x1xf32> to vector<8x16xf32>
    %114 = arith.addf %110, %113 : vector<8x16xf32>
    %cst_62 = arith.constant 0.000000e+00 : f32
    %115 = vector.broadcast %cst_62 : f32 to vector<8x16xf32>
    %116 = arith.maximumf %114, %115 : vector<8x16xf32>
    %c0_63 = arith.constant 0 : index
    %c0_64 = arith.constant 0 : index
    %117 = vector.load %arg10[%c0_63, %c0_64] : memref<16x64xf32, #tpu.memory_space<vmem>>, vector<16x64xf32>
    %cst_65 = arith.constant dense<0.000000e+00> : vector<8x64xf32>
    %118 = tpu.matmul %116, %117, %cst_65 {dimension_numbers = #tpu.dot_dimension_numbers<[1], [0], [0], [1], [0, 0, 1, 1], [], []>} : vector<8x16xf32>, vector<16x64xf32>, vector<8x64xf32> -> vector<8x64xf32>
    %c0_66 = arith.constant 0 : index
    %c0_67 = arith.constant 0 : index
    %c0_68 = arith.constant 0 : index
    %119 = vector.load %arg7[%c0_66, %c0_67, %c0_68] : memref<4x8x144xf32, #tpu.memory_space<vmem>>, vector<1x8x144xf32>
    %120 = vector.shape_cast %119 : vector<1x8x144xf32> to vector<8x144xf32>
    %c3 = arith.constant 3 : index
    %c0_69 = arith.constant 0 : index
    %c0_70 = arith.constant 0 : index
    %121 = vector.load %arg9[%c3, %c0_69, %c0_70] : memref<9x8x1xf32, #tpu.memory_space<vmem>>, vector<1x8x1xf32>
    %122 = vector.shape_cast %121 : vector<1x8x1xf32> to vector<8x1xf32>
    %c0_71 = arith.constant 0 : index
    %c9 = arith.constant 9 : index
    %123 = vector.load %arg16[%c0_71, %c9] : memref<8x82xf32, #tpu.memory_space<vmem>>, vector<8x64xf32>
    tpu.vector_store %arg16[%c0_71, %c9], %106 {strides = array<i32>} : memref<8x82xf32, #tpu.memory_space<vmem>>, vector<8x64xf32>,
    %c0_72 = arith.constant 0 : index
    %c0_73 = arith.constant 0 : index
    %124 = vector.load %arg16[%c0_72, %c0_73] : memref<8x82xf32, #tpu.memory_space<vmem>>, vector<8x64xf32>
    %125 = vector.broadcast %54 : vector<1x64xf32> to vector<8x64xf32>
    %126 = arith.mulf %124, %125 : vector<8x64xf32>
    %c0_74 = arith.constant 0 : index
    %c0_75 = arith.constant 0 : index
    %127 = vector.load %arg18[%c0_74, %c0_75] : memref<144x256xf32, #tpu.memory_space<vmem>>, vector<8x64xf32>
    tpu.vector_store %arg18[%c0_74, %c0_75], %126 {strides = array<i32>} : memref<144x256xf32, #tpu.memory_space<vmem>>, vector<8x64xf32>,
    %c0_76 = arith.constant 0 : index
    %c1_77 = arith.constant 1 : index
    %128 = vector.load %arg16[%c0_76, %c1_77] : memref<8x82xf32, #tpu.memory_space<vmem>>, vector<8x64xf32>
    %c16 = arith.constant 16 : index
    %c0_78 = arith.constant 0 : index
    %129 = vector.load %arg18[%c16, %c0_78] : memref<144x256xf32, #tpu.memory_space<vmem>>, vector<8x64xf32>
    tpu.vector_store %arg18[%c16, %c0_78], %128 {strides = array<i32>} : memref<144x256xf32, #tpu.memory_space<vmem>>, vector<8x64xf32>,
    %c0_79 = arith.constant 0 : index
    %c2_80 = arith.constant 2 : index
    %130 = vector.load %arg16[%c0_79, %c2_80] : memref<8x82xf32, #tpu.memory_space<vmem>>, vector<8x64xf32>
    %131 = vector.broadcast %59 : vector<1x64xf32> to vector<8x64xf32>
    %132 = arith.mulf %130, %131 : vector<8x64xf32>
    %c32 = arith.constant 32 : index
    %c0_81 = arith.constant 0 : index
    %133 = vector.load %arg18[%c32, %c0_81] : memref<144x256xf32, #tpu.memory_space<vmem>>, vector<8x64xf32>
    tpu.vector_store %arg18[%c32, %c0_81], %132 {strides = array<i32>} : memref<144x256xf32, #tpu.memory_space<vmem>>, vector<8x64xf32>,
    %c0_82 = arith.constant 0 : index
    %c8 = arith.constant 8 : index
    %134 = vector.load %arg16[%c0_82, %c8] : memref<8x82xf32, #tpu.memory_space<vmem>>, vector<8x64xf32>
    %135 = vector.broadcast %54 : vector<1x64xf32> to vector<8x64xf32>
    %136 = arith.mulf %134, %135 : vector<8x64xf32>
    %c48 = arith.constant 48 : index
    %c0_83 = arith.constant 0 : index
    %137 = vector.load %arg18[%c48, %c0_83] : memref<144x256xf32, #tpu.memory_space<vmem>>, vector<8x64xf32>
    tpu.vector_store %arg18[%c48, %c0_83], %136 {strides = array<i32>} : memref<144x256xf32, #tpu.memory_space<vmem>>, vector<8x64xf32>,
    %c0_84 = arith.constant 0 : index
    %c9_85 = arith.constant 9 : index
    %138 = vector.load %arg16[%c0_84, %c9_85] : memref<8x82xf32, #tpu.memory_space<vmem>>, vector<8x64xf32>
    %c64 = arith.constant 64 : index
    %c0_86 = arith.constant 0 : index
    %139 = vector.load %arg18[%c64, %c0_86] : memref<144x256xf32, #tpu.memory_space<vmem>>, vector<8x64xf32>
    tpu.vector_store %arg18[%c64, %c0_86], %138 {strides = array<i32>} : memref<144x256xf32, #tpu.memory_space<vmem>>, vector<8x64xf32>,
    %c0_87 = arith.constant 0 : index
    %c10 = arith.constant 10 : index
    %140 = vector.load %arg16[%c0_87, %c10] : memref<8x82xf32, #tpu.memory_space<vmem>>, vector<8x64xf32>
    %141 = vector.broadcast %59 : vector<1x64xf32> to vector<8x64xf32>
    %142 = arith.mulf %140, %141 : vector<8x64xf32>
    %c80 = arith.constant 80 : index
    %c0_88 = arith.constant 0 : index
    %143 = vector.load %arg18[%c80, %c0_88] : memref<144x256xf32, #tpu.memory_space<vmem>>, vector<8x64xf32>
    tpu.vector_store %arg18[%c80, %c0_88], %142 {strides = array<i32>} : memref<144x256xf32, #tpu.memory_space<vmem>>, vector<8x64xf32>,
    %c0_89 = arith.constant 0 : index
    %c16_90 = arith.constant 16 : index
    %144 = vector.load %arg16[%c0_89, %c16_90] : memref<8x82xf32, #tpu.memory_space<vmem>>, vector<8x64xf32>
    %145 = vector.broadcast %54 : vector<1x64xf32> to vector<8x64xf32>
    %146 = arith.mulf %144, %145 : vector<8x64xf32>
    %c96 = arith.constant 96 : index
    %c0_91 = arith.constant 0 : index
    %147 = vector.load %arg18[%c96, %c0_91] : memref<144x256xf32, #tpu.memory_space<vmem>>, vector<8x64xf32>
    tpu.vector_store %arg18[%c96, %c0_91], %146 {strides = array<i32>} : memref<144x256xf32, #tpu.memory_space<vmem>>, vector<8x64xf32>,
    %c0_92 = arith.constant 0 : index
    %c17 = arith.constant 17 : index
    %148 = vector.load %arg16[%c0_92, %c17] : memref<8x82xf32, #tpu.memory_space<vmem>>, vector<8x64xf32>
    %c112 = arith.constant 112 : index
    %c0_93 = arith.constant 0 : index
    %149 = vector.load %arg18[%c112, %c0_93] : memref<144x256xf32, #tpu.memory_space<vmem>>, vector<8x64xf32>
    tpu.vector_store %arg18[%c112, %c0_93], %148 {strides = array<i32>} : memref<144x256xf32, #tpu.memory_space<vmem>>, vector<8x64xf32>,
    %c0_94 = arith.constant 0 : index
    %c18 = arith.constant 18 : index
    %150 = vector.load %arg16[%c0_94, %c18] : memref<8x82xf32, #tpu.memory_space<vmem>>, vector<8x64xf32>
    %151 = vector.broadcast %59 : vector<1x64xf32> to vector<8x64xf32>
    %152 = arith.mulf %150, %151 : vector<8x64xf32>
    %c128 = arith.constant 128 : index
    %c0_95 = arith.constant 0 : index
    %153 = vector.load %arg18[%c128, %c0_95] : memref<144x256xf32, #tpu.memory_space<vmem>>, vector<8x64xf32>
    tpu.vector_store %arg18[%c128, %c0_95], %152 {strides = array<i32>} : memref<144x256xf32, #tpu.memory_space<vmem>>, vector<8x64xf32>,
    %c0_96 = arith.constant 0 : index
    %c9_97 = arith.constant 9 : index
    %154 = vector.load %arg16[%c0_96, %c9_97] : memref<8x82xf32, #tpu.memory_space<vmem>>, vector<8x64xf32>
    tpu.vector_store %arg16[%c0_96, %c9_97], %118 {strides = array<i32>} : memref<8x82xf32, #tpu.memory_space<vmem>>, vector<8x64xf32>,
    %c0_98 = arith.constant 0 : index
    %c0_99 = arith.constant 0 : index
    %155 = vector.load %arg16[%c0_98, %c0_99] : memref<8x82xf32, #tpu.memory_space<vmem>>, vector<8x64xf32>
    %156 = vector.broadcast %54 : vector<1x64xf32> to vector<8x64xf32>
    %157 = arith.mulf %155, %156 : vector<8x64xf32>
    %c8_100 = arith.constant 8 : index
    %c0_101 = arith.constant 0 : index
    %158 = vector.load %arg18[%c8_100, %c0_101] : memref<144x256xf32, #tpu.memory_space<vmem>>, vector<8x64xf32>
    tpu.vector_store %arg18[%c8_100, %c0_101], %157 {strides = array<i32>} : memref<144x256xf32, #tpu.memory_space<vmem>>, vector<8x64xf32>,
    %c0_102 = arith.constant 0 : index
    %c1_103 = arith.constant 1 : index
    %159 = vector.load %arg16[%c0_102, %c1_103] : memref<8x82xf32, #tpu.memory_space<vmem>>, vector<8x64xf32>
    %c24 = arith.constant 24 : index
    %c0_104 = arith.constant 0 : index
    %160 = vector.load %arg18[%c24, %c0_104] : memref<144x256xf32, #tpu.memory_space<vmem>>, vector<8x64xf32>
    tpu.vector_store %arg18[%c24, %c0_104], %159 {strides = array<i32>} : memref<144x256xf32, #tpu.memory_space<vmem>>, vector<8x64xf32>,
    %c0_105 = arith.constant 0 : index
    %c2_106 = arith.constant 2 : index
    %161 = vector.load %arg16[%c0_105, %c2_106] : memref<8x82xf32, #tpu.memory_space<vmem>>, vector<8x64xf32>
    %162 = vector.broadcast %59 : vector<1x64xf32> to vector<8x64xf32>
    %163 = arith.mulf %161, %162 : vector<8x64xf32>
    %c40 = arith.constant 40 : index
    %c0_107 = arith.constant 0 : index
    %164 = vector.load %arg18[%c40, %c0_107] : memref<144x256xf32, #tpu.memory_space<vmem>>, vector<8x64xf32>
    tpu.vector_store %arg18[%c40, %c0_107], %163 {strides = array<i32>} : memref<144x256xf32, #tpu.memory_space<vmem>>, vector<8x64xf32>,
    %c0_108 = arith.constant 0 : index
    %c8_109 = arith.constant 8 : index
    %165 = vector.load %arg16[%c0_108, %c8_109] : memref<8x82xf32, #tpu.memory_space<vmem>>, vector<8x64xf32>
    %166 = vector.broadcast %54 : vector<1x64xf32> to vector<8x64xf32>
    %167 = arith.mulf %165, %166 : vector<8x64xf32>
    %c56 = arith.constant 56 : index
    %c0_110 = arith.constant 0 : index
    %168 = vector.load %arg18[%c56, %c0_110] : memref<144x256xf32, #tpu.memory_space<vmem>>, vector<8x64xf32>
    tpu.vector_store %arg18[%c56, %c0_110], %167 {strides = array<i32>} : memref<144x256xf32, #tpu.memory_space<vmem>>, vector<8x64xf32>,
    %c0_111 = arith.constant 0 : index
    %c9_112 = arith.constant 9 : index
    %169 = vector.load %arg16[%c0_111, %c9_112] : memref<8x82xf32, #tpu.memory_space<vmem>>, vector<8x64xf32>
    %c72 = arith.constant 72 : index
    %c0_113 = arith.constant 0 : index
    %170 = vector.load %arg18[%c72, %c0_113] : memref<144x256xf32, #tpu.memory_space<vmem>>, vector<8x64xf32>
    tpu.vector_store %arg18[%c72, %c0_113], %169 {strides = array<i32>} : memref<144x256xf32, #tpu.memory_space<vmem>>, vector<8x64xf32>,
    %c0_114 = arith.constant 0 : index
    %c10_115 = arith.constant 10 : index
    %171 = vector.load %arg16[%c0_114, %c10_115] : memref<8x82xf32, #tpu.memory_space<vmem>>, vector<8x64xf32>
    %172 = vector.broadcast %59 : vector<1x64xf32> to vector<8x64xf32>
    %173 = arith.mulf %171, %172 : vector<8x64xf32>
    %c88 = arith.constant 88 : index
    %c0_116 = arith.constant 0 : index
    %174 = vector.load %arg18[%c88, %c0_116] : memref<144x256xf32, #tpu.memory_space<vmem>>, vector<8x64xf32>
    tpu.vector_store %arg18[%c88, %c0_116], %173 {strides = array<i32>} : memref<144x256xf32, #tpu.memory_space<vmem>>, vector<8x64xf32>,
    %c0_117 = arith.constant 0 : index
    %c16_118 = arith.constant 16 : index
    %175 = vector.load %arg16[%c0_117, %c16_118] : memref<8x82xf32, #tpu.memory_space<vmem>>, vector<8x64xf32>
    %176 = vector.broadcast %54 : vector<1x64xf32> to vector<8x64xf32>
    %177 = arith.mulf %175, %176 : vector<8x64xf32>
    %c104 = arith.constant 104 : index
    %c0_119 = arith.constant 0 : index
    %178 = vector.load %arg18[%c104, %c0_119] : memref<144x256xf32, #tpu.memory_space<vmem>>, vector<8x64xf32>
    tpu.vector_store %arg18[%c104, %c0_119], %177 {strides = array<i32>} : memref<144x256xf32, #tpu.memory_space<vmem>>, vector<8x64xf32>,
    %c0_120 = arith.constant 0 : index
    %c17_121 = arith.constant 17 : index
    %179 = vector.load %arg16[%c0_120, %c17_121] : memref<8x82xf32, #tpu.memory_space<vmem>>, vector<8x64xf32>
    %c120 = arith.constant 120 : index
    %c0_122 = arith.constant 0 : index
    %180 = vector.load %arg18[%c120, %c0_122] : memref<144x256xf32, #tpu.memory_space<vmem>>, vector<8x64xf32>
    tpu.vector_store %arg18[%c120, %c0_122], %179 {strides = array<i32>} : memref<144x256xf32, #tpu.memory_space<vmem>>, vector<8x64xf32>,
    %c0_123 = arith.constant 0 : index
    %c18_124 = arith.constant 18 : index
    %181 = vector.load %arg16[%c0_123, %c18_124] : memref<8x82xf32, #tpu.memory_space<vmem>>, vector<8x64xf32>
    %182 = vector.broadcast %59 : vector<1x64xf32> to vector<8x64xf32>
    %183 = arith.mulf %181, %182 : vector<8x64xf32>
    %c136 = arith.constant 136 : index
    %c0_125 = arith.constant 0 : index
    %184 = vector.load %arg18[%c136, %c0_125] : memref<144x256xf32, #tpu.memory_space<vmem>>, vector<8x64xf32>
    tpu.vector_store %arg18[%c136, %c0_125], %183 {strides = array<i32>} : memref<144x256xf32, #tpu.memory_space<vmem>>, vector<8x64xf32>,
    %c0_126 = arith.constant 0 : index
    %c0_127 = arith.constant 0 : index
    %185 = vector.load %arg18[%c0_126, %c0_127] : memref<144x256xf32, #tpu.memory_space<vmem>>, vector<144x64xf32>
    %cst_128 = arith.constant dense<0.000000e+00> : vector<8x64xf32>
    %186 = tpu.matmul %120, %185, %cst_128 {dimension_numbers = #tpu.dot_dimension_numbers<[1], [0], [0], [1], [0, 0, 1, 1], [], []>} : vector<8x144xf32>, vector<144x64xf32>, vector<8x64xf32> -> vector<8x64xf32>
    %187 = vector.broadcast %122 : vector<8x1xf32> to vector<8x64xf32>
    %188 = arith.addf %186, %187 : vector<8x64xf32>
    %cst_129 = arith.constant 0.000000e+00 : f32
    %189 = vector.broadcast %cst_129 : f32 to vector<8x64xf32>
    %190 = arith.maximumf %188, %189 : vector<8x64xf32>
    %c0_130 = arith.constant 0 : index
    %c0_131 = arith.constant 0 : index
    %191 = vector.load %arg11[%c0_130, %c0_131] : memref<64x256xf32, #tpu.memory_space<vmem>>, vector<64x256xf32>
    %cst_132 = arith.constant dense<0.000000e+00> : vector<8x256xf32>
    %192 = tpu.matmul %190, %191, %cst_132 {dimension_numbers = #tpu.dot_dimension_numbers<[1], [0], [0], [1], [0, 0, 1, 1], [], []>} : vector<8x64xf32>, vector<64x256xf32>, vector<8x256xf32> -> vector<8x256xf32>
    %c1_133 = arith.constant 1 : index
    %c0_134 = arith.constant 0 : index
    %c0_135 = arith.constant 0 : index
    %193 = vector.load %arg7[%c1_133, %c0_134, %c0_135] : memref<4x8x144xf32, #tpu.memory_space<vmem>>, vector<1x8x144xf32>
    %194 = vector.shape_cast %193 : vector<1x8x144xf32> to vector<8x144xf32>
    %c4 = arith.constant 4 : index
    %c0_136 = arith.constant 0 : index
    %c0_137 = arith.constant 0 : index
    %195 = vector.load %arg9[%c4, %c0_136, %c0_137] : memref<9x8x1xf32, #tpu.memory_space<vmem>>, vector<1x8x1xf32>
    %196 = vector.shape_cast %195 : vector<1x8x1xf32> to vector<8x1xf32>
    %c0_138 = arith.constant 0 : index
    %c17_139 = arith.constant 17 : index
    %197 = vector.load %arg15[%c0_138, %c17_139] : memref<8x290xf32, #tpu.memory_space<vmem>>, vector<8x256xf32>
    tpu.vector_store %arg15[%c0_138, %c17_139], %96 {strides = array<i32>} : memref<8x290xf32, #tpu.memory_space<vmem>>, vector<8x256xf32>,
    %c0_140 = arith.constant 0 : index
    %c0_141 = arith.constant 0 : index
    %198 = vector.load %arg15[%c0_140, %c0_141] : memref<8x290xf32, #tpu.memory_space<vmem>>, vector<8x256xf32>
    %199 = vector.broadcast %27 : vector<1x256xf32> to vector<8x256xf32>
    %200 = arith.mulf %198, %199 : vector<8x256xf32>
    %c0_142 = arith.constant 0 : index
    %c0_143 = arith.constant 0 : index
    %201 = vector.load %arg18[%c0_142, %c0_143] : memref<144x256xf32, #tpu.memory_space<vmem>>, vector<8x256xf32>
    tpu.vector_store %arg18[%c0_142, %c0_143], %200 {strides = array<i32>} : memref<144x256xf32, #tpu.memory_space<vmem>>, vector<8x256xf32>,
    %c0_144 = arith.constant 0 : index
    %c1_145 = arith.constant 1 : index
    %202 = vector.load %arg15[%c0_144, %c1_145] : memref<8x290xf32, #tpu.memory_space<vmem>>, vector<8x256xf32>
    %c16_146 = arith.constant 16 : index
    %c0_147 = arith.constant 0 : index
    %203 = vector.load %arg18[%c16_146, %c0_147] : memref<144x256xf32, #tpu.memory_space<vmem>>, vector<8x256xf32>
    tpu.vector_store %arg18[%c16_146, %c0_147], %202 {strides = array<i32>} : memref<144x256xf32, #tpu.memory_space<vmem>>, vector<8x256xf32>,
    %c0_148 = arith.constant 0 : index
    %c2_149 = arith.constant 2 : index
    %204 = vector.load %arg15[%c0_148, %c2_149] : memref<8x290xf32, #tpu.memory_space<vmem>>, vector<8x256xf32>
    %205 = vector.broadcast %32 : vector<1x256xf32> to vector<8x256xf32>
    %206 = arith.mulf %204, %205 : vector<8x256xf32>
    %c32_150 = arith.constant 32 : index
    %c0_151 = arith.constant 0 : index
    %207 = vector.load %arg18[%c32_150, %c0_151] : memref<144x256xf32, #tpu.memory_space<vmem>>, vector<8x256xf32>
    tpu.vector_store %arg18[%c32_150, %c0_151], %206 {strides = array<i32>} : memref<144x256xf32, #tpu.memory_space<vmem>>, vector<8x256xf32>,
    %c0_152 = arith.constant 0 : index
    %c16_153 = arith.constant 16 : index
    %208 = vector.load %arg15[%c0_152, %c16_153] : memref<8x290xf32, #tpu.memory_space<vmem>>, vector<8x256xf32>
    %209 = vector.broadcast %27 : vector<1x256xf32> to vector<8x256xf32>
    %210 = arith.mulf %208, %209 : vector<8x256xf32>
    %c48_154 = arith.constant 48 : index
    %c0_155 = arith.constant 0 : index
    %211 = vector.load %arg18[%c48_154, %c0_155] : memref<144x256xf32, #tpu.memory_space<vmem>>, vector<8x256xf32>
    tpu.vector_store %arg18[%c48_154, %c0_155], %210 {strides = array<i32>} : memref<144x256xf32, #tpu.memory_space<vmem>>, vector<8x256xf32>,
    %c0_156 = arith.constant 0 : index
    %c17_157 = arith.constant 17 : index
    %212 = vector.load %arg15[%c0_156, %c17_157] : memref<8x290xf32, #tpu.memory_space<vmem>>, vector<8x256xf32>
    %c64_158 = arith.constant 64 : index
    %c0_159 = arith.constant 0 : index
    %213 = vector.load %arg18[%c64_158, %c0_159] : memref<144x256xf32, #tpu.memory_space<vmem>>, vector<8x256xf32>
    tpu.vector_store %arg18[%c64_158, %c0_159], %212 {strides = array<i32>} : memref<144x256xf32, #tpu.memory_space<vmem>>, vector<8x256xf32>,
    %c0_160 = arith.constant 0 : index
    %c18_161 = arith.constant 18 : index
    %214 = vector.load %arg15[%c0_160, %c18_161] : memref<8x290xf32, #tpu.memory_space<vmem>>, vector<8x256xf32>
    %215 = vector.broadcast %32 : vector<1x256xf32> to vector<8x256xf32>
    %216 = arith.mulf %214, %215 : vector<8x256xf32>
    %c80_162 = arith.constant 80 : index
    %c0_163 = arith.constant 0 : index
    %217 = vector.load %arg18[%c80_162, %c0_163] : memref<144x256xf32, #tpu.memory_space<vmem>>, vector<8x256xf32>
    tpu.vector_store %arg18[%c80_162, %c0_163], %216 {strides = array<i32>} : memref<144x256xf32, #tpu.memory_space<vmem>>, vector<8x256xf32>,
    %c0_164 = arith.constant 0 : index
    %c32_165 = arith.constant 32 : index
    %218 = vector.load %arg15[%c0_164, %c32_165] : memref<8x290xf32, #tpu.memory_space<vmem>>, vector<8x256xf32>
    %219 = vector.broadcast %27 : vector<1x256xf32> to vector<8x256xf32>
    %220 = arith.mulf %218, %219 : vector<8x256xf32>
    %c96_166 = arith.constant 96 : index
    %c0_167 = arith.constant 0 : index
    %221 = vector.load %arg18[%c96_166, %c0_167] : memref<144x256xf32, #tpu.memory_space<vmem>>, vector<8x256xf32>
    tpu.vector_store %arg18[%c96_166, %c0_167], %220 {strides = array<i32>} : memref<144x256xf32, #tpu.memory_space<vmem>>, vector<8x256xf32>,
    %c0_168 = arith.constant 0 : index
    %c33 = arith.constant 33 : index
    %222 = vector.load %arg15[%c0_168, %c33] : memref<8x290xf32, #tpu.memory_space<vmem>>, vector<8x256xf32>
    %c112_169 = arith.constant 112 : index
    %c0_170 = arith.constant 0 : index
    %223 = vector.load %arg18[%c112_169, %c0_170] : memref<144x256xf32, #tpu.memory_space<vmem>>, vector<8x256xf32>
    tpu.vector_store %arg18[%c112_169, %c0_170], %222 {strides = array<i32>} : memref<144x256xf32, #tpu.memory_space<vmem>>, vector<8x256xf32>,
    %c0_171 = arith.constant 0 : index
    %c34 = arith.constant 34 : index
    %224 = vector.load %arg15[%c0_171, %c34] : memref<8x290xf32, #tpu.memory_space<vmem>>, vector<8x256xf32>
    %225 = vector.broadcast %32 : vector<1x256xf32> to vector<8x256xf32>
    %226 = arith.mulf %224, %225 : vector<8x256xf32>
    %c128_172 = arith.constant 128 : index
    %c0_173 = arith.constant 0 : index
    %227 = vector.load %arg18[%c128_172, %c0_173] : memref<144x256xf32, #tpu.memory_space<vmem>>, vector<8x256xf32>
    tpu.vector_store %arg18[%c128_172, %c0_173], %226 {strides = array<i32>} : memref<144x256xf32, #tpu.memory_space<vmem>>, vector<8x256xf32>,
    %c0_174 = arith.constant 0 : index
    %c17_175 = arith.constant 17 : index
    %228 = vector.load %arg15[%c0_174, %c17_175] : memref<8x290xf32, #tpu.memory_space<vmem>>, vector<8x256xf32>
    tpu.vector_store %arg15[%c0_174, %c17_175], %192 {strides = array<i32>} : memref<8x290xf32, #tpu.memory_space<vmem>>, vector<8x256xf32>,
    %c0_176 = arith.constant 0 : index
    %c0_177 = arith.constant 0 : index
    %229 = vector.load %arg15[%c0_176, %c0_177] : memref<8x290xf32, #tpu.memory_space<vmem>>, vector<8x256xf32>
    %230 = vector.broadcast %27 : vector<1x256xf32> to vector<8x256xf32>
    %231 = arith.mulf %229, %230 : vector<8x256xf32>
    %c8_178 = arith.constant 8 : index
    %c0_179 = arith.constant 0 : index
    %232 = vector.load %arg18[%c8_178, %c0_179] : memref<144x256xf32, #tpu.memory_space<vmem>>, vector<8x256xf32>
    tpu.vector_store %arg18[%c8_178, %c0_179], %231 {strides = array<i32>} : memref<144x256xf32, #tpu.memory_space<vmem>>, vector<8x256xf32>,
    %c0_180 = arith.constant 0 : index
    %c1_181 = arith.constant 1 : index
    %233 = vector.load %arg15[%c0_180, %c1_181] : memref<8x290xf32, #tpu.memory_space<vmem>>, vector<8x256xf32>
    %c24_182 = arith.constant 24 : index
    %c0_183 = arith.constant 0 : index
    %234 = vector.load %arg18[%c24_182, %c0_183] : memref<144x256xf32, #tpu.memory_space<vmem>>, vector<8x256xf32>
    tpu.vector_store %arg18[%c24_182, %c0_183], %233 {strides = array<i32>} : memref<144x256xf32, #tpu.memory_space<vmem>>, vector<8x256xf32>,
    %c0_184 = arith.constant 0 : index
    %c2_185 = arith.constant 2 : index
    %235 = vector.load %arg15[%c0_184, %c2_185] : memref<8x290xf32, #tpu.memory_space<vmem>>, vector<8x256xf32>
    %236 = vector.broadcast %32 : vector<1x256xf32> to vector<8x256xf32>
    %237 = arith.mulf %235, %236 : vector<8x256xf32>
    %c40_186 = arith.constant 40 : index
    %c0_187 = arith.constant 0 : index
    %238 = vector.load %arg18[%c40_186, %c0_187] : memref<144x256xf32, #tpu.memory_space<vmem>>, vector<8x256xf32>
    tpu.vector_store %arg18[%c40_186, %c0_187], %237 {strides = array<i32>} : memref<144x256xf32, #tpu.memory_space<vmem>>, vector<8x256xf32>,
    %c0_188 = arith.constant 0 : index
    %c16_189 = arith.constant 16 : index
    %239 = vector.load %arg15[%c0_188, %c16_189] : memref<8x290xf32, #tpu.memory_space<vmem>>, vector<8x256xf32>
    %240 = vector.broadcast %27 : vector<1x256xf32> to vector<8x256xf32>
    %241 = arith.mulf %239, %240 : vector<8x256xf32>
    %c56_190 = arith.constant 56 : index
    %c0_191 = arith.constant 0 : index
    %242 = vector.load %arg18[%c56_190, %c0_191] : memref<144x256xf32, #tpu.memory_space<vmem>>, vector<8x256xf32>
    tpu.vector_store %arg18[%c56_190, %c0_191], %241 {strides = array<i32>} : memref<144x256xf32, #tpu.memory_space<vmem>>, vector<8x256xf32>,
    %c0_192 = arith.constant 0 : index
    %c17_193 = arith.constant 17 : index
    %243 = vector.load %arg15[%c0_192, %c17_193] : memref<8x290xf32, #tpu.memory_space<vmem>>, vector<8x256xf32>
    %c72_194 = arith.constant 72 : index
    %c0_195 = arith.constant 0 : index
    %244 = vector.load %arg18[%c72_194, %c0_195] : memref<144x256xf32, #tpu.memory_space<vmem>>, vector<8x256xf32>
    tpu.vector_store %arg18[%c72_194, %c0_195], %243 {strides = array<i32>} : memref<144x256xf32, #tpu.memory_space<vmem>>, vector<8x256xf32>,
    %c0_196 = arith.constant 0 : index
    %c18_197 = arith.constant 18 : index
    %245 = vector.load %arg15[%c0_196, %c18_197] : memref<8x290xf32, #tpu.memory_space<vmem>>, vector<8x256xf32>
    %246 = vector.broadcast %32 : vector<1x256xf32> to vector<8x256xf32>
    %247 = arith.mulf %245, %246 : vector<8x256xf32>
    %c88_198 = arith.constant 88 : index
    %c0_199 = arith.constant 0 : index
    %248 = vector.load %arg18[%c88_198, %c0_199] : memref<144x256xf32, #tpu.memory_space<vmem>>, vector<8x256xf32>
    tpu.vector_store %arg18[%c88_198, %c0_199], %247 {strides = array<i32>} : memref<144x256xf32, #tpu.memory_space<vmem>>, vector<8x256xf32>,
    %c0_200 = arith.constant 0 : index
    %c32_201 = arith.constant 32 : index
    %249 = vector.load %arg15[%c0_200, %c32_201] : memref<8x290xf32, #tpu.memory_space<vmem>>, vector<8x256xf32>
    %250 = vector.broadcast %27 : vector<1x256xf32> to vector<8x256xf32>
    %251 = arith.mulf %249, %250 : vector<8x256xf32>
    %c104_202 = arith.constant 104 : index
    %c0_203 = arith.constant 0 : index
    %252 = vector.load %arg18[%c104_202, %c0_203] : memref<144x256xf32, #tpu.memory_space<vmem>>, vector<8x256xf32>
    tpu.vector_store %arg18[%c104_202, %c0_203], %251 {strides = array<i32>} : memref<144x256xf32, #tpu.memory_space<vmem>>, vector<8x256xf32>,
    %c0_204 = arith.constant 0 : index
    %c33_205 = arith.constant 33 : index
    %253 = vector.load %arg15[%c0_204, %c33_205] : memref<8x290xf32, #tpu.memory_space<vmem>>, vector<8x256xf32>
    %c120_206 = arith.constant 120 : index
    %c0_207 = arith.constant 0 : index
    %254 = vector.load %arg18[%c120_206, %c0_207] : memref<144x256xf32, #tpu.memory_space<vmem>>, vector<8x256xf32>
    tpu.vector_store %arg18[%c120_206, %c0_207], %253 {strides = array<i32>} : memref<144x256xf32, #tpu.memory_space<vmem>>, vector<8x256xf32>,
    %c0_208 = arith.constant 0 : index
    %c34_209 = arith.constant 34 : index
    %255 = vector.load %arg15[%c0_208, %c34_209] : memref<8x290xf32, #tpu.memory_space<vmem>>, vector<8x256xf32>
    %256 = vector.broadcast %32 : vector<1x256xf32> to vector<8x256xf32>
    %257 = arith.mulf %255, %256 : vector<8x256xf32>
    %c136_210 = arith.constant 136 : index
    %c0_211 = arith.constant 0 : index
    %258 = vector.load %arg18[%c136_210, %c0_211] : memref<144x256xf32, #tpu.memory_space<vmem>>, vector<8x256xf32>
    tpu.vector_store %arg18[%c136_210, %c0_211], %257 {strides = array<i32>} : memref<144x256xf32, #tpu.memory_space<vmem>>, vector<8x256xf32>,
    %c0_212 = arith.constant 0 : index
    %c0_213 = arith.constant 0 : index
    %259 = vector.load %arg18[%c0_212, %c0_213] : memref<144x256xf32, #tpu.memory_space<vmem>>, vector<144x256xf32>
    %cst_214 = arith.constant dense<0.000000e+00> : vector<8x256xf32>
    %260 = tpu.matmul %194, %259, %cst_214 {dimension_numbers = #tpu.dot_dimension_numbers<[1], [0], [0], [1], [0, 0, 1, 1], [], []>} : vector<8x144xf32>, vector<144x256xf32>, vector<8x256xf32> -> vector<8x256xf32>
    %261 = vector.broadcast %196 : vector<8x1xf32> to vector<8x256xf32>
    %262 = arith.addf %260, %261 : vector<8x256xf32>
    %cst_215 = arith.constant 0.000000e+00 : f32
    %263 = vector.broadcast %cst_215 : f32 to vector<8x256xf32>
    %264 = arith.maximumf %262, %263 : vector<8x256xf32>
    %c0_216 = arith.constant 0 : index
    %c0_217 = arith.constant 0 : index
    %c0_218 = arith.constant 0 : index
    %265 = vector.load %arg8[%c0_216, %c0_217, %c0_218] : memref<2x8x72xf32, #tpu.memory_space<vmem>>, vector<1x8x72xf32>
    %266 = vector.shape_cast %265 : vector<1x8x72xf32> to vector<8x72xf32>
    %c0_219 = arith.constant 0 : index
    %c17_220 = arith.constant 17 : index
    %267 = vector.load %arg15[%c0_219, %c17_220] : memref<8x290xf32, #tpu.memory_space<vmem>>, vector<8x256xf32>
    tpu.vector_store %arg15[%c0_219, %c17_220], %264 {strides = array<i32>} : memref<8x290xf32, #tpu.memory_space<vmem>>, vector<8x256xf32>,
    %c0_221 = arith.constant 0 : index
    %c0_222 = arith.constant 0 : index
    %268 = vector.load %arg15[%c0_221, %c0_222] : memref<8x290xf32, #tpu.memory_space<vmem>>, vector<8x256xf32>
    %269 = vector.broadcast %27 : vector<1x256xf32> to vector<8x256xf32>
    %270 = arith.mulf %268, %269 : vector<8x256xf32>
    %c0_223 = arith.constant 0 : index
    %c0_224 = arith.constant 0 : index
    %271 = vector.load %arg18[%c0_223, %c0_224] : memref<144x256xf32, #tpu.memory_space<vmem>>, vector<8x256xf32>
    tpu.vector_store %arg18[%c0_223, %c0_224], %270 {strides = array<i32>} : memref<144x256xf32, #tpu.memory_space<vmem>>, vector<8x256xf32>,
    %c0_225 = arith.constant 0 : index
    %c1_226 = arith.constant 1 : index
    %272 = vector.load %arg15[%c0_225, %c1_226] : memref<8x290xf32, #tpu.memory_space<vmem>>, vector<8x256xf32>
    %c8_227 = arith.constant 8 : index
    %c0_228 = arith.constant 0 : index
    %273 = vector.load %arg18[%c8_227, %c0_228] : memref<144x256xf32, #tpu.memory_space<vmem>>, vector<8x256xf32>
    tpu.vector_store %arg18[%c8_227, %c0_228], %272 {strides = array<i32>} : memref<144x256xf32, #tpu.memory_space<vmem>>, vector<8x256xf32>,
    %c0_229 = arith.constant 0 : index
    %c2_230 = arith.constant 2 : index
    %274 = vector.load %arg15[%c0_229, %c2_230] : memref<8x290xf32, #tpu.memory_space<vmem>>, vector<8x256xf32>
    %275 = vector.broadcast %32 : vector<1x256xf32> to vector<8x256xf32>
    %276 = arith.mulf %274, %275 : vector<8x256xf32>
    %c16_231 = arith.constant 16 : index
    %c0_232 = arith.constant 0 : index
    %277 = vector.load %arg18[%c16_231, %c0_232] : memref<144x256xf32, #tpu.memory_space<vmem>>, vector<8x256xf32>
    tpu.vector_store %arg18[%c16_231, %c0_232], %276 {strides = array<i32>} : memref<144x256xf32, #tpu.memory_space<vmem>>, vector<8x256xf32>,
    %c0_233 = arith.constant 0 : index
    %c16_234 = arith.constant 16 : index
    %278 = vector.load %arg15[%c0_233, %c16_234] : memref<8x290xf32, #tpu.memory_space<vmem>>, vector<8x256xf32>
    %279 = vector.broadcast %27 : vector<1x256xf32> to vector<8x256xf32>
    %280 = arith.mulf %278, %279 : vector<8x256xf32>
    %c24_235 = arith.constant 24 : index
    %c0_236 = arith.constant 0 : index
    %281 = vector.load %arg18[%c24_235, %c0_236] : memref<144x256xf32, #tpu.memory_space<vmem>>, vector<8x256xf32>
    tpu.vector_store %arg18[%c24_235, %c0_236], %280 {strides = array<i32>} : memref<144x256xf32, #tpu.memory_space<vmem>>, vector<8x256xf32>,
    %c0_237 = arith.constant 0 : index
    %c17_238 = arith.constant 17 : index
    %282 = vector.load %arg15[%c0_237, %c17_238] : memref<8x290xf32, #tpu.memory_space<vmem>>, vector<8x256xf32>
    %c32_239 = arith.constant 32 : index
    %c0_240 = arith.constant 0 : index
    %283 = vector.load %arg18[%c32_239, %c0_240] : memref<144x256xf32, #tpu.memory_space<vmem>>, vector<8x256xf32>
    tpu.vector_store %arg18[%c32_239, %c0_240], %282 {strides = array<i32>} : memref<144x256xf32, #tpu.memory_space<vmem>>, vector<8x256xf32>,
    %c0_241 = arith.constant 0 : index
    %c18_242 = arith.constant 18 : index
    %284 = vector.load %arg15[%c0_241, %c18_242] : memref<8x290xf32, #tpu.memory_space<vmem>>, vector<8x256xf32>
    %285 = vector.broadcast %32 : vector<1x256xf32> to vector<8x256xf32>
    %286 = arith.mulf %284, %285 : vector<8x256xf32>
    %c40_243 = arith.constant 40 : index
    %c0_244 = arith.constant 0 : index
    %287 = vector.load %arg18[%c40_243, %c0_244] : memref<144x256xf32, #tpu.memory_space<vmem>>, vector<8x256xf32>
    tpu.vector_store %arg18[%c40_243, %c0_244], %286 {strides = array<i32>} : memref<144x256xf32, #tpu.memory_space<vmem>>, vector<8x256xf32>,
    %c0_245 = arith.constant 0 : index
    %c32_246 = arith.constant 32 : index
    %288 = vector.load %arg15[%c0_245, %c32_246] : memref<8x290xf32, #tpu.memory_space<vmem>>, vector<8x256xf32>
    %289 = vector.broadcast %27 : vector<1x256xf32> to vector<8x256xf32>
    %290 = arith.mulf %288, %289 : vector<8x256xf32>
    %c48_247 = arith.constant 48 : index
    %c0_248 = arith.constant 0 : index
    %291 = vector.load %arg18[%c48_247, %c0_248] : memref<144x256xf32, #tpu.memory_space<vmem>>, vector<8x256xf32>
    tpu.vector_store %arg18[%c48_247, %c0_248], %290 {strides = array<i32>} : memref<144x256xf32, #tpu.memory_space<vmem>>, vector<8x256xf32>,
    %c0_249 = arith.constant 0 : index
    %c33_250 = arith.constant 33 : index
    %292 = vector.load %arg15[%c0_249, %c33_250] : memref<8x290xf32, #tpu.memory_space<vmem>>, vector<8x256xf32>
    %c56_251 = arith.constant 56 : index
    %c0_252 = arith.constant 0 : index
    %293 = vector.load %arg18[%c56_251, %c0_252] : memref<144x256xf32, #tpu.memory_space<vmem>>, vector<8x256xf32>
    tpu.vector_store %arg18[%c56_251, %c0_252], %292 {strides = array<i32>} : memref<144x256xf32, #tpu.memory_space<vmem>>, vector<8x256xf32>,
    %c0_253 = arith.constant 0 : index
    %c34_254 = arith.constant 34 : index
    %294 = vector.load %arg15[%c0_253, %c34_254] : memref<8x290xf32, #tpu.memory_space<vmem>>, vector<8x256xf32>
    %295 = vector.broadcast %32 : vector<1x256xf32> to vector<8x256xf32>
    %296 = arith.mulf %294, %295 : vector<8x256xf32>
    %c64_255 = arith.constant 64 : index
    %c0_256 = arith.constant 0 : index
    %297 = vector.load %arg18[%c64_255, %c0_256] : memref<144x256xf32, #tpu.memory_space<vmem>>, vector<8x256xf32>
    tpu.vector_store %arg18[%c64_255, %c0_256], %296 {strides = array<i32>} : memref<144x256xf32, #tpu.memory_space<vmem>>, vector<8x256xf32>,
    %c0_257 = arith.constant 0 : index
    %c0_258 = arith.constant 0 : index
    %298 = vector.load %arg18[%c0_257, %c0_258] : memref<144x256xf32, #tpu.memory_space<vmem>>, vector<72x256xf32>
    %cst_259 = arith.constant dense<0.000000e+00> : vector<8x256xf32>
    %299 = tpu.matmul %266, %298, %cst_259 {dimension_numbers = #tpu.dot_dimension_numbers<[1], [0], [0], [1], [0, 0, 1, 1], [], []>} : vector<8x72xf32>, vector<72x256xf32>, vector<8x256xf32> -> vector<8x256xf32>
    %c0_260 = arith.constant 0 : index
    %c0_261 = arith.constant 0 : index
    %300 = vector.load %arg12[%c0_260, %c0_261] : memref<256x64xf32, #tpu.memory_space<vmem>>, vector<256x64xf32>
    %cst_262 = arith.constant dense<0.000000e+00> : vector<8x64xf32>
    %301 = tpu.matmul %299, %300, %cst_262 {dimension_numbers = #tpu.dot_dimension_numbers<[1], [0], [0], [1], [0, 0, 1, 1], [], []>} : vector<8x256xf32>, vector<256x64xf32>, vector<8x64xf32> -> vector<8x64xf32>
    %c5 = arith.constant 5 : index
    %c0_263 = arith.constant 0 : index
    %c0_264 = arith.constant 0 : index
    %302 = vector.load %arg9[%c5, %c0_263, %c0_264] : memref<9x8x1xf32, #tpu.memory_space<vmem>>, vector<1x8x1xf32>
    %303 = vector.shape_cast %302 : vector<1x8x1xf32> to vector<8x1xf32>
    %304 = vector.broadcast %303 : vector<8x1xf32> to vector<8x64xf32>
    %305 = arith.addf %301, %304 : vector<8x64xf32>
    %cst_265 = arith.constant 0.000000e+00 : f32
    %306 = vector.broadcast %cst_265 : f32 to vector<8x64xf32>
    %307 = arith.maximumf %305, %306 : vector<8x64xf32>
    %c2_266 = arith.constant 2 : index
    %c0_267 = arith.constant 0 : index
    %c0_268 = arith.constant 0 : index
    %308 = vector.load %arg7[%c2_266, %c0_267, %c0_268] : memref<4x8x144xf32, #tpu.memory_space<vmem>>, vector<1x8x144xf32>
    %309 = vector.shape_cast %308 : vector<1x8x144xf32> to vector<8x144xf32>
    %c6 = arith.constant 6 : index
    %c0_269 = arith.constant 0 : index
    %c0_270 = arith.constant 0 : index
    %310 = vector.load %arg9[%c6, %c0_269, %c0_270] : memref<9x8x1xf32, #tpu.memory_space<vmem>>, vector<1x8x1xf32>
    %311 = vector.shape_cast %310 : vector<1x8x1xf32> to vector<8x1xf32>
    %c0_271 = arith.constant 0 : index
    %c9_272 = arith.constant 9 : index
    %312 = vector.load %arg16[%c0_271, %c9_272] : memref<8x82xf32, #tpu.memory_space<vmem>>, vector<8x64xf32>
    tpu.vector_store %arg16[%c0_271, %c9_272], %307 {strides = array<i32>} : memref<8x82xf32, #tpu.memory_space<vmem>>, vector<8x64xf32>,
    %c0_273 = arith.constant 0 : index
    %c0_274 = arith.constant 0 : index
    %313 = vector.load %arg16[%c0_273, %c0_274] : memref<8x82xf32, #tpu.memory_space<vmem>>, vector<8x64xf32>
    %314 = vector.broadcast %54 : vector<1x64xf32> to vector<8x64xf32>
    %315 = arith.mulf %313, %314 : vector<8x64xf32>
    %c0_275 = arith.constant 0 : index
    %c0_276 = arith.constant 0 : index
    %316 = vector.load %arg18[%c0_275, %c0_276] : memref<144x256xf32, #tpu.memory_space<vmem>>, vector<8x64xf32>
    tpu.vector_store %arg18[%c0_275, %c0_276], %315 {strides = array<i32>} : memref<144x256xf32, #tpu.memory_space<vmem>>, vector<8x64xf32>,
    %c0_277 = arith.constant 0 : index
    %c1_278 = arith.constant 1 : index
    %317 = vector.load %arg16[%c0_277, %c1_278] : memref<8x82xf32, #tpu.memory_space<vmem>>, vector<8x64xf32>
    %c16_279 = arith.constant 16 : index
    %c0_280 = arith.constant 0 : index
    %318 = vector.load %arg18[%c16_279, %c0_280] : memref<144x256xf32, #tpu.memory_space<vmem>>, vector<8x64xf32>
    tpu.vector_store %arg18[%c16_279, %c0_280], %317 {strides = array<i32>} : memref<144x256xf32, #tpu.memory_space<vmem>>, vector<8x64xf32>,
    %c0_281 = arith.constant 0 : index
    %c2_282 = arith.constant 2 : index
    %319 = vector.load %arg16[%c0_281, %c2_282] : memref<8x82xf32, #tpu.memory_space<vmem>>, vector<8x64xf32>
    %320 = vector.broadcast %59 : vector<1x64xf32> to vector<8x64xf32>
    %321 = arith.mulf %319, %320 : vector<8x64xf32>
    %c32_283 = arith.constant 32 : index
    %c0_284 = arith.constant 0 : index
    %322 = vector.load %arg18[%c32_283, %c0_284] : memref<144x256xf32, #tpu.memory_space<vmem>>, vector<8x64xf32>
    tpu.vector_store %arg18[%c32_283, %c0_284], %321 {strides = array<i32>} : memref<144x256xf32, #tpu.memory_space<vmem>>, vector<8x64xf32>,
    %c0_285 = arith.constant 0 : index
    %c8_286 = arith.constant 8 : index
    %323 = vector.load %arg16[%c0_285, %c8_286] : memref<8x82xf32, #tpu.memory_space<vmem>>, vector<8x64xf32>
    %324 = vector.broadcast %54 : vector<1x64xf32> to vector<8x64xf32>
    %325 = arith.mulf %323, %324 : vector<8x64xf32>
    %c48_287 = arith.constant 48 : index
    %c0_288 = arith.constant 0 : index
    %326 = vector.load %arg18[%c48_287, %c0_288] : memref<144x256xf32, #tpu.memory_space<vmem>>, vector<8x64xf32>
    tpu.vector_store %arg18[%c48_287, %c0_288], %325 {strides = array<i32>} : memref<144x256xf32, #tpu.memory_space<vmem>>, vector<8x64xf32>,
    %c0_289 = arith.constant 0 : index
    %c9_290 = arith.constant 9 : index
    %327 = vector.load %arg16[%c0_289, %c9_290] : memref<8x82xf32, #tpu.memory_space<vmem>>, vector<8x64xf32>
    %c64_291 = arith.constant 64 : index
    %c0_292 = arith.constant 0 : index
    %328 = vector.load %arg18[%c64_291, %c0_292] : memref<144x256xf32, #tpu.memory_space<vmem>>, vector<8x64xf32>
    tpu.vector_store %arg18[%c64_291, %c0_292], %327 {strides = array<i32>} : memref<144x256xf32, #tpu.memory_space<vmem>>, vector<8x64xf32>,
    %c0_293 = arith.constant 0 : index
    %c10_294 = arith.constant 10 : index
    %329 = vector.load %arg16[%c0_293, %c10_294] : memref<8x82xf32, #tpu.memory_space<vmem>>, vector<8x64xf32>
    %330 = vector.broadcast %59 : vector<1x64xf32> to vector<8x64xf32>
    %331 = arith.mulf %329, %330 : vector<8x64xf32>
    %c80_295 = arith.constant 80 : index
    %c0_296 = arith.constant 0 : index
    %332 = vector.load %arg18[%c80_295, %c0_296] : memref<144x256xf32, #tpu.memory_space<vmem>>, vector<8x64xf32>
    tpu.vector_store %arg18[%c80_295, %c0_296], %331 {strides = array<i32>} : memref<144x256xf32, #tpu.memory_space<vmem>>, vector<8x64xf32>,
    %c0_297 = arith.constant 0 : index
    %c16_298 = arith.constant 16 : index
    %333 = vector.load %arg16[%c0_297, %c16_298] : memref<8x82xf32, #tpu.memory_space<vmem>>, vector<8x64xf32>
    %334 = vector.broadcast %54 : vector<1x64xf32> to vector<8x64xf32>
    %335 = arith.mulf %333, %334 : vector<8x64xf32>
    %c96_299 = arith.constant 96 : index
    %c0_300 = arith.constant 0 : index
    %336 = vector.load %arg18[%c96_299, %c0_300] : memref<144x256xf32, #tpu.memory_space<vmem>>, vector<8x64xf32>
    tpu.vector_store %arg18[%c96_299, %c0_300], %335 {strides = array<i32>} : memref<144x256xf32, #tpu.memory_space<vmem>>, vector<8x64xf32>,
    %c0_301 = arith.constant 0 : index
    %c17_302 = arith.constant 17 : index
    %337 = vector.load %arg16[%c0_301, %c17_302] : memref<8x82xf32, #tpu.memory_space<vmem>>, vector<8x64xf32>
    %c112_303 = arith.constant 112 : index
    %c0_304 = arith.constant 0 : index
    %338 = vector.load %arg18[%c112_303, %c0_304] : memref<144x256xf32, #tpu.memory_space<vmem>>, vector<8x64xf32>
    tpu.vector_store %arg18[%c112_303, %c0_304], %337 {strides = array<i32>} : memref<144x256xf32, #tpu.memory_space<vmem>>, vector<8x64xf32>,
    %c0_305 = arith.constant 0 : index
    %c18_306 = arith.constant 18 : index
    %339 = vector.load %arg16[%c0_305, %c18_306] : memref<8x82xf32, #tpu.memory_space<vmem>>, vector<8x64xf32>
    %340 = vector.broadcast %59 : vector<1x64xf32> to vector<8x64xf32>
    %341 = arith.mulf %339, %340 : vector<8x64xf32>
    %c128_307 = arith.constant 128 : index
    %c0_308 = arith.constant 0 : index
    %342 = vector.load %arg18[%c128_307, %c0_308] : memref<144x256xf32, #tpu.memory_space<vmem>>, vector<8x64xf32>
    tpu.vector_store %arg18[%c128_307, %c0_308], %341 {strides = array<i32>} : memref<144x256xf32, #tpu.memory_space<vmem>>, vector<8x64xf32>,
    %c0_309 = arith.constant 0 : index
    %c9_310 = arith.constant 9 : index
    %343 = vector.load %arg16[%c0_309, %c9_310] : memref<8x82xf32, #tpu.memory_space<vmem>>, vector<8x64xf32>
    tpu.vector_store %arg16[%c0_309, %c9_310], %190 {strides = array<i32>} : memref<8x82xf32, #tpu.memory_space<vmem>>, vector<8x64xf32>,
    %c0_311 = arith.constant 0 : index
    %c0_312 = arith.constant 0 : index
    %344 = vector.load %arg16[%c0_311, %c0_312] : memref<8x82xf32, #tpu.memory_space<vmem>>, vector<8x64xf32>
    %345 = vector.broadcast %54 : vector<1x64xf32> to vector<8x64xf32>
    %346 = arith.mulf %344, %345 : vector<8x64xf32>
    %c8_313 = arith.constant 8 : index
    %c0_314 = arith.constant 0 : index
    %347 = vector.load %arg18[%c8_313, %c0_314] : memref<144x256xf32, #tpu.memory_space<vmem>>, vector<8x64xf32>
    tpu.vector_store %arg18[%c8_313, %c0_314], %346 {strides = array<i32>} : memref<144x256xf32, #tpu.memory_space<vmem>>, vector<8x64xf32>,
    %c0_315 = arith.constant 0 : index
    %c1_316 = arith.constant 1 : index
    %348 = vector.load %arg16[%c0_315, %c1_316] : memref<8x82xf32, #tpu.memory_space<vmem>>, vector<8x64xf32>
    %c24_317 = arith.constant 24 : index
    %c0_318 = arith.constant 0 : index
    %349 = vector.load %arg18[%c24_317, %c0_318] : memref<144x256xf32, #tpu.memory_space<vmem>>, vector<8x64xf32>
    tpu.vector_store %arg18[%c24_317, %c0_318], %348 {strides = array<i32>} : memref<144x256xf32, #tpu.memory_space<vmem>>, vector<8x64xf32>,
    %c0_319 = arith.constant 0 : index
    %c2_320 = arith.constant 2 : index
    %350 = vector.load %arg16[%c0_319, %c2_320] : memref<8x82xf32, #tpu.memory_space<vmem>>, vector<8x64xf32>
    %351 = vector.broadcast %59 : vector<1x64xf32> to vector<8x64xf32>
    %352 = arith.mulf %350, %351 : vector<8x64xf32>
    %c40_321 = arith.constant 40 : index
    %c0_322 = arith.constant 0 : index
    %353 = vector.load %arg18[%c40_321, %c0_322] : memref<144x256xf32, #tpu.memory_space<vmem>>, vector<8x64xf32>
    tpu.vector_store %arg18[%c40_321, %c0_322], %352 {strides = array<i32>} : memref<144x256xf32, #tpu.memory_space<vmem>>, vector<8x64xf32>,
    %c0_323 = arith.constant 0 : index
    %c8_324 = arith.constant 8 : index
    %354 = vector.load %arg16[%c0_323, %c8_324] : memref<8x82xf32, #tpu.memory_space<vmem>>, vector<8x64xf32>
    %355 = vector.broadcast %54 : vector<1x64xf32> to vector<8x64xf32>
    %356 = arith.mulf %354, %355 : vector<8x64xf32>
    %c56_325 = arith.constant 56 : index
    %c0_326 = arith.constant 0 : index
    %357 = vector.load %arg18[%c56_325, %c0_326] : memref<144x256xf32, #tpu.memory_space<vmem>>, vector<8x64xf32>
    tpu.vector_store %arg18[%c56_325, %c0_326], %356 {strides = array<i32>} : memref<144x256xf32, #tpu.memory_space<vmem>>, vector<8x64xf32>,
    %c0_327 = arith.constant 0 : index
    %c9_328 = arith.constant 9 : index
    %358 = vector.load %arg16[%c0_327, %c9_328] : memref<8x82xf32, #tpu.memory_space<vmem>>, vector<8x64xf32>
    %c72_329 = arith.constant 72 : index
    %c0_330 = arith.constant 0 : index
    %359 = vector.load %arg18[%c72_329, %c0_330] : memref<144x256xf32, #tpu.memory_space<vmem>>, vector<8x64xf32>
    tpu.vector_store %arg18[%c72_329, %c0_330], %358 {strides = array<i32>} : memref<144x256xf32, #tpu.memory_space<vmem>>, vector<8x64xf32>,
    %c0_331 = arith.constant 0 : index
    %c10_332 = arith.constant 10 : index
    %360 = vector.load %arg16[%c0_331, %c10_332] : memref<8x82xf32, #tpu.memory_space<vmem>>, vector<8x64xf32>
    %361 = vector.broadcast %59 : vector<1x64xf32> to vector<8x64xf32>
    %362 = arith.mulf %360, %361 : vector<8x64xf32>
    %c88_333 = arith.constant 88 : index
    %c0_334 = arith.constant 0 : index
    %363 = vector.load %arg18[%c88_333, %c0_334] : memref<144x256xf32, #tpu.memory_space<vmem>>, vector<8x64xf32>
    tpu.vector_store %arg18[%c88_333, %c0_334], %362 {strides = array<i32>} : memref<144x256xf32, #tpu.memory_space<vmem>>, vector<8x64xf32>,
    %c0_335 = arith.constant 0 : index
    %c16_336 = arith.constant 16 : index
    %364 = vector.load %arg16[%c0_335, %c16_336] : memref<8x82xf32, #tpu.memory_space<vmem>>, vector<8x64xf32>
    %365 = vector.broadcast %54 : vector<1x64xf32> to vector<8x64xf32>
    %366 = arith.mulf %364, %365 : vector<8x64xf32>
    %c104_337 = arith.constant 104 : index
    %c0_338 = arith.constant 0 : index
    %367 = vector.load %arg18[%c104_337, %c0_338] : memref<144x256xf32, #tpu.memory_space<vmem>>, vector<8x64xf32>
    tpu.vector_store %arg18[%c104_337, %c0_338], %366 {strides = array<i32>} : memref<144x256xf32, #tpu.memory_space<vmem>>, vector<8x64xf32>,
    %c0_339 = arith.constant 0 : index
    %c17_340 = arith.constant 17 : index
    %368 = vector.load %arg16[%c0_339, %c17_340] : memref<8x82xf32, #tpu.memory_space<vmem>>, vector<8x64xf32>
    %c120_341 = arith.constant 120 : index
    %c0_342 = arith.constant 0 : index
    %369 = vector.load %arg18[%c120_341, %c0_342] : memref<144x256xf32, #tpu.memory_space<vmem>>, vector<8x64xf32>
    tpu.vector_store %arg18[%c120_341, %c0_342], %368 {strides = array<i32>} : memref<144x256xf32, #tpu.memory_space<vmem>>, vector<8x64xf32>,
    %c0_343 = arith.constant 0 : index
    %c18_344 = arith.constant 18 : index
    %370 = vector.load %arg16[%c0_343, %c18_344] : memref<8x82xf32, #tpu.memory_space<vmem>>, vector<8x64xf32>
    %371 = vector.broadcast %59 : vector<1x64xf32> to vector<8x64xf32>
    %372 = arith.mulf %370, %371 : vector<8x64xf32>
    %c136_345 = arith.constant 136 : index
    %c0_346 = arith.constant 0 : index
    %373 = vector.load %arg18[%c136_345, %c0_346] : memref<144x256xf32, #tpu.memory_space<vmem>>, vector<8x64xf32>
    tpu.vector_store %arg18[%c136_345, %c0_346], %372 {strides = array<i32>} : memref<144x256xf32, #tpu.memory_space<vmem>>, vector<8x64xf32>,
    %c0_347 = arith.constant 0 : index
    %c0_348 = arith.constant 0 : index
    %374 = vector.load %arg18[%c0_347, %c0_348] : memref<144x256xf32, #tpu.memory_space<vmem>>, vector<144x64xf32>
    %cst_349 = arith.constant dense<0.000000e+00> : vector<8x64xf32>
    %375 = tpu.matmul %309, %374, %cst_349 {dimension_numbers = #tpu.dot_dimension_numbers<[1], [0], [0], [1], [0, 0, 1, 1], [], []>} : vector<8x144xf32>, vector<144x64xf32>, vector<8x64xf32> -> vector<8x64xf32>
    %376 = vector.broadcast %311 : vector<8x1xf32> to vector<8x64xf32>
    %377 = arith.addf %375, %376 : vector<8x64xf32>
    %cst_350 = arith.constant 0.000000e+00 : f32
    %378 = vector.broadcast %cst_350 : f32 to vector<8x64xf32>
    %379 = arith.maximumf %377, %378 : vector<8x64xf32>
    %c1_351 = arith.constant 1 : index
    %c0_352 = arith.constant 0 : index
    %c0_353 = arith.constant 0 : index
    %380 = vector.load %arg8[%c1_351, %c0_352, %c0_353] : memref<2x8x72xf32, #tpu.memory_space<vmem>>, vector<1x8x72xf32>
    %381 = vector.shape_cast %380 : vector<1x8x72xf32> to vector<8x72xf32>
    %c0_354 = arith.constant 0 : index
    %c9_355 = arith.constant 9 : index
    %382 = vector.load %arg16[%c0_354, %c9_355] : memref<8x82xf32, #tpu.memory_space<vmem>>, vector<8x64xf32>
    tpu.vector_store %arg16[%c0_354, %c9_355], %379 {strides = array<i32>} : memref<8x82xf32, #tpu.memory_space<vmem>>, vector<8x64xf32>,
    %c0_356 = arith.constant 0 : index
    %c0_357 = arith.constant 0 : index
    %383 = vector.load %arg16[%c0_356, %c0_357] : memref<8x82xf32, #tpu.memory_space<vmem>>, vector<8x64xf32>
    %384 = vector.broadcast %54 : vector<1x64xf32> to vector<8x64xf32>
    %385 = arith.mulf %383, %384 : vector<8x64xf32>
    %c0_358 = arith.constant 0 : index
    %c0_359 = arith.constant 0 : index
    %386 = vector.load %arg18[%c0_358, %c0_359] : memref<144x256xf32, #tpu.memory_space<vmem>>, vector<8x64xf32>
    tpu.vector_store %arg18[%c0_358, %c0_359], %385 {strides = array<i32>} : memref<144x256xf32, #tpu.memory_space<vmem>>, vector<8x64xf32>,
    %c0_360 = arith.constant 0 : index
    %c1_361 = arith.constant 1 : index
    %387 = vector.load %arg16[%c0_360, %c1_361] : memref<8x82xf32, #tpu.memory_space<vmem>>, vector<8x64xf32>
    %c8_362 = arith.constant 8 : index
    %c0_363 = arith.constant 0 : index
    %388 = vector.load %arg18[%c8_362, %c0_363] : memref<144x256xf32, #tpu.memory_space<vmem>>, vector<8x64xf32>
    tpu.vector_store %arg18[%c8_362, %c0_363], %387 {strides = array<i32>} : memref<144x256xf32, #tpu.memory_space<vmem>>, vector<8x64xf32>,
    %c0_364 = arith.constant 0 : index
    %c2_365 = arith.constant 2 : index
    %389 = vector.load %arg16[%c0_364, %c2_365] : memref<8x82xf32, #tpu.memory_space<vmem>>, vector<8x64xf32>
    %390 = vector.broadcast %59 : vector<1x64xf32> to vector<8x64xf32>
    %391 = arith.mulf %389, %390 : vector<8x64xf32>
    %c16_366 = arith.constant 16 : index
    %c0_367 = arith.constant 0 : index
    %392 = vector.load %arg18[%c16_366, %c0_367] : memref<144x256xf32, #tpu.memory_space<vmem>>, vector<8x64xf32>
    tpu.vector_store %arg18[%c16_366, %c0_367], %391 {strides = array<i32>} : memref<144x256xf32, #tpu.memory_space<vmem>>, vector<8x64xf32>,
    %c0_368 = arith.constant 0 : index
    %c8_369 = arith.constant 8 : index
    %393 = vector.load %arg16[%c0_368, %c8_369] : memref<8x82xf32, #tpu.memory_space<vmem>>, vector<8x64xf32>
    %394 = vector.broadcast %54 : vector<1x64xf32> to vector<8x64xf32>
    %395 = arith.mulf %393, %394 : vector<8x64xf32>
    %c24_370 = arith.constant 24 : index
    %c0_371 = arith.constant 0 : index
    %396 = vector.load %arg18[%c24_370, %c0_371] : memref<144x256xf32, #tpu.memory_space<vmem>>, vector<8x64xf32>
    tpu.vector_store %arg18[%c24_370, %c0_371], %395 {strides = array<i32>} : memref<144x256xf32, #tpu.memory_space<vmem>>, vector<8x64xf32>,
    %c0_372 = arith.constant 0 : index
    %c9_373 = arith.constant 9 : index
    %397 = vector.load %arg16[%c0_372, %c9_373] : memref<8x82xf32, #tpu.memory_space<vmem>>, vector<8x64xf32>
    %c32_374 = arith.constant 32 : index
    %c0_375 = arith.constant 0 : index
    %398 = vector.load %arg18[%c32_374, %c0_375] : memref<144x256xf32, #tpu.memory_space<vmem>>, vector<8x64xf32>
    tpu.vector_store %arg18[%c32_374, %c0_375], %397 {strides = array<i32>} : memref<144x256xf32, #tpu.memory_space<vmem>>, vector<8x64xf32>,
    %c0_376 = arith.constant 0 : index
    %c10_377 = arith.constant 10 : index
    %399 = vector.load %arg16[%c0_376, %c10_377] : memref<8x82xf32, #tpu.memory_space<vmem>>, vector<8x64xf32>
    %400 = vector.broadcast %59 : vector<1x64xf32> to vector<8x64xf32>
    %401 = arith.mulf %399, %400 : vector<8x64xf32>
    %c40_378 = arith.constant 40 : index
    %c0_379 = arith.constant 0 : index
    %402 = vector.load %arg18[%c40_378, %c0_379] : memref<144x256xf32, #tpu.memory_space<vmem>>, vector<8x64xf32>
    tpu.vector_store %arg18[%c40_378, %c0_379], %401 {strides = array<i32>} : memref<144x256xf32, #tpu.memory_space<vmem>>, vector<8x64xf32>,
    %c0_380 = arith.constant 0 : index
    %c16_381 = arith.constant 16 : index
    %403 = vector.load %arg16[%c0_380, %c16_381] : memref<8x82xf32, #tpu.memory_space<vmem>>, vector<8x64xf32>
    %404 = vector.broadcast %54 : vector<1x64xf32> to vector<8x64xf32>
    %405 = arith.mulf %403, %404 : vector<8x64xf32>
    %c48_382 = arith.constant 48 : index
    %c0_383 = arith.constant 0 : index
    %406 = vector.load %arg18[%c48_382, %c0_383] : memref<144x256xf32, #tpu.memory_space<vmem>>, vector<8x64xf32>
    tpu.vector_store %arg18[%c48_382, %c0_383], %405 {strides = array<i32>} : memref<144x256xf32, #tpu.memory_space<vmem>>, vector<8x64xf32>,
    %c0_384 = arith.constant 0 : index
    %c17_385 = arith.constant 17 : index
    %407 = vector.load %arg16[%c0_384, %c17_385] : memref<8x82xf32, #tpu.memory_space<vmem>>, vector<8x64xf32>
    %c56_386 = arith.constant 56 : index
    %c0_387 = arith.constant 0 : index
    %408 = vector.load %arg18[%c56_386, %c0_387] : memref<144x256xf32, #tpu.memory_space<vmem>>, vector<8x64xf32>
    tpu.vector_store %arg18[%c56_386, %c0_387], %407 {strides = array<i32>} : memref<144x256xf32, #tpu.memory_space<vmem>>, vector<8x64xf32>,
    %c0_388 = arith.constant 0 : index
    %c18_389 = arith.constant 18 : index
    %409 = vector.load %arg16[%c0_388, %c18_389] : memref<8x82xf32, #tpu.memory_space<vmem>>, vector<8x64xf32>
    %410 = vector.broadcast %59 : vector<1x64xf32> to vector<8x64xf32>
    %411 = arith.mulf %409, %410 : vector<8x64xf32>
    %c64_390 = arith.constant 64 : index
    %c0_391 = arith.constant 0 : index
    %412 = vector.load %arg18[%c64_390, %c0_391] : memref<144x256xf32, #tpu.memory_space<vmem>>, vector<8x64xf32>
    tpu.vector_store %arg18[%c64_390, %c0_391], %411 {strides = array<i32>} : memref<144x256xf32, #tpu.memory_space<vmem>>, vector<8x64xf32>,
    %c0_392 = arith.constant 0 : index
    %c0_393 = arith.constant 0 : index
    %413 = vector.load %arg18[%c0_392, %c0_393] : memref<144x256xf32, #tpu.memory_space<vmem>>, vector<72x64xf32>
    %cst_394 = arith.constant dense<0.000000e+00> : vector<8x64xf32>
    %414 = tpu.matmul %381, %413, %cst_394 {dimension_numbers = #tpu.dot_dimension_numbers<[1], [0], [0], [1], [0, 0, 1, 1], [], []>} : vector<8x72xf32>, vector<72x64xf32>, vector<8x64xf32> -> vector<8x64xf32>
    %c0_395 = arith.constant 0 : index
    %c0_396 = arith.constant 0 : index
    %415 = vector.load %arg13[%c0_395, %c0_396] : memref<64x16xf32, #tpu.memory_space<vmem>>, vector<64x16xf32>
    %cst_397 = arith.constant dense<0.000000e+00> : vector<8x16xf32>
    %416 = tpu.matmul %414, %415, %cst_397 {dimension_numbers = #tpu.dot_dimension_numbers<[1], [0], [0], [1], [0, 0, 1, 1], [], []>} : vector<8x64xf32>, vector<64x16xf32>, vector<8x16xf32> -> vector<8x16xf32>
    %c7 = arith.constant 7 : index
    %c0_398 = arith.constant 0 : index
    %c0_399 = arith.constant 0 : index
    %417 = vector.load %arg9[%c7, %c0_398, %c0_399] : memref<9x8x1xf32, #tpu.memory_space<vmem>>, vector<1x8x1xf32>
    %418 = vector.shape_cast %417 : vector<1x8x1xf32> to vector<8x1xf32>
    %419 = vector.broadcast %418 : vector<8x1xf32> to vector<8x16xf32>
    %420 = arith.addf %416, %419 : vector<8x16xf32>
    %cst_400 = arith.constant 0.000000e+00 : f32
    %421 = vector.broadcast %cst_400 : f32 to vector<8x16xf32>
    %422 = arith.maximumf %420, %421 : vector<8x16xf32>
    %c3_401 = arith.constant 3 : index
    %c0_402 = arith.constant 0 : index
    %c0_403 = arith.constant 0 : index
    %423 = vector.load %arg7[%c3_401, %c0_402, %c0_403] : memref<4x8x144xf32, #tpu.memory_space<vmem>>, vector<1x8x144xf32>
    %424 = vector.shape_cast %423 : vector<1x8x144xf32> to vector<8x144xf32>
    %c8_404 = arith.constant 8 : index
    %c0_405 = arith.constant 0 : index
    %c0_406 = arith.constant 0 : index
    %425 = vector.load %arg9[%c8_404, %c0_405, %c0_406] : memref<9x8x1xf32, #tpu.memory_space<vmem>>, vector<1x8x1xf32>
    %426 = vector.shape_cast %425 : vector<1x8x1xf32> to vector<8x1xf32>
    %c0_407 = arith.constant 0 : index
    %c5_408 = arith.constant 5 : index
    %427 = vector.load %arg17[%c0_407, %c5_408] : memref<8x26xf32, #tpu.memory_space<vmem>>, vector<8x16xf32>
    tpu.vector_store %arg17[%c0_407, %c5_408], %422 {strides = array<i32>} : memref<8x26xf32, #tpu.memory_space<vmem>>, vector<8x16xf32>,
    %c0_409 = arith.constant 0 : index
    %c0_410 = arith.constant 0 : index
    %428 = vector.load %arg17[%c0_409, %c0_410] : memref<8x26xf32, #tpu.memory_space<vmem>>, vector<8x16xf32>
    %429 = vector.broadcast %81 : vector<1x16xf32> to vector<8x16xf32>
    %430 = arith.mulf %428, %429 : vector<8x16xf32>
    %c0_411 = arith.constant 0 : index
    %c0_412 = arith.constant 0 : index
    %431 = vector.load %arg18[%c0_411, %c0_412] : memref<144x256xf32, #tpu.memory_space<vmem>>, vector<8x16xf32>
    tpu.vector_store %arg18[%c0_411, %c0_412], %430 {strides = array<i32>} : memref<144x256xf32, #tpu.memory_space<vmem>>, vector<8x16xf32>,
    %c0_413 = arith.constant 0 : index
    %c1_414 = arith.constant 1 : index
    %432 = vector.load %arg17[%c0_413, %c1_414] : memref<8x26xf32, #tpu.memory_space<vmem>>, vector<8x16xf32>
    %c16_415 = arith.constant 16 : index
    %c0_416 = arith.constant 0 : index
    %433 = vector.load %arg18[%c16_415, %c0_416] : memref<144x256xf32, #tpu.memory_space<vmem>>, vector<8x16xf32>
    tpu.vector_store %arg18[%c16_415, %c0_416], %432 {strides = array<i32>} : memref<144x256xf32, #tpu.memory_space<vmem>>, vector<8x16xf32>,
    %c0_417 = arith.constant 0 : index
    %c2_418 = arith.constant 2 : index
    %434 = vector.load %arg17[%c0_417, %c2_418] : memref<8x26xf32, #tpu.memory_space<vmem>>, vector<8x16xf32>
    %435 = vector.broadcast %86 : vector<1x16xf32> to vector<8x16xf32>
    %436 = arith.mulf %434, %435 : vector<8x16xf32>
    %c32_419 = arith.constant 32 : index
    %c0_420 = arith.constant 0 : index
    %437 = vector.load %arg18[%c32_419, %c0_420] : memref<144x256xf32, #tpu.memory_space<vmem>>, vector<8x16xf32>
    tpu.vector_store %arg18[%c32_419, %c0_420], %436 {strides = array<i32>} : memref<144x256xf32, #tpu.memory_space<vmem>>, vector<8x16xf32>,
    %c0_421 = arith.constant 0 : index
    %c4_422 = arith.constant 4 : index
    %438 = vector.load %arg17[%c0_421, %c4_422] : memref<8x26xf32, #tpu.memory_space<vmem>>, vector<8x16xf32>
    %439 = vector.broadcast %81 : vector<1x16xf32> to vector<8x16xf32>
    %440 = arith.mulf %438, %439 : vector<8x16xf32>
    %c48_423 = arith.constant 48 : index
    %c0_424 = arith.constant 0 : index
    %441 = vector.load %arg18[%c48_423, %c0_424] : memref<144x256xf32, #tpu.memory_space<vmem>>, vector<8x16xf32>
    tpu.vector_store %arg18[%c48_423, %c0_424], %440 {strides = array<i32>} : memref<144x256xf32, #tpu.memory_space<vmem>>, vector<8x16xf32>,
    %c0_425 = arith.constant 0 : index
    %c5_426 = arith.constant 5 : index
    %442 = vector.load %arg17[%c0_425, %c5_426] : memref<8x26xf32, #tpu.memory_space<vmem>>, vector<8x16xf32>
    %c64_427 = arith.constant 64 : index
    %c0_428 = arith.constant 0 : index
    %443 = vector.load %arg18[%c64_427, %c0_428] : memref<144x256xf32, #tpu.memory_space<vmem>>, vector<8x16xf32>
    tpu.vector_store %arg18[%c64_427, %c0_428], %442 {strides = array<i32>} : memref<144x256xf32, #tpu.memory_space<vmem>>, vector<8x16xf32>,
    %c0_429 = arith.constant 0 : index
    %c6_430 = arith.constant 6 : index
    %444 = vector.load %arg17[%c0_429, %c6_430] : memref<8x26xf32, #tpu.memory_space<vmem>>, vector<8x16xf32>
    %445 = vector.broadcast %86 : vector<1x16xf32> to vector<8x16xf32>
    %446 = arith.mulf %444, %445 : vector<8x16xf32>
    %c80_431 = arith.constant 80 : index
    %c0_432 = arith.constant 0 : index
    %447 = vector.load %arg18[%c80_431, %c0_432] : memref<144x256xf32, #tpu.memory_space<vmem>>, vector<8x16xf32>
    tpu.vector_store %arg18[%c80_431, %c0_432], %446 {strides = array<i32>} : memref<144x256xf32, #tpu.memory_space<vmem>>, vector<8x16xf32>,
    %c0_433 = arith.constant 0 : index
    %c8_434 = arith.constant 8 : index
    %448 = vector.load %arg17[%c0_433, %c8_434] : memref<8x26xf32, #tpu.memory_space<vmem>>, vector<8x16xf32>
    %449 = vector.broadcast %81 : vector<1x16xf32> to vector<8x16xf32>
    %450 = arith.mulf %448, %449 : vector<8x16xf32>
    %c96_435 = arith.constant 96 : index
    %c0_436 = arith.constant 0 : index
    %451 = vector.load %arg18[%c96_435, %c0_436] : memref<144x256xf32, #tpu.memory_space<vmem>>, vector<8x16xf32>
    tpu.vector_store %arg18[%c96_435, %c0_436], %450 {strides = array<i32>} : memref<144x256xf32, #tpu.memory_space<vmem>>, vector<8x16xf32>,
    %c0_437 = arith.constant 0 : index
    %c9_438 = arith.constant 9 : index
    %452 = vector.load %arg17[%c0_437, %c9_438] : memref<8x26xf32, #tpu.memory_space<vmem>>, vector<8x16xf32>
    %c112_439 = arith.constant 112 : index
    %c0_440 = arith.constant 0 : index
    %453 = vector.load %arg18[%c112_439, %c0_440] : memref<144x256xf32, #tpu.memory_space<vmem>>, vector<8x16xf32>
    tpu.vector_store %arg18[%c112_439, %c0_440], %452 {strides = array<i32>} : memref<144x256xf32, #tpu.memory_space<vmem>>, vector<8x16xf32>,
    %c0_441 = arith.constant 0 : index
    %c10_442 = arith.constant 10 : index
    %454 = vector.load %arg17[%c0_441, %c10_442] : memref<8x26xf32, #tpu.memory_space<vmem>>, vector<8x16xf32>
    %455 = vector.broadcast %86 : vector<1x16xf32> to vector<8x16xf32>
    %456 = arith.mulf %454, %455 : vector<8x16xf32>
    %c128_443 = arith.constant 128 : index
    %c0_444 = arith.constant 0 : index
    %457 = vector.load %arg18[%c128_443, %c0_444] : memref<144x256xf32, #tpu.memory_space<vmem>>, vector<8x16xf32>
    tpu.vector_store %arg18[%c128_443, %c0_444], %456 {strides = array<i32>} : memref<144x256xf32, #tpu.memory_space<vmem>>, vector<8x16xf32>,
    %c0_445 = arith.constant 0 : index
    %c5_446 = arith.constant 5 : index
    %458 = vector.load %arg17[%c0_445, %c5_446] : memref<8x26xf32, #tpu.memory_space<vmem>>, vector<8x16xf32>
    tpu.vector_store %arg17[%c0_445, %c5_446], %116 {strides = array<i32>} : memref<8x26xf32, #tpu.memory_space<vmem>>, vector<8x16xf32>,
    %c0_447 = arith.constant 0 : index
    %c0_448 = arith.constant 0 : index
    %459 = vector.load %arg17[%c0_447, %c0_448] : memref<8x26xf32, #tpu.memory_space<vmem>>, vector<8x16xf32>
    %460 = vector.broadcast %81 : vector<1x16xf32> to vector<8x16xf32>
    %461 = arith.mulf %459, %460 : vector<8x16xf32>
    %c8_449 = arith.constant 8 : index
    %c0_450 = arith.constant 0 : index
    %462 = vector.load %arg18[%c8_449, %c0_450] : memref<144x256xf32, #tpu.memory_space<vmem>>, vector<8x16xf32>
    tpu.vector_store %arg18[%c8_449, %c0_450], %461 {strides = array<i32>} : memref<144x256xf32, #tpu.memory_space<vmem>>, vector<8x16xf32>,
    %c0_451 = arith.constant 0 : index
    %c1_452 = arith.constant 1 : index
    %463 = vector.load %arg17[%c0_451, %c1_452] : memref<8x26xf32, #tpu.memory_space<vmem>>, vector<8x16xf32>
    %c24_453 = arith.constant 24 : index
    %c0_454 = arith.constant 0 : index
    %464 = vector.load %arg18[%c24_453, %c0_454] : memref<144x256xf32, #tpu.memory_space<vmem>>, vector<8x16xf32>
    tpu.vector_store %arg18[%c24_453, %c0_454], %463 {strides = array<i32>} : memref<144x256xf32, #tpu.memory_space<vmem>>, vector<8x16xf32>,
    %c0_455 = arith.constant 0 : index
    %c2_456 = arith.constant 2 : index
    %465 = vector.load %arg17[%c0_455, %c2_456] : memref<8x26xf32, #tpu.memory_space<vmem>>, vector<8x16xf32>
    %466 = vector.broadcast %86 : vector<1x16xf32> to vector<8x16xf32>
    %467 = arith.mulf %465, %466 : vector<8x16xf32>
    %c40_457 = arith.constant 40 : index
    %c0_458 = arith.constant 0 : index
    %468 = vector.load %arg18[%c40_457, %c0_458] : memref<144x256xf32, #tpu.memory_space<vmem>>, vector<8x16xf32>
    tpu.vector_store %arg18[%c40_457, %c0_458], %467 {strides = array<i32>} : memref<144x256xf32, #tpu.memory_space<vmem>>, vector<8x16xf32>,
    %c0_459 = arith.constant 0 : index
    %c4_460 = arith.constant 4 : index
    %469 = vector.load %arg17[%c0_459, %c4_460] : memref<8x26xf32, #tpu.memory_space<vmem>>, vector<8x16xf32>
    %470 = vector.broadcast %81 : vector<1x16xf32> to vector<8x16xf32>
    %471 = arith.mulf %469, %470 : vector<8x16xf32>
    %c56_461 = arith.constant 56 : index
    %c0_462 = arith.constant 0 : index
    %472 = vector.load %arg18[%c56_461, %c0_462] : memref<144x256xf32, #tpu.memory_space<vmem>>, vector<8x16xf32>
    tpu.vector_store %arg18[%c56_461, %c0_462], %471 {strides = array<i32>} : memref<144x256xf32, #tpu.memory_space<vmem>>, vector<8x16xf32>,
    %c0_463 = arith.constant 0 : index
    %c5_464 = arith.constant 5 : index
    %473 = vector.load %arg17[%c0_463, %c5_464] : memref<8x26xf32, #tpu.memory_space<vmem>>, vector<8x16xf32>
    %c72_465 = arith.constant 72 : index
    %c0_466 = arith.constant 0 : index
    %474 = vector.load %arg18[%c72_465, %c0_466] : memref<144x256xf32, #tpu.memory_space<vmem>>, vector<8x16xf32>
    tpu.vector_store %arg18[%c72_465, %c0_466], %473 {strides = array<i32>} : memref<144x256xf32, #tpu.memory_space<vmem>>, vector<8x16xf32>,
    %c0_467 = arith.constant 0 : index
    %c6_468 = arith.constant 6 : index
    %475 = vector.load %arg17[%c0_467, %c6_468] : memref<8x26xf32, #tpu.memory_space<vmem>>, vector<8x16xf32>
    %476 = vector.broadcast %86 : vector<1x16xf32> to vector<8x16xf32>
    %477 = arith.mulf %475, %476 : vector<8x16xf32>
    %c88_469 = arith.constant 88 : index
    %c0_470 = arith.constant 0 : index
    %478 = vector.load %arg18[%c88_469, %c0_470] : memref<144x256xf32, #tpu.memory_space<vmem>>, vector<8x16xf32>
    tpu.vector_store %arg18[%c88_469, %c0_470], %477 {strides = array<i32>} : memref<144x256xf32, #tpu.memory_space<vmem>>, vector<8x16xf32>,
    %c0_471 = arith.constant 0 : index
    %c8_472 = arith.constant 8 : index
    %479 = vector.load %arg17[%c0_471, %c8_472] : memref<8x26xf32, #tpu.memory_space<vmem>>, vector<8x16xf32>
    %480 = vector.broadcast %81 : vector<1x16xf32> to vector<8x16xf32>
    %481 = arith.mulf %479, %480 : vector<8x16xf32>
    %c104_473 = arith.constant 104 : index
    %c0_474 = arith.constant 0 : index
    %482 = vector.load %arg18[%c104_473, %c0_474] : memref<144x256xf32, #tpu.memory_space<vmem>>, vector<8x16xf32>
    tpu.vector_store %arg18[%c104_473, %c0_474], %481 {strides = array<i32>} : memref<144x256xf32, #tpu.memory_space<vmem>>, vector<8x16xf32>,
    %c0_475 = arith.constant 0 : index
    %c9_476 = arith.constant 9 : index
    %483 = vector.load %arg17[%c0_475, %c9_476] : memref<8x26xf32, #tpu.memory_space<vmem>>, vector<8x16xf32>
    %c120_477 = arith.constant 120 : index
    %c0_478 = arith.constant 0 : index
    %484 = vector.load %arg18[%c120_477, %c0_478] : memref<144x256xf32, #tpu.memory_space<vmem>>, vector<8x16xf32>
    tpu.vector_store %arg18[%c120_477, %c0_478], %483 {strides = array<i32>} : memref<144x256xf32, #tpu.memory_space<vmem>>, vector<8x16xf32>,
    %c0_479 = arith.constant 0 : index
    %c10_480 = arith.constant 10 : index
    %485 = vector.load %arg17[%c0_479, %c10_480] : memref<8x26xf32, #tpu.memory_space<vmem>>, vector<8x16xf32>
    %486 = vector.broadcast %86 : vector<1x16xf32> to vector<8x16xf32>
    %487 = arith.mulf %485, %486 : vector<8x16xf32>
    %c136_481 = arith.constant 136 : index
    %c0_482 = arith.constant 0 : index
    %488 = vector.load %arg18[%c136_481, %c0_482] : memref<144x256xf32, #tpu.memory_space<vmem>>, vector<8x16xf32>
    tpu.vector_store %arg18[%c136_481, %c0_482], %487 {strides = array<i32>} : memref<144x256xf32, #tpu.memory_space<vmem>>, vector<8x16xf32>,
    %c0_483 = arith.constant 0 : index
    %c0_484 = arith.constant 0 : index
    %489 = vector.load %arg18[%c0_483, %c0_484] : memref<144x256xf32, #tpu.memory_space<vmem>>, vector<144x16xf32>
    %cst_485 = arith.constant dense<0.000000e+00> : vector<8x16xf32>
    %490 = tpu.matmul %424, %489, %cst_485 {dimension_numbers = #tpu.dot_dimension_numbers<[1], [0], [0], [1], [0, 0, 1, 1], [], []>} : vector<8x144xf32>, vector<144x16xf32>, vector<8x16xf32> -> vector<8x16xf32>
    %491 = vector.broadcast %426 : vector<8x1xf32> to vector<8x16xf32>
    %492 = arith.addf %490, %491 : vector<8x16xf32>
    %cst_486 = arith.constant 0.000000e+00 : f32
    %493 = vector.broadcast %cst_486 : f32 to vector<8x16xf32>
    %494 = arith.maximumf %492, %493 : vector<8x16xf32>
    %c0_487 = arith.constant 0 : index
    %c0_488 = arith.constant 0 : index
    %c0_489 = arith.constant 0 : index
    %495 = vector.load %arg14[%c0_487, %c0_488, %c0_489] : memref<1x8x384xf32, #tpu.memory_space<vmem>>, vector<1x8x256xf32>
    %496 = vector.shape_cast %495 : vector<1x8x256xf32> to vector<8x256xf32>
    %497 = vector.shape_cast %264 : vector<8x256xf32> to vector<1x8x256xf32>
    tpu.vector_store %arg14[%c0_487, %c0_488, %c0_489], %497 {strides = array<i32>} : memref<1x8x384xf32, #tpu.memory_space<vmem>>, vector<1x8x256xf32>,
    %c0_490 = arith.constant 0 : index
    %c0_491 = arith.constant 0 : index
    %c256 = arith.constant 256 : index
    %498 = vector.load %arg14[%c0_490, %c0_491, %c256] : memref<1x8x384xf32, #tpu.memory_space<vmem>>, vector<1x8x64xf32>
    %499 = vector.shape_cast %498 : vector<1x8x64xf32> to vector<8x64xf32>
    %500 = vector.shape_cast %379 : vector<8x64xf32> to vector<1x8x64xf32>
    tpu.vector_store %arg14[%c0_490, %c0_491, %c256], %500 {strides = array<i32>} : memref<1x8x384xf32, #tpu.memory_space<vmem>>, vector<1x8x64xf32>,
    %c0_492 = arith.constant 0 : index
    %c0_493 = arith.constant 0 : index
    %c320 = arith.constant 320 : index
    %501 = vector.load %arg14[%c0_492, %c0_493, %c320] : memref<1x8x384xf32, #tpu.memory_space<vmem>>, vector<1x8x16xf32>
    %502 = vector.shape_cast %501 : vector<1x8x16xf32> to vector<8x16xf32>
    %503 = vector.shape_cast %494 : vector<8x16xf32> to vector<1x8x16xf32>
    tpu.vector_store %arg14[%c0_492, %c0_493, %c320], %503 {strides = array<i32>} : memref<1x8x384xf32, #tpu.memory_space<vmem>>, vector<1x8x16xf32>,
    %cst_494 = arith.constant 0.000000e+00 : f32
    %504 = vector.broadcast %cst_494 : f32 to vector<8x48xf32>
    %c0_495 = arith.constant 0 : index
    %c0_496 = arith.constant 0 : index
    %c336 = arith.constant 336 : index
    %505 = vector.load %arg14[%c0_495, %c0_496, %c336] : memref<1x8x384xf32, #tpu.memory_space<vmem>>, vector<1x8x48xf32>
    %506 = vector.shape_cast %505 : vector<1x8x48xf32> to vector<8x48xf32>
    %507 = vector.shape_cast %504 : vector<8x48xf32> to vector<1x8x48xf32>
    tpu.vector_store %arg14[%c0_495, %c0_496, %c336], %507 {strides = array<i32>} : memref<1x8x384xf32, #tpu.memory_space<vmem>>, vector<1x8x48xf32>,
    return
  }
  func.func @transform_0(%arg0: i32) -> (i32, i32, i32) {
    %c0_i32 = arith.constant 0 : i32
    %c0_i32_0 = arith.constant 0 : i32
    %c0_i32_1 = arith.constant 0 : i32
    return %arg0, %c0_i32, %c0_i32_0 : i32, i32, i32
  }
  func.func @transform_1(%arg0: i32) -> (i32, i32, i32) {
    %c0_i32 = arith.constant 0 : i32
    %c0_i32_0 = arith.constant 0 : i32
    %c0_i32_1 = arith.constant 0 : i32
    return %arg0, %c0_i32, %c0_i32_0 : i32, i32, i32
  }
  func.func @transform_2(%arg0: i32) -> (i32, i32, i32) {
    %c0_i32 = arith.constant 0 : i32
    %c0_i32_0 = arith.constant 0 : i32
    %c0_i32_1 = arith.constant 0 : i32
    return %arg0, %c0_i32, %c0_i32_0 : i32, i32, i32
  }
  func.func @transform_3(%arg0: i32) -> (i32, i32) {
    %c0_i32 = arith.constant 0 : i32
    %c0_i32_0 = arith.constant 0 : i32
    %c0_i32_1 = arith.constant 0 : i32
    return %c0_i32, %c0_i32_0 : i32, i32
  }
  func.func @transform_4(%arg0: i32) -> (i32, i32) {
    %c0_i32 = arith.constant 0 : i32
    %c0_i32_0 = arith.constant 0 : i32
    %c0_i32_1 = arith.constant 0 : i32
    return %c0_i32, %c0_i32_0 : i32, i32
  }
  func.func @transform_5(%arg0: i32) -> (i32, i32) {
    %c0_i32 = arith.constant 0 : i32
    %c0_i32_0 = arith.constant 0 : i32
    %c0_i32_1 = arith.constant 0 : i32
    return %c0_i32, %c0_i32_0 : i32, i32
  }
  func.func @transform_6(%arg0: i32) -> (i32, i32, i32) {
    %c0_i32 = arith.constant 0 : i32
    %c0_i32_0 = arith.constant 0 : i32
    %c0_i32_1 = arith.constant 0 : i32
    %c0_i32_2 = arith.constant 0 : i32
    return %c0_i32, %c0_i32_0, %c0_i32_1 : i32, i32, i32
  }
  func.func @transform_7(%arg0: i32) -> (i32, i32, i32) {
    %c0_i32 = arith.constant 0 : i32
    %c0_i32_0 = arith.constant 0 : i32
    %c0_i32_1 = arith.constant 0 : i32
    %c0_i32_2 = arith.constant 0 : i32
    return %c0_i32, %c0_i32_0, %c0_i32_1 : i32, i32, i32
  }
  func.func @transform_8(%arg0: i32) -> (i32, i32, i32) {
    %c0_i32 = arith.constant 0 : i32
    %c0_i32_0 = arith.constant 0 : i32
    %c0_i32_1 = arith.constant 0 : i32
    %c0_i32_2 = arith.constant 0 : i32
    return %c0_i32, %c0_i32_0, %c0_i32_1 : i32, i32, i32
  }
  func.func @transform_9(%arg0: i32) -> (i32, i32) {
    %c0_i32 = arith.constant 0 : i32
    %c0_i32_0 = arith.constant 0 : i32
    %c0_i32_1 = arith.constant 0 : i32
    return %c0_i32, %c0_i32_0 : i32, i32
  }
  func.func @transform_10(%arg0: i32) -> (i32, i32) {
    %c0_i32 = arith.constant 0 : i32
    %c0_i32_0 = arith.constant 0 : i32
    %c0_i32_1 = arith.constant 0 : i32
    return %c0_i32, %c0_i32_0 : i32, i32
  }
  func.func @transform_11(%arg0: i32) -> (i32, i32) {
    %c0_i32 = arith.constant 0 : i32
    %c0_i32_0 = arith.constant 0 : i32
    %c0_i32_1 = arith.constant 0 : i32
    return %c0_i32, %c0_i32_0 : i32, i32
  }
  func.func @transform_12(%arg0: i32) -> (i32, i32) {
    %c0_i32 = arith.constant 0 : i32
    %c0_i32_0 = arith.constant 0 : i32
    %c0_i32_1 = arith.constant 0 : i32
    return %c0_i32, %c0_i32_0 : i32, i32
  }
  func.func @transform_13(%arg0: i32) -> (i32, i32, i32) {
    %c0_i32 = arith.constant 0 : i32
    %c0_i32_0 = arith.constant 0 : i32
    %c0_i32_1 = arith.constant 0 : i32
    return %arg0, %c0_i32, %c0_i32_0 : i32, i32, i32
  }
}

</mosaic_0001>

<bundles_post_ra>
// kernel: fpnpan_forward.1
= control target key start
LH: loop header
LB: loop body
LE: loop exit
PB: predicated region body
PF: predicated region fallthrough
CT: control target
= control target key end

     0   :  { %s2695_s25 = smov 0   ;;  %s3568_s0 = inlined_call_operand.vmem [shape: f32[2,4,256], index: 0, kind: input, shape index: {}]   ;;  %s3569_s1 = inlined_call_operand.vmem [shape: f32[2,8,64], index: 1, kind: input, shape index: {}]   ;;  %s3570_s2 = inlined_call_operand.vmem [shape: f32[2,16,16], index: 2, kind: input, shape index: {}]   ;;  %s3571_s3 = inlined_call_operand.vmem [shape: f32[8,4], index: 3, kind: input, shape index: {}]   ;;  %s3572_s4 = inlined_call_operand.vmem [shape: f32[8,8], index: 4, kind: input, shape index: {}]   ;;  %s3573_s5 = inlined_call_operand.vmem [shape: f32[8,16], index: 5, kind: input, shape index: {}]   ;;  %s3574_s6 = inlined_call_operand.vmem [shape: f32[4,8,144], index: 6, kind: input, shape index: {}]   ;;  %s3575_s7 = inlined_call_operand.vmem [shape: f32[2,8,72], index: 7, kind: input, shape index: {}]   ;;  %s3576_s8 = inlined_call_operand.vmem [shape: f32[9,8,1], index: 8, kind: input, shape index: {}]   ;;  %s3577_s9 = inlined_call_operand.vmem [shape: f32[16,64], index: 9, kind: input, shape index: {}]   ;;  %s3578_s10 = inlined_call_operand.vmem [shape: f32[64,256], index: 10, kind: input, shape index: {}]   ;;  %s3579_s11 = inlined_call_operand.vmem [shape: f32[256,64], index: 11, kind: input, shape index: {}]   ;;  %s3580_s12 = inlined_call_operand.vmem [shape: f32[64,16], index: 12, kind: input, shape index: {}]   ;;  %s3581_s13 = inlined_call_operand.vmem [shape: f32[2,8,384], index: 13, kind: output, shape index: {}]  }
   0x1 LB: > { %s2474_s26 = sadd.s32 4294967295, %s2594_s25   ;;  %p2478_p0 = scmp.ge.s32.totalorder %s2594_s25, 1  ;;  %s2594_s25 = sphi %s2695_s25, %s23_s25  }
   0x2   : > { %p406_p1 = scmp.lt.s32.totalorder %s2594_s25, 3 }
   0x4   : > { %p407_p2 = pnand %p2478_p0, %p406_p1 }
   0x6   : > { %410 = sbr.rel (%p407_p2) target bundleno = 3314 (0xcf2), region = 72 }
   0xb   : > { %p459_p3 = scmp.lt.s32.totalorder %s2474_s26, 1  ;;  %v2596_v0 = vmov 0   ;;  %v2491_v1 = vld [vmem:[%s3576_s8 + $0x10] sm:$0xff]  ;;  %v616_v2 = vld [vmem:[%s3572_s4] sm:$0xff]  ;;  %vm625_vm0 = vcmask 64512   ;;  %v2489_v5 = vld [vmem:[%s3576_s8 + $0x8] sm:$0xff]  ;;  %v486_v11 = vlaneseq }
   0xc   : > { %2560 = vset.pattern.permute.xlu0 %v2596_v0  ;;  %2562 = vset.pattern.permute.xlu2 %v2596_v0  ;;  %v650_v8 = vld [vmem:[%s3573_s5] sm:$0xff]  ;;  %vm660_vm1 = vcmask 130048   ;;  %vm569_vm2 = vcmask 1043456   ;;  %vm565_vm3 = vcmask 31744   ;;  %v686_v13 = vld [vmem:[%s3577_s9 + $0x8] sm:$0xff]  ;;  %v3595_v16 = vmov 0.0  }
   0xd   : > { %s3634_s26 = smov (!%p459_p3, %s2474_s26), 1  ;;  %657 = vperm.xlu0 %2560, %v2491_v1   ;;  %2561 = vset.pattern.permute.xlu1 %v2596_v0  ;;  %v2733_v10 = vld [vmem:[%s3571_s3] sm:$0xff]  ;;  %v2737_v12 = vand.u32 127, %v486_v11  ;;  %478 = vst [vmem:[#allocation2] sm:$0xff] %v3595_v16  ;;  %s3583_s20 = smov 8   ;;  %vm482_vm6 = vcmask 670720  }
   0xe   : > { %s2520_s29 = sshll.u32 %s3634_s26, 3  ;;  %s2521_s21 = sshll.u32 %s3634_s26, 4  ;;  %v685_v15 = vld [vmem:[%s3577_s9] sm:$0xff]  ;;  %483 = vst.msk [vmem:[#allocation3] sm:$0xff] %vm482_vm6, %v3595_v16  ;;  %vm718_vm7 = vcmask 597064   ;;  %vm722_vm8 = vcmask 523264  }
   0xf   : > { %s463_s15 = scalar_lea.vmem %s3568_s0, %s2520_s29  ;;  %s467_s18 = scalar_lea.vmem %s3569_s1, %s2520_s29  ;;  %3610 = vst [vmem:[#allocation6_spill] sm:$0xff] %v2737_v12  ;;  %v525_v14 = vand.u32 7, %v2737_v12  ;;  %v555_v55 = vld [vmem:[%s3576_s8] sm:$0xff]  ;;  %v2494_v56 = vld [vmem:[%s3576_s8 + $0x18] sm:$0xff]  ;;  %v488_v59 = vadd.s32 128, %v2737_v12  ;;  %v493_v60 = vand.u32 15, %v2737_v12 }
  0x10   : > { %v554_v3 = vld [vmem:[%s463_s15] sm:$0xff]  ;;  %s472_s24 = scalar_lea.vmem %s3570_s2, %s2521_s21  ;;  %s2599_s21 = smov 16   ;;  %vm480_vm13 = vcmask 277504   ;;  %vm997_vm14 = vcmask 1047688   ;;  %vm992_vm15 = vcmask 138240   ;;  %vm1134_vm6 = vcmask 900096  }
  0x11   : > { %v617_v4 = vld [vmem:[%s467_s18] sm:$0xff]  ;;  %562 = vst [vmem:[#allocation1] ss:$2 sm:$0xff] %v554_v3  ;;  %v652_v6 = vld [vmem:[%s472_s24 + $0x8] sm:$0xff]  ;;  %vm533_vm4 = vcmp.ne.s32.totalorder %v525_v14, 0  ;;  %vm535_vm5 = vcmp.ne.s32.totalorder %v525_v14, 7 }
  0x12   : > { %644 = vmatpush.msra.mxu2 %v617_v4  ;;  %v651_v7 = vld [vmem:[%s472_s24] sm:$0xff]  ;;  %v2747_v17 = vsel %vm533_vm4, 1.0, %v3595_v16  ;;  %v536_v18 = vsel %vm535_vm5, 1.0, %v3595_v16  ;;  %s3582_s22 = smov 10   ;;  %s2601_s23 = smov 18   ;;  %v500_v61 = vand.u32 15, %v488_v59 }
  0x13   : > { %2490 = vmatmul.msk.f32.vlgmr.msra.gmra.mxu2 %vm625_vm0, %v616_v2  ;;  %769 = vrot.lane.b32.xlu2 %v2747_v17, %s2599_s21  ;;  %s3591_s24 = smov 9   ;;  %s2603_s27 = smov 112   ;;  %vm517_vm9 = vcmp.ne.s32.totalorder %v493_v60, 15  ;;  %vm513_vm11 = vcmp.ne.s32.totalorder %v493_v60, 0  ;;  %481 = vst.msk [vmem:[#allocation2 + $0x10] sm:$0xff] %vm480_vm13, %v3595_v16  ;;  %v926_v59 = vld [vmem:[%s3578_s10 + $0x20] sm:$0xff] }
  0x14   : > { %678 = vmatpush.msrb.mxu2 %v652_v6  ;;  %s3589_s28 = smov 118   ;;  %s3586_s29 = smov 2   ;;  %vm518_vm10 = vcmp.ne.s32.totalorder %v500_v61, 15  ;;  %v519_v63 = vsel %vm517_vm9, 1.0, %v3595_v16  ;;  %vm514_vm12 = vcmp.ne.s32.totalorder %v500_v61, 0  ;;  %v924_v60 = vld [vmem:[%s3578_s10 + $0x10] sm:$0xff] }
  0x15   : > { %622 = vperm.xlu0 %2560, %v2489_v5   ;;  %s2606_s30 = smov 111   ;;  %s3587_s14 = smov 119   ;;  %v520_v0 = vsel %vm518_vm10, 1.0, %v3595_v16  ;;  %v922_v61 = vld [vmem:[%s3578_s10] sm:$0xff]  ;;  %vm1148_vm0 = vcmask 261120   ;;  %vm1184_vm4 = vcmask 777216  }
  0x16   : > { %679 = vmatpush.msrb.mxu2 %v651_v7  ;;  %s3584_s15 = smov 120   ;;  %s2609_s16 = smov 126   ;;  %v2568_v1 = vpack.i.bf16 %v520_v0, %v519_v63  ;;  %vm1165_vm5 = vcmask 785408   ;;  %vm1214_vm9 = vcmask 769024   ;;  %vm1103_vm10 = vcmask 908288  }
  0x17   : > { %s3608_s17 = smov 110   ;;  %s3593_s18 = smov 127  }
  0x18   : > { %v563_v9 = vld.sshfl [vmem:[#allocation1] sm:$0xff pattern:$0x75316420]  ;;  %v564_v38 = vld.sshfl [vmem:[#allocation1 + $0x8] sm:$0xff pattern:$0x75316420] }
  0x19   : > { %2485 = vmatpush.msk.msra.mxu0 %vm569_vm2, %v563_v9  ;;  %2487 = vmatpush.msk.msra.mxu1 %vm569_vm2, %v564_v38  ;;  %s2616_s19 = smov 96   ;;  %vm1117_vm2 = vcmask 146432  }
  0x1a   : > { %2486 = vmatmul.msk.f32.vlgmr.msra.gmra.mxu0 %vm565_vm3, %v2733_v10  ;;  %2488 = vmatmul.msk.f32.vlgmr.msra.gmra.mxu1 %vm565_vm3, %v2733_v10  ;;  %vm1035_vm3 = vcmask 15360  }
  0x1b   : > { %2492 = vmatmul.msk.f32.vlgmr.msrb.gmra.mxu2 %vm660_vm1, %v650_v8  ;;  %704 = vmatpush.msrb.mxu0 %v686_v13 }
  0x1c   : > { %759 = vrot.lane.b32.xlu2 %v536_v18, %s3582_s22  ;;  %s2613_s22 = smov 17  }
  0x1d   : > { %705 = vmatpush.msrb.mxu0 %v685_v15  ;;  %743 = vrot.lane.b32.xlu0 %v2747_v17, %s3583_s20  ;;  %s2612_s20 = smov 34  }
  0x24   : > { %785 = vrot.lane.b32.xlu2 %v536_v18, %s2601_s23 }
  0x6d   : > { %v2765_v27 = vpop.permute.xlu2 %769 }
  0x76   : > { %v2768_v29 = vpop.permute.xlu2 %759 }
  0x77   : > { %3612 = vst [vmem:[#allocation8_spill] sm:$0xff] %v2768_v29 }
  0x7e   : > { %v2782_v36 = vpop.permute.xlu2 %785 }
  0x7f   : > { %v658_v19 = vpop.permute.xlu0 %657  ;;  %3613 = vst [vmem:[#allocation9_spill] sm:$0xff] %v2782_v36 }
  0x87   : > { %v623_v20 = vpop.permute.xlu0 %622 }
  0x8f   : > { %v2788_v39 = vpop.permute.xlu0 %743 }
  0x90   : > { %3614 = vst [vmem:[#allocation10_spill] sm:$0xff] %v2788_v39 }
  0x96   : > { %v646_v21 = vpop.f32.mrf.mxu2 }
  0x97   : > { %v647_v22 = vadd.f32 %v646_v21, %v623_v20  ;;  %v2772_v33 = vpop.f32.mrf.mxu0  ;;  %v611_v7 = vpop.f32.mrf.mxu1  ;;  %v2841_v21 = vsel %vm513_vm11, 1.0, %v3595_v16  ;;  %vm1084_vm11 = vcmask 916480  }
  0x99   : > { %v649_v23 = vmax.f32 %v647_v22, 0.0  ;;  %v2844_v22 = vsel %vm514_vm12, 1.0, %v3595_v16  ;;  %vm1052_vm12 = vcmask 1031168  }
  0x9b   : > { %715 = vrot.lane.b32.xlu1 %v649_v23, %s3591_s24 }
  0x9e   : > { %v681_v24 = vpop.f32.mrf.mxu2 }
  0x9f   : > { %v2758_v25 = vadd.f32 %v681_v24, %v658_v19 }
  0xa1   : > { %3611 = vst [vmem:[#allocation7_spill] sm:$0xff] %v2758_v25  ;;  %v3597_v26 = vmax.f32 %v2758_v25, 0.0 }
  0xa3   : > { %2493 = vmatmul.msk.f32.vlgmr.msrb.gmra.mxu0 %vm660_vm1, %v3597_v26 }
 0x10d   : > { %v716_v28 = vpop.permute.xlu1 %715 }
 0x10e   : > { %719 = vst.msk [vmem:[#allocation3] sm:$0xff] %vm718_vm7, %v716_v28 }
 0x115   : > { %v720_v30 = vld [vmem:[#allocation3] sm:$0xff] }
 0x116   : > { %v772_v31 = vmul.f32 %v2765_v27, %v720_v30  ;;  %v762_v32 = vmul.f32 %v2768_v29, %v720_v30  ;;  %v721_v34 = vmul.f32 %v720_v30, %v2747_v17  ;;  %v746_v47 = vmul.f32 %v2788_v39, %v720_v30 }
 0x117   : > { %v788_v54 = vmul.f32 %v2782_v36, %v720_v30 }
 0x118   : > { %774 = vrot.lane.b32.xlu0 %v772_v31, %s2603_s27  ;;  %764 = vrot.lane.b32.xlu2 %v762_v32, %s3589_s28  ;;  %723 = vst.msk [vmem:[#allocation5] sm:$0xff] %vm722_vm8, %v721_v34 }
 0x120   : > { %v707_v35 = vpop.f32.mrf.mxu0 }
 0x121   : > { %795 = vrot.lane.b32.xlu1 %v707_v35, %s3591_s24  ;;  %s2619_s24 = smov 4  }
 0x129   : > { %732 = vrot.lane.b32.xlu1 %v536_v18, %s3586_s29 }
 0x131   : > { %780 = vrot.lane.b32.xlu1 %v720_v30, %s2606_s30 }
 0x139   : > { %754 = vrot.lane.b32.xlu1 %v720_v30, %s3587_s14 }
 0x172   : > { %v765_v37 = vpop.permute.xlu2 %764 }
 0x173   : > { %767 = vst.msk [vmem:[#allocation5 + $0xa0] sm:$0xff] %vm722_vm8, %v765_v37 }
 0x17a   : > { %v865_v28 = vld [vmem:[#allocation5 + $0xa0] sm:$0xff] }
 0x18a   : > { %v775_v40 = vpop.permute.xlu0 %774 }
 0x18b   : > { %777 = vst.msk [vmem:[#allocation5 + $0xc0] sm:$0xff] %vm722_vm8, %v775_v40 }
 0x192   : > { %v867_v19 = vld [vmem:[#allocation5 + $0xc0] sm:$0xff] }
 0x193   : > { %v796_v41 = vpop.permute.xlu1 %795 }
 0x194   : > { %798 = vst.msk [vmem:[#allocation3] sm:$0xff] %vm718_vm7, %v796_v41 }
 0x19b   : > { %v2792_v42 = vpop.permute.xlu1 %732  ;;  %v842_v43 = vld [vmem:[#allocation3] sm:$0xff] }
 0x19c   : > { %3615 = vst [vmem:[#allocation11_spill] sm:$0xff] %v2792_v42  ;;  %844 = vrot.lane.b32.xlu0 %v842_v43, %s2606_s30  ;;  %v836_v44 = vmul.f32 %v842_v43, %v2765_v27  ;;  %v829_v45 = vmul.f32 %v842_v43, %v2768_v29  ;;  %v800_v46 = vmul.f32 %v842_v43, %v2747_v17 }
 0x19d   : > { %v816_v49 = vmul.f32 %v842_v43, %v2788_v39  ;;  %v809_v50 = vmul.f32 %v842_v43, %v2792_v42  ;;  %v735_v52 = vmul.f32 %v2792_v42, %v720_v30  ;;  %v849_v53 = vmul.f32 %v842_v43, %v2782_v36 }
 0x19e   : > { %838 = vrot.lane.b32.xlu2 %v836_v44, %s2603_s27  ;;  %831 = vrot.lane.b32.xlu1 %v829_v45, %s3589_s28  ;;  %801 = vst.msk [vmem:[#allocation5 + $0x10] sm:$0xff] %vm722_vm8, %v800_v46  ;;  %v711_v45 = vld [vmem:[%s3574_s6 + $0x8] sm:$0xff]  ;;  %s3616_s28 = smov 127  }
 0x1a3   : > { %v781_v48 = vpop.permute.xlu1 %780 }
 0x1a4   : > { %783 = vst.msk [vmem:[#allocation5 + $0xe0] sm:$0xff] %vm722_vm8, %v781_v48  ;;  %748 = vrot.lane.b32.xlu0 %v746_v47, %s3584_s15  ;;  %v710_v48 = vld [vmem:[%s3574_s6] sm:$0xff] }
 0x1a5   : > { %v856_v46 = vld [vmem:[#allocation5 + $0x10] sm:$0xff] }
 0x1a6   : > { %818 = vrot.lane.b32.xlu2 %v816_v49, %s3584_s15  ;;  %811 = vrot.lane.b32.xlu1 %v809_v50, %s2609_s16  ;;  %v855_v49 = vld [vmem:[#allocation5] sm:$0xff]  ;;  %s3625_s15 = smov 110  }
 0x1ab   : > { %v755_v51 = vpop.permute.xlu1 %754  ;;  %v869_v10 = vld [vmem:[#allocation5 + $0xe0] sm:$0xff] }
 0x1ac   : > { %757 = vst.msk [vmem:[#allocation5 + $0x80] sm:$0xff] %vm722_vm8, %v755_v51  ;;  %824 = vrot.lane.b32.xlu0 %v842_v43, %s3587_s14  ;;  %v936_v51 = vld [vmem:[%s3578_s10 + $0x70] sm:$0xff]  ;;  %s2522_s14 = smul.u32 24, %s3634_s26  ;;  %s3632_s26 = smov 10  }
 0x1ad   : > { %949 = vmatpush.msra.mxu3 %v936_v51 }
 0x1ae   : > { %737 = vrot.lane.b32.xlu2 %v735_v52, %s2609_s16  ;;  %851 = vrot.lane.b32.xlu1 %v849_v53, %s3608_s17  ;;  %v934_v52 = vld [vmem:[%s3578_s10 + $0x60] sm:$0xff]  ;;  %v932_v53 = vld [vmem:[%s3578_s10 + $0x50] sm:$0xff] }
 0x1af   : > { %950 = vmatpush.msra.mxu3 %v934_v52 }
 0x1b1   : > { %951 = vmatpush.msra.mxu3 %v932_v53 }
 0x1b4   : > { %804 = vrot.lane.b32.xlu0 %v842_v43, %s3593_s18 }
 0x1b6   : > { %726 = vrot.lane.b32.xlu2 %v720_v30, %s3593_s18  ;;  %875 = vperm.xlu1 %2561, %v2494_v56   ;;  %v2573_v30 = vpack.i.bf16 %v2844_v22, %v2841_v21  ;;  %s2617_s18 = smov 94  }
 0x1bc   : > { %790 = vrot.lane.b32.xlu0 %v788_v54, %s3608_s17  ;;  %v930_v54 = vld [vmem:[%s3578_s10 + $0x40] sm:$0xff] }
 0x1bd   : > { %952 = vmatpush.msra.mxu3 %v930_v54 }
 0x1be   : > { %558 = vperm.xlu2 %2562, %v555_v55  }
 0x1c6   : > { %2569 = vrot.lane.b32.xlu2 %v2568_v1, %s2601_s23  ;;  %s2614_s23 = smov 32  }
 0x1ce   : > { %2584 = vrot.lane.b32.xlu2 %v2568_v1, %s2612_s20  ;;  %s2620_s20 = smov 6  }
 0x1f8   : > { %v839_v57 = vpop.permute.xlu2 %838 }
 0x1f9   : > { %841 = vst.msk [vmem:[#allocation5 + $0xd0] sm:$0xff] %vm722_vm8, %v839_v57 }
 0x200   : > { %v819_v58 = vpop.permute.xlu2 %818  ;;  %v868_v14 = vld [vmem:[#allocation5 + $0xd0] sm:$0xff] }
 0x201   : > { %821 = vst.msk [vmem:[#allocation5 + $0x70] sm:$0xff] %vm722_vm8, %v819_v58  ;;  %v928_v58 = vld [vmem:[%s3578_s10 + $0x30] sm:$0xff] }
 0x202   : > { %953 = vmatpush.msra.mxu3 %v928_v58 }
 0x204   : > { %954 = vmatpush.msra.mxu3 %v926_v59 }
 0x206   : > { %955 = vmatpush.msra.mxu3 %v924_v60 }
 0x208   : > { %v738_v62 = vpop.permute.xlu2 %737  ;;  %v862_v35 = vld [vmem:[#allocation5 + $0x70] sm:$0xff]  ;;  %956 = vmatpush.msra.mxu3 %v922_v61 }
 0x209   : > { %740 = vst.msk [vmem:[#allocation5 + $0x40] sm:$0xff] %vm722_vm8, %v738_v62 }
 0x20e   : > { %v845_v2 = vpop.permute.xlu0 %844 }
 0x20f   : > { %847 = vst.msk [vmem:[#allocation5 + $0xf0] sm:$0xff] %vm722_vm8, %v845_v2 }
 0x210   : > { %v727_v3 = vpop.permute.xlu2 %726  ;;  %v832_v4 = vpop.permute.xlu1 %831  ;;  %v859_v41 = vld [vmem:[#allocation5 + $0x40] sm:$0xff] }
 0x211   : > { %729 = vst.msk [vmem:[#allocation5 + $0x20] sm:$0xff] %vm722_vm8, %v727_v3 }
 0x212   : > { %834 = vst.msk [vmem:[#allocation5 + $0xb0] sm:$0xff] %vm722_vm8, %v832_v4 }
 0x216   : > { %v749_v5 = vpop.permute.xlu0 %748  ;;  %v870_v6 = vld [vmem:[#allocation5 + $0xf0] sm:$0xff] }
 0x217   : > { %751 = vst.msk [vmem:[#allocation5 + $0x60] sm:$0xff] %vm722_vm8, %v749_v5  ;;  %881 = vmatpush.msrb.mxu1 %v870_v6  ;;  %v935_v5 = vld [vmem:[%s3578_s10 + $0x68] sm:$0xff] }
 0x218   : > { %v559_v8 = vpop.permute.xlu2 %558  ;;  %v812_v9 = vpop.permute.xlu1 %811  ;;  %v857_v44 = vld [vmem:[#allocation5 + $0x20] sm:$0xff] }
 0x219   : > { %v592_v11 = vadd.f32 %v2772_v33, %v559_v8  ;;  %v612_v13 = vadd.f32 %v611_v7, %v559_v8  ;;  %814 = vst.msk [vmem:[#allocation5 + $0x50] sm:$0xff] %vm722_vm8, %v812_v9  ;;  %882 = vmatpush.msrb.mxu1 %v869_v10  ;;  %v866_v23 = vld [vmem:[#allocation5 + $0xb0] sm:$0xff]  ;;  %v863_v33 = vld [vmem:[#allocation5 + $0x80] sm:$0xff]  ;;  %v933_v10 = vld [vmem:[%s3578_s10 + $0x58] sm:$0xff] }
 0x21b   : > { %v614_v15 = vmax.f32 %v592_v11, 0.0  ;;  %v615_v18 = vmax.f32 %v612_v13, 0.0  ;;  %883 = vmatpush.msrb.mxu1 %v868_v14  ;;  %v931_v11 = vld [vmem:[%s3578_s10 + $0x48] sm:$0xff]  ;;  %v929_v13 = vld [vmem:[%s3578_s10 + $0x38] sm:$0xff] }
 0x21d   : > { %988 = vrot.lane.b32.xlu0 %v614_v15, %s2613_s22  ;;  %990 = vrot.lane.b32.xlu1 %v615_v18, %s2613_s22  ;;  %v927_v15 = vld [vmem:[%s3578_s10 + $0x28] sm:$0xff] }
 0x21e   : > { %884 = vmatpush.msrb.mxu1 %v867_v19  ;;  %v825_v20 = vpop.permute.xlu0 %824  ;;  %v861_v37 = vld [vmem:[#allocation5 + $0x60] sm:$0xff]  ;;  %v925_v19 = vld [vmem:[%s3578_s10 + $0x18] sm:$0xff] }
 0x21f   : > { %827 = vst.msk [vmem:[#allocation5 + $0x90] sm:$0xff] %vm722_vm8, %v825_v20 }
 0x220   : > { %885 = vmatpush.msrb.mxu1 %v866_v23  ;;  %v852_v24 = vpop.permute.xlu1 %851  ;;  %v860_v40 = vld [vmem:[#allocation5 + $0x50] sm:$0xff]  ;;  %v2570_v6 = vpop.permute.xlu2 %2569  ;;  %v923_v23 = vld [vmem:[%s3578_s10 + $0x8] sm:$0xff] }
 0x221   : > { %854 = vst.msk [vmem:[#allocation5 + $0x110] sm:$0xff] %vm722_vm8, %v852_v24  ;;  %v2918_v8 = vunpack.i.h.bf16 %v2570_v6  ;;  %v2920_v9 = vunpack.i.l.bf16 %v2570_v6 }
 0x222   : > { %886 = vmatpush.msrb.mxu1 %v865_v28 }
 0x223   : > { %v2935_v14 = vsel %vm1117_vm2, %v2920_v9, %v2918_v8  ;;  %vm2391_vm2 = vcmask 654848  }
 0x225   : > { %2574 = vrot.lane.b32.xlu0 %v2573_v30, %s2599_s21  ;;  %2564 = vrot.lane.b32.xlu1 %v2573_v30, %s2614_s23  ;;  %s2615_s21 = smov 95   ;;  %s3623_s23 = smov 120  }
 0x226   : > { %v805_v31 = vpop.permute.xlu0 %804  ;;  %v864_v32 = vld [vmem:[#allocation5 + $0x90] sm:$0xff] }
 0x227   : > { %807 = vst.msk [vmem:[#allocation5 + $0x30] sm:$0xff] %vm722_vm8, %v805_v31  ;;  %887 = vmatpush.msrb.mxu1 %v864_v32 }
 0x228   : > { %v872_v34 = vld [vmem:[#allocation5 + $0x110] sm:$0xff]  ;;  %v2863_v50 = vpop.permute.xlu1 %875 }
 0x229   : > { %888 = vmatpush.msrb.mxu1 %v863_v33  ;;  %915 = vmatpush.msra.mxu2 %v872_v34 }
 0x22b   : > { %889 = vmatpush.msrb.mxu1 %v862_v35 }
 0x22d   : > { %2579 = vrot.lane.b32.xlu1 %v2568_v1, %s3586_s29  ;;  %890 = vmatpush.msrb.mxu1 %v861_v37  ;;  %v937_v1 = vld [vmem:[%s3578_s10 + $0x78] sm:$0xff]  ;;  %s3216_s29 = scalar_lea.vmem %s3581_s13, %s2522_s14  ;;  %s3630_s14 = smov 8  }
 0x22e   : > { %v791_v38 = vpop.permute.xlu0 %790  ;;  %v858_v43 = vld [vmem:[#allocation5 + $0x30] sm:$0xff]  ;;  %969 = vmatpush.msrb.mxu3 %v937_v1 }
 0x22f   : > { %793 = vst.msk [vmem:[#allocation5 + $0x100] sm:$0xff] %vm722_vm8, %v791_v38  ;;  %891 = vmatpush.msrb.mxu1 %v860_v40 }
 0x230   : > { %970 = vmatpush.msrb.mxu3 %v935_v5 }
 0x231   : > { %892 = vmatpush.msrb.mxu1 %v859_v41 }
 0x232   : > { %971 = vmatpush.msrb.mxu3 %v933_v10 }
 0x233   : > { %893 = vmatpush.msrb.mxu1 %v858_v43 }
 0x234   : > { %972 = vmatpush.msrb.mxu3 %v931_v11 }
 0x235   : > { %894 = vmatpush.msrb.mxu1 %v857_v44  ;;  %v2585_v44 = vpop.permute.xlu2 %2584 }
 0x236   : > { %v871_v47 = vld [vmem:[#allocation5 + $0x100] sm:$0xff]  ;;  %973 = vmatpush.msrb.mxu3 %v929_v13 }
 0x237   : > { %895 = vmatpush.msrb.mxu1 %v856_v46  ;;  %916 = vmatpush.msra.mxu2 %v871_v47 }
 0x238   : > { %2495 = vmatmul.msk.f32.vlgmr.msra.gmra.mxu2 %vm660_vm1, %v711_v45  ;;  %974 = vmatpush.msrb.mxu3 %v927_v15 }
 0x239   : > { %896 = vmatpush.msrb.mxu1 %v855_v49  ;;  %v2986_v49 = vunpack.i.l.bf16 %v2585_v44 }
 0x23a   : > { %897 = vmatmul.f32.vlgmr.msrb.gmra.mxu1 %v710_v48  ;;  %975 = vmatpush.msrb.mxu3 %v925_v19  ;;  %v2984_v48 = vunpack.i.h.bf16 %v2585_v44 }
 0x23c   : > { %976 = vmatpush.msrb.mxu3 %v923_v23 }
 0x28f   : > { %v989_v55 = vpop.permute.xlu0 %988  ;;  %v991_v56 = vpop.permute.xlu1 %990 }
 0x290   : > { %998 = vst.msk [vmem:[#allocation2] sm:$0xff] %vm997_vm14, %v989_v55  ;;  %v2879_v57 = vsel %vm992_vm15, %v989_v55, %v991_v56 }
 0x291   : > { %1000 = vst.msk [vmem:[#allocation2 + $0x10] sm:$0xff] %vm992_vm15, %v991_v56  ;;  %1180 = vrot.lane.b32.xlu0 %v2879_v57, %s2615_s21  ;;  %v1123_v20 = vmul.f32 %v2935_v14, %v2879_v57 }
 0x297   : > { %v2896_v62 = vld [vmem:[#allocation2] sm:$0xff]  ;;  %v2565_v63 = vpop.permute.xlu1 %2564  ;;  %v2575_v24 = vpop.permute.xlu0 %2574 }
 0x298   : > { %v2898_v0 = vunpack.i.h.bf16 %v2565_v63  ;;  %1178 = vrot.lane.b32.xlu2 %v2896_v62, %s2615_s21  ;;  %v2905_v2 = vunpack.i.l.bf16 %v2565_v63  ;;  %v2940_v18 = vld [vmem:[#allocation2 + $0x10] sm:$0xff]  ;;  %v1122_v28 = vmul.f32 %v2920_v9, %v2896_v62  ;;  %v2955_v30 = vunpack.i.h.bf16 %v2575_v24 }
 0x299   : > { %v2957_v31 = vunpack.i.l.bf16 %v2575_v24  ;;  %v1124_v13 = vmul.f32 %v2918_v8, %v2940_v18 }
 0x29a   : > { %v2909_v3 = vsel %vm1148_vm0, %v2905_v2, %v2898_v0  ;;  %v1153_v4 = vmul.f32 %v2905_v2, %v2896_v62  ;;  %v1155_v33 = vmul.f32 %v2898_v0, %v2940_v18  ;;  %v1074_v10 = vmul.f32 %v2955_v30, %v2940_v18 }
 0x29b   : > { %v1154_v7 = vmul.f32 %v2909_v3, %v2879_v57  ;;  %v2965_v32 = vsel %vm660_vm1, %v2957_v31, %v2955_v30  ;;  %v1072_v15 = vmul.f32 %v2957_v31, %v2896_v62  ;;  %vm2182_vm0 = vcmask 171048  }
 0x29c   : > { %1159 = vrot.lane.b32.xlu0 %v1153_v4, %s2616_s19  ;;  %v1073_v35 = vmul.f32 %v2965_v32, %v2879_v57 }
 0x29d   : > { %1161 = vrot.lane.b32.xlu1 %v1154_v7, %s2616_s19 }
 0x29f   : > { %v2580_v34 = vpop.permute.xlu1 %2579 }
 0x2a0   : > { %v2971_v37 = vunpack.i.h.bf16 %v2580_v34  ;;  %v2973_v38 = vunpack.i.l.bf16 %v2580_v34 }
 0x2a2   : > { %v2980_v43 = vsel %vm1035_vm3, %v2973_v38, %v2971_v37  ;;  %v1040_v19 = vmul.f32 %v2973_v38, %v2896_v62  ;;  %vm2393_vm3 = vcmask 1048192  }
 0x2a3   : > { %v1041_v47 = vmul.f32 %v2980_v43, %v2879_v57 }
 0x2a4   : > { %1182 = vrot.lane.b32.xlu0 %v2940_v18, %s2615_s21 }
 0x2a5   : > { %1130 = vrot.lane.b32.xlu1 %v1123_v20, %s3608_s17  ;;  %v1202_v20 = vmul.f32 %v2986_v49, %v2896_v62 }
 0x2ac   : > { %1128 = vrot.lane.b32.xlu0 %v1122_v28, %s3608_s17 }
 0x2ad   : > { %1099 = vrot.lane.b32.xlu1 %v2879_v57, %s2606_s30 }
 0x2b4   : > { %1163 = vrot.lane.b32.xlu0 %v1155_v33, %s2616_s19 }
 0x2b5   : > { %1080 = vrot.lane.b32.xlu1 %v1073_v35, %s2603_s27 }
 0x2b7   : > { %v898_v40 = vpop.f32.mrf.mxu1 }
 0x2b8   : > { %v899_v41 = vadd.f32 %v898_v40, %v2863_v50  ;;  %v2998_v50 = vsel %vm480_vm13, %v2986_v49, %v2984_v48  ;;  %vm1019_vm13 = vcmask 1039360  }
 0x2b9   : > { %v1203_v52 = vmul.f32 %v2998_v50, %v2879_v57 }
 0x2bb   : > { %v918_v45 = vpop.f32.mrf.mxu2 }
 0x2bc   : > { %v919_v46 = vadd.f32 %v918_v45, %v899_v41  ;;  %1097 = vrot.lane.b32.xlu0 %v2896_v62, %s2606_s30 }
 0x2bd   : > { %1048 = vrot.lane.b32.xlu1 %v1041_v47, %s2609_s16 }
 0x2be   : > { %v2990_v51 = vmax.f32 %v919_v46, 0.0 }
 0x2c0   : > { %2496 = vmatmul.msk.f32.vlgmr.msra.gmra.mxu3 %vm722_vm8, %v2990_v51 }
 0x2c5   : > { %1210 = vrot.lane.b32.xlu1 %v1203_v52, %s2617_s18 }
 0x2c8   : > { %2497 = vmatmul.msk.f32.vlgmr.msrb.gmra.mxu3 %vm722_vm8, %v2990_v51 }
 0x2f2   : > { %v1179_v53 = vpop.permute.xlu2 %1178 }
 0x303   : > { %v1181_v54 = vpop.permute.xlu0 %1180 }
 0x304   : > { %v3006_v55 = vsel %vm1184_vm4, %v1179_v53, %v1181_v54 }
 0x305   : > { %1189 = vst [vmem:[#allocation5 + $0xe0] sm:$0xff] %v3006_v55 }
 0x30e   : > { %v1160_v56 = vpop.permute.xlu0 %1159 }
 0x30f   : > { %v1162_v58 = vpop.permute.xlu1 %1161 }
 0x310   : > { %v3010_v59 = vsel %vm1165_vm5, %v1160_v56, %v1162_v58 }
 0x311   : > { %1170 = vst [vmem:[#allocation5 + $0xc0] sm:$0xff] %v3010_v59 }
 0x316   : > { %v1183_v60 = vpop.permute.xlu0 %1182 }
 0x317   : > { %v3014_v61 = vsel %vm1184_vm4, %v1181_v54, %v1183_v60  ;;  %v1131_v63 = vpop.permute.xlu1 %1130 }
 0x31e   : > { %v1129_v1 = vpop.permute.xlu0 %1128 }
 0x31f   : > { %v3017_v4 = vsel %vm1134_vm6, %v1129_v1, %v1131_v63  ;;  %v3078_v54 = vpop.permute.xlu1 %1099  ;;  %v2500_v1 = vld [vmem:[%s3576_s8 + $0x20] sm:$0xff] }
 0x320   : > { %1139 = vst [vmem:[#allocation5 + $0xa0] sm:$0xff] %v3017_v4 }
 0x326   : > { %v1164_v5 = vpop.permute.xlu0 %1163 }
 0x327   : > { %v3021_v6 = vsel %vm1165_vm5, %v1162_v58, %v1164_v5  ;;  %v3089_v60 = vpop.permute.xlu1 %1080 }
 0x32e   : > { %v3057_v34 = vpop.permute.xlu0 %1097 }
 0x32f   : > { %v3100_v5 = vpop.permute.xlu1 %1048 }
 0x343   : > { %v958_v7 = vpop.f32.mrf.mxu3 }
 0x344   : > { %1223 = vrot.lane.b32.xlu2 %v958_v7, %s2613_s22 }
 0x34b   : > { %v978_v11 = vpop.f32.mrf.mxu3 }
 0x34c   : > { %1082 = vrot.lane.b32.xlu2 %v1074_v10, %s2603_s27  ;;  %1225 = vrot.lane.b32.xlu0 %v978_v11, %s2613_s22 }
 0x354   : > { %1132 = vrot.lane.b32.xlu0 %v1124_v13, %s3608_s17  ;;  %v3110_v13 = vpop.permute.xlu1 %1210 }
 0x35c   : > { %1078 = vrot.lane.b32.xlu0 %v1072_v15, %s2603_s27 }
 0x364   : > { %1101 = vrot.lane.b32.xlu0 %v2940_v18, %s2606_s30 }
 0x36c   : > { %1046 = vrot.lane.b32.xlu0 %v1040_v19, %s2609_s16  ;;  %v1042_v19 = vmul.f32 %v2971_v37, %v2940_v18 }
 0x374   : > { %1208 = vrot.lane.b32.xlu0 %v1202_v20, %s2617_s18 }
 0x39e   : > { %v1224_v23 = vpop.permute.xlu2 %1223 }
 0x39f   : > { %1231 = vst.msk [vmem:[#allocation2] sm:$0xff] %vm997_vm14, %v1224_v23 }
 0x3a6   : > { %v3043_v24 = vld [vmem:[#allocation2] sm:$0xff] }
 0x3a7   : > { %1246 = vrot.lane.b32.xlu2 %v3043_v24, %s3616_s28  ;;  %1366 = vrot.lane.b32.xlu0 %v3043_v24, %s2615_s21  ;;  %v1381_v28 = vmul.f32 %v2986_v49, %v3043_v24  ;;  %v1342_v33 = vmul.f32 %v2905_v2, %v3043_v24  ;;  %v1321_v35 = vmul.f32 %v2920_v9, %v3043_v24 }
 0x3a8   : > { %1306 = vrot.lane.b32.xlu1 %v3043_v24, %s2606_s30  ;;  %v1282_v41 = vmul.f32 %v2957_v31, %v3043_v24  ;;  %v1261_v47 = vmul.f32 %v2973_v38, %v3043_v24 }
 0x3af   : > { %1387 = vrot.lane.b32.xlu0 %v1381_v28, %s2617_s18 }
 0x3b0   : > { %1348 = vrot.lane.b32.xlu1 %v1342_v33, %s2616_s19 }
 0x3b8   : > { %1327 = vrot.lane.b32.xlu1 %v1321_v35, %s3608_s17 }
 0x3be   : > { %v1226_v40 = vpop.permute.xlu0 %1225 }
 0x3bf   : > { %v3065_v44 = vsel %vm992_vm15, %v1224_v23, %v1226_v40  ;;  %1233 = vst.msk [vmem:[#allocation2 + $0x10] sm:$0xff] %vm992_vm15, %v1226_v40 }
 0x3c0   : > { %1288 = vrot.lane.b32.xlu1 %v1282_v41, %s2603_s27  ;;  %1248 = vrot.lane.b32.xlu0 %v3065_v44, %s3616_s28  ;;  %v1382_v10 = vmul.f32 %v3065_v44, %v2998_v50  ;;  %v1343_v33 = vmul.f32 %v3065_v44, %v2909_v3  ;;  %v1322_v35 = vmul.f32 %v3065_v44, %v2935_v14  ;;  %v3133_v41 = vpop.permute.xlu2 %1082 }
 0x3c1   : > { %v1283_v40 = vmul.f32 %v3065_v44, %v2965_v32 }
 0x3c6   : > { %v1133_v45 = vpop.permute.xlu0 %1132  ;;  %v1362_v46 = vld [vmem:[#allocation2 + $0x10] sm:$0xff] }
 0x3c7   : > { %v3074_v52 = vsel %vm1134_vm6, %v1131_v63, %v1133_v45  ;;  %1370 = vrot.lane.b32.xlu2 %v1362_v46, %s2615_s21  ;;  %v1263_v53 = vmul.f32 %v2971_v37, %v1362_v46  ;;  %v1383_v58 = vmul.f32 %v2984_v48, %v1362_v46  ;;  %v1344_v11 = vmul.f32 %v2898_v0, %v1362_v46 }
 0x3c8   : > { %1267 = vrot.lane.b32.xlu1 %v1261_v47, %s2609_s16  ;;  %v1323_v23 = vmul.f32 %v2918_v8, %v1362_v46  ;;  %v1284_v28 = vmul.f32 %v2955_v30, %v1362_v46  ;;  %v1262_v45 = vmul.f32 %v3065_v44, %v2980_v43 }
 0x3c9   : > { %1271 = vrot.lane.b32.xlu0 %v1263_v53, %s2609_s16 }
 0x3ce   : > { %v3082_v56 = vpop.permute.xlu0 %1078 }
 0x3cf   : > { %1310 = vrot.lane.b32.xlu2 %v1362_v46, %s2606_s30 }
 0x3d0   : > { %1368 = vrot.lane.b32.xlu1 %v3065_v44, %s2615_s21 }
 0x3d1   : > { %1391 = vrot.lane.b32.xlu0 %v1383_v58, %s2617_s18 }
 0x3d6   : > { %v3091_v63 = vpop.permute.xlu0 %1101 }
 0x3d7   : > { %1015 = vrot.lane.b32.xlu2 %v2879_v57, %s3616_s28 }
 0x3d8   : > { %1013 = vrot.lane.b32.xlu1 %v2896_v62, %s3616_s28 }
 0x3d9   : > { %1437 = vperm.xlu0 %2560, %v2500_v1  }
 0x3de   : > { %v3102_v7 = vpop.permute.xlu0 %1046 }
 0x3df   : > { %1308 = vrot.lane.b32.xlu2 %v3065_v44, %s2606_s30 }
 0x3e0   : > { %1389 = vrot.lane.b32.xlu1 %v1382_v10, %s2617_s18  ;;  %v1204_v10 = vmul.f32 %v2984_v48, %v2940_v18 }
 0x3e6   : > { %v1209_v15 = vpop.permute.xlu0 %1208 }
 0x3e7   : > { %v1215_v20 = vsel %vm1214_vm9, %v1209_v15, %v3110_v13  ;;  %1352 = vrot.lane.b32.xlu2 %v1344_v11, %s2616_s19 }
 0x3e8   : > { %1219 = vst [vmem:[#allocation5 + $0x100] sm:$0xff] %v1215_v20  ;;  %1050 = vrot.lane.b32.xlu1 %v1042_v19, %s2609_s16 }
 0x3ef   : > { %1331 = vrot.lane.b32.xlu2 %v1323_v23, %s3608_s17 }
 0x3f0   : > { %1017 = vrot.lane.b32.xlu1 %v2940_v18, %s3616_s28 }
 0x3f7   : > { %1292 = vrot.lane.b32.xlu2 %v1284_v28, %s2603_s27 }
 0x3ff   : > { %1350 = vrot.lane.b32.xlu2 %v1343_v33, %s2616_s19 }
 0x401   : > { %v3138_v47 = vpop.permute.xlu2 %1246 }
 0x407   : > { %1329 = vrot.lane.b32.xlu2 %v1322_v35, %s3608_s17 }
 0x40f   : > { %1290 = vrot.lane.b32.xlu2 %v1283_v40, %s2603_s27 }
 0x417   : > { %1269 = vrot.lane.b32.xlu2 %v1262_v45, %s2609_s16 }
 0x419   : > { %v1367_v19 = vpop.permute.xlu0 %1366 }
 0x41a   : > { %v1307_v53 = vpop.permute.xlu1 %1306 }
 0x41f   : > { %1250 = vrot.lane.b32.xlu2 %v1362_v46, %s3616_s28 }
 0x421   : > { %v1371_v58 = vpop.permute.xlu2 %1370  ;;  %v1388_v33 = vpop.permute.xlu0 %1387 }
 0x422   : > { %v1349_v1 = vpop.permute.xlu1 %1348 }
 0x427   : > { %1212 = vrot.lane.b32.xlu2 %v1204_v10, %s2617_s18 }
 0x429   : > { %v1311_v11 = vpop.permute.xlu2 %1310 }
 0x42a   : > { %v1328_v15 = vpop.permute.xlu1 %1327 }
 0x431   : > { %v3144_v23 = vpop.permute.xlu2 %1015 }
 0x432   : > { %v1289_v28 = vpop.permute.xlu1 %1288  ;;  %v3148_v16 = vpop.permute.xlu0 %1248 }
 0x439   : > { %v1309_v35 = vpop.permute.xlu2 %1308 }
 0x43a   : > { %v1312_v40 = vsel %vm1103_vm10, %v1307_v53, %v1309_v35  ;;  %v1313_v46 = vsel %vm1103_vm10, %v1309_v35, %v1311_v11  ;;  %v1268_v45 = vpop.permute.xlu1 %1267 }
 0x43b   : > { %1316 = vst [vmem:[#allocation5 + $0x90] sm:$0xff] %v1312_v40  ;;  %v1272_v53 = vpop.permute.xlu0 %1271 }
 0x441   : > { %v1353_v18 = vpop.permute.xlu2 %1352 }
 0x442   : > { %v1369_v26 = vpop.permute.xlu1 %1368 }
 0x443   : > { %v1372_v10 = vsel %vm1184_vm4, %v1367_v19, %v1369_v26  ;;  %v1373_v12 = vsel %vm1184_vm4, %v1369_v26, %v1371_v58  ;;  %v1392_v36 = vpop.permute.xlu0 %1391 }
 0x444   : > { %1376 = vst [vmem:[#allocation5 + $0xf0] sm:$0xff] %v1372_v10  ;;  %1443 = vmatpush.msrb.mxu2 %v1372_v10  ;;  %1483 = vmatpush.msra.mxu0 %v1373_v12 }
 0x446   : > { %1444 = vmatpush.msrb.mxu2 %v3006_v55  ;;  %1484 = vmatpush.msra.mxu0 %v3014_v61  ;;  %v1105_v61 = vsel %vm1103_vm10, %v3078_v54, %v3091_v63 }
 0x449   : > { %v1332_v25 = vpop.permute.xlu2 %1331 }
 0x44a   : > { %v1014_v11 = vpop.permute.xlu1 %1013 }
 0x451   : > { %v1293_v35 = vpop.permute.xlu2 %1292 }
 0x452   : > { %v1390_v42 = vpop.permute.xlu1 %1389 }
 0x453   : > { %v1393_v39 = vsel %vm1214_vm9, %v1388_v33, %v1390_v42  ;;  %v1394_v29 = vsel %vm1214_vm9, %v1390_v42, %v1392_v36  ;;  %v2499_v36 = vld [vmem:[%s3574_s6 + $0x18] sm:$0xff] }
 0x454   : > { %1397 = vst [vmem:[#allocation5 + $0x110] sm:$0xff] %v1393_v39  ;;  %1477 = vmatpush.msra.mxu3 %v1393_v39 }
 0x456   : > { %1478 = vmatpush.msra.mxu3 %v1215_v20 }
 0x457   : > { %2501 = vmatmul.msk.f32.vlgmr.msra.gmra.mxu3 %vm660_vm1, %v2499_v36 }
 0x458   : > { %1517 = vmatpush.msrb.mxu3 %v1394_v29 }
 0x459   : > { %v1351_v26 = vpop.permute.xlu2 %1350 }
 0x45a   : > { %v1354_v12 = vsel %vm1165_vm5, %v1349_v1, %v1351_v26  ;;  %v1355_v55 = vsel %vm1165_vm5, %v1351_v26, %v1353_v18 }
 0x45b   : > { %1358 = vst [vmem:[#allocation5 + $0xd0] sm:$0xff] %v1354_v12  ;;  %1445 = vmatpush.msrb.mxu2 %v1354_v12  ;;  %1485 = vmatpush.msra.mxu0 %v1355_v55 }
 0x45d   : > { %1446 = vmatpush.msrb.mxu2 %v3010_v59  ;;  %1486 = vmatpush.msra.mxu0 %v3021_v6  ;;  %v1104_v59 = vsel %vm1103_vm10, %v3057_v34, %v3078_v54  ;;  %v1085_v34 = vsel %vm1084_vm11, %v3082_v56, %v3089_v60  ;;  %v1051_v54 = vpop.permute.xlu1 %1050  ;;  %v1252_v56 = vsel %vm1019_vm13, %v3138_v47, %v3148_v16  ;;  %v2498_v47 = vld [vmem:[%s3574_s6 + $0x10] sm:$0xff] }
 0x45e   : > { %v1054_v1 = vsel %vm1052_vm12, %v3100_v5, %v1051_v54 }
 0x461   : > { %v1330_v39 = vpop.permute.xlu2 %1329 }
 0x462   : > { %v1333_v29 = vsel %vm1134_vm6, %v1328_v15, %v1330_v39  ;;  %v1334_v42 = vsel %vm1134_vm6, %v1330_v39, %v1332_v25 }
 0x463   : > { %1337 = vst [vmem:[#allocation5 + $0xb0] sm:$0xff] %v1333_v29  ;;  %1447 = vmatpush.msrb.mxu2 %v1333_v29  ;;  %1487 = vmatpush.msra.mxu0 %v1334_v42 }
 0x465   : > { %1448 = vmatpush.msrb.mxu2 %v3017_v4  ;;  %1488 = vmatpush.msra.mxu0 %v3074_v52  ;;  %v1086_v52 = vsel %vm1084_vm11, %v3089_v60, %v3133_v41  ;;  %v1053_v41 = vsel %vm1052_vm12, %v3102_v7, %v3100_v5  ;;  %v1020_v60 = vsel %vm1019_vm13, %v1014_v11, %v3144_v23  ;;  %v1018_v15 = vpop.permute.xlu1 %1017 }
 0x466   : > { %v1003_v5 = vmul.f32 %v2896_v62, %v2841_v21  ;;  %v1021_v33 = vsel %vm1019_vm13, %v3144_v23, %v1018_v15 }
 0x467   : > { %1449 = vmatpush.msrb.mxu2 %v1312_v40  ;;  %1489 = vmatpush.msra.mxu0 %v1313_v46  ;;  %v1438_v46 = vpop.permute.xlu0 %1437 }
 0x469   : > { %v1291_v6 = vpop.permute.xlu2 %1290  ;;  %1450 = vmatpush.msrb.mxu2 %v1104_v59  ;;  %1490 = vmatpush.msra.mxu0 %v1105_v61 }
 0x46a   : > { %v1294_v25 = vsel %vm1084_vm11, %v1289_v28, %v1291_v6  ;;  %v1295_v4 = vsel %vm1084_vm11, %v1291_v6, %v1293_v35  ;;  %v1236_v28 = vmul.f32 %v3043_v24, %v2841_v21  ;;  %v1237_v24 = vmul.f32 %v3065_v44, %v2844_v22 }
 0x46b   : > { %1451 = vmatpush.msrb.mxu2 %v1294_v25  ;;  %1491 = vmatpush.msra.mxu0 %v1295_v4 }
 0x46d   : > { %1452 = vmatpush.msrb.mxu2 %v1085_v34  ;;  %1492 = vmatpush.msra.mxu0 %v1086_v52 }
 0x471   : > { %v1270_v63 = vpop.permute.xlu2 %1269 }
 0x472   : > { %v1273_v20 = vsel %vm1052_vm12, %v1268_v45, %v1270_v63  ;;  %v1274_v58 = vsel %vm1052_vm12, %v1270_v63, %v1272_v53 }
 0x473   : > { %1453 = vmatpush.msrb.mxu2 %v1273_v20  ;;  %1493 = vmatpush.msra.mxu0 %v1274_v58 }
 0x475   : > { %1454 = vmatpush.msrb.mxu2 %v1053_v41  ;;  %1494 = vmatpush.msra.mxu0 %v1054_v1 }
 0x477   : > { %1455 = vmatpush.msrb.mxu2 %v1252_v56 }
 0x479   : > { %v1251_v19 = vpop.permute.xlu2 %1250  ;;  %1456 = vmatpush.msrb.mxu2 %v1020_v60 }
 0x47a   : > { %v1253_v7 = vsel %vm1019_vm13, %v3148_v16, %v1251_v19  ;;  %v1004_v16 = vmul.f32 %v2879_v57, %v2844_v22 }
 0x47b   : > { %1457 = vmatpush.msrb.mxu2 %v1236_v28  ;;  %1495 = vmatpush.msra.mxu0 %v1253_v7 }
 0x47d   : > { %1458 = vmatpush.msrb.mxu2 %v1003_v5  ;;  %1496 = vmatpush.msra.mxu0 %v1021_v33 }
 0x47e   : > { %1459 = vmatmul.f32.vlgmr.msrb.gmra.mxu2 %v2498_v47 }
 0x47f   : > { %1497 = vmatpush.msra.mxu0 %v1237_v24  ;;  %v1781_v24 = vld [vmem:[%s3579_s11 + $0x78] sm:$0xff] }
 0x480   : > { %1805 = vmatpush.msra.mxu2 %v1781_v24 }
 0x481   : > { %v1213_v62 = vpop.permute.xlu2 %1212  ;;  %1498 = vmatpush.msra.mxu0 %v1004_v16 }
 0x482   : > { %v1216_v40 = vsel %vm1214_vm9, %v3110_v13, %v1213_v62  ;;  %1499 = vmatmul.f32.vlgmr.msra.gmra.mxu0 %v2498_v47 }
 0x483   : > { %1518 = vmatpush.msrb.mxu3 %v1216_v40  ;;  %v1780_v40 = vld [vmem:[%s3579_s11 + $0x70] sm:$0xff] }
 0x484   : > { %2502 = vmatmul.msk.f32.vlgmr.msrb.gmra.mxu3 %vm660_vm1, %v2499_v36  ;;  %1806 = vmatpush.msra.mxu2 %v1780_v40 }
 0x4da   : > { %v1480_v23 = vpop.f32.mrf.mxu3 }
 0x4ff   : > { %v1500_v44 = vpop.f32.mrf.mxu0 }
 0x500   : > { %v1501_v57 = vadd.f32 %v1500_v44, %v1438_v46 }
 0x501   : > { %v1460_v45 = vpop.f32.mrf.mxu2 }
 0x502   : > { %v1461_v18 = vadd.f32 %v1460_v45, %v1438_v46  ;;  %v1778_v45 = vld [vmem:[%s3579_s11 + $0x60] sm:$0xff] }
 0x504   : > { %v1481_v10 = vadd.f32 %v1480_v23, %v1461_v18  ;;  %v1779_v23 = vld [vmem:[%s3579_s11 + $0x68] sm:$0xff] }
 0x505   : > { %1807 = vmatpush.msra.mxu2 %v1779_v23 }
 0x506   : > { %v1523_v13 = vmax.f32 %v1481_v10, 0.0  ;;  %v1777_v10 = vld [vmem:[%s3579_s11 + $0x58] sm:$0xff] }
 0x507   : > { %v1520_v53 = vpop.f32.mrf.mxu3  ;;  %1808 = vmatpush.msra.mxu2 %v1778_v45  ;;  %v3621_v45 = vld [vmem:[#allocation10_spill] sm:$0xff] }
 0x508   : > { %2384 = vst [vmem:[%s3216_s29] sm:$0xff] %v1523_v13  ;;  %v1521_v11 = vadd.f32 %v1520_v53, %v1501_v57  ;;  %1528 = vrot.lane.b32.xlu1 %v1523_v13, %s2613_s22  ;;  %v1776_v53 = vld [vmem:[%s3579_s11 + $0x50] sm:$0xff] }
 0x509   : > { %1809 = vmatpush.msra.mxu2 %v1777_v10  ;;  %v3622_v10 = vld [vmem:[#allocation11_spill] sm:$0xff] }
 0x50a   : > { %v1524_v35 = vmax.f32 %v1521_v11, 0.0  ;;  %v1775_v11 = vld [vmem:[%s3579_s11 + $0x48] sm:$0xff] }
 0x50b   : > { %1810 = vmatpush.msra.mxu2 %v1776_v53  ;;  %v3624_v53 = vld [vmem:[#allocation9_spill] sm:$0xff] }
 0x50c   : > { %2385 = vst [vmem:[%s3216_s29 + $0x8] sm:$0xff] %v1524_v35  ;;  %1530 = vrot.lane.b32.xlu2 %v1524_v35, %s2613_s22  ;;  %s2622_s22 = smov 123  }
 0x50d   : > { %1811 = vmatpush.msra.mxu2 %v1775_v11 }
 0x566   : > { %v1531_v26 = vpop.permute.xlu2 %1530 }
 0x567   : > { %1538 = vst.msk [vmem:[#allocation2 + $0x10] sm:$0xff] %vm992_vm15, %v1531_v26 }
 0x56e   : > { %v1667_v12 = vld [vmem:[#allocation2 + $0x10] sm:$0xff] }
 0x56f   : > { %1675 = vrot.lane.b32.xlu1 %v1667_v12, %s2615_s21  ;;  %v1688_v39 = vmul.f32 %v2984_v48, %v1667_v12  ;;  %v1649_v61 = vmul.f32 %v2898_v0, %v1667_v12 }
 0x577   : > { %1615 = vrot.lane.b32.xlu1 %v1667_v12, %s2606_s30 }
 0x57a   : > { %v1529_v55 = vpop.permute.xlu1 %1528 }
 0x57b   : > { %v1532_v36 = vsel %vm992_vm15, %v1529_v55, %v1531_v26  ;;  %1536 = vst.msk [vmem:[#allocation2] sm:$0xff] %vm997_vm14, %v1529_v55  ;;  %v1774_v26 = vld [vmem:[%s3579_s11 + $0x40] sm:$0xff]  ;;  %vm1722_vm14 = vcmask 588800  }
 0x57c   : > { %1673 = vrot.lane.b32.xlu0 %v1532_v36, %s2615_s21  ;;  %v3230_v29 = vmul.f32 %v1532_v36, %v2844_v22  ;;  %v1628_v22 = vmul.f32 %v2918_v8, %v1667_v12  ;;  %v1687_v0 = vmul.f32 %v1532_v36, %v2998_v50  ;;  %v1627_v25 = vmul.f32 %v1532_v36, %v2935_v14 }
 0x57d   : > { %v1588_v8 = vmul.f32 %v1532_v36, %v2965_v32  ;;  %v1567_v50 = vmul.f32 %v1532_v36, %v2980_v43  ;;  %1812 = vmatpush.msra.mxu2 %v1774_v26 }
 0x57f   : > { %1696 = vrot.lane.b32.xlu1 %v1688_v39, %s2617_s18 }
 0x582   : > { %v1665_v42 = vld [vmem:[#allocation2] sm:$0xff] }
 0x583   : > { %1671 = vrot.lane.b32.xlu2 %v1665_v42, %s2615_s21  ;;  %v3236_v59 = vmul.f32 %v1665_v42, %v2841_v21  ;;  %v1686_v48 = vmul.f32 %v2986_v49, %v1665_v42  ;;  %v1647_v6 = vmul.f32 %v2905_v2, %v1665_v42  ;;  %v1648_v21 = vmul.f32 %v1532_v36, %v2909_v3  ;;  %s3617_s21 = smov 9  }
 0x584   : > { %1613 = vrot.lane.b32.xlu0 %v1532_v36, %s2606_s30  ;;  %v1626_v49 = vmul.f32 %v2920_v9, %v1665_v42  ;;  %v1589_v2 = vmul.f32 %v2955_v30, %v1667_v12  ;;  %v1587_v3 = vmul.f32 %v2957_v31, %v1665_v42  ;;  %v1568_v9 = vmul.f32 %v2971_v37, %v1667_v12  ;;  %v2505_v30 = vld [vmem:[%s3576_s8 + $0x28] sm:$0xff] }
 0x585   : > { %1543 = vst [vmem:[#allocation5] sm:$0xff] %v3236_v59  ;;  %v1566_v14 = vmul.f32 %v2973_v38, %v1665_v42 }
 0x587   : > { %1657 = vrot.lane.b32.xlu1 %v1649_v61, %s2616_s19  ;;  %v1772_v61 = vld [vmem:[%s3579_s11 + $0x30] sm:$0xff] }
 0x58b   : > { %1611 = vrot.lane.b32.xlu2 %v1665_v42, %s2606_s30 }
 0x58c   : > { %1692 = vrot.lane.b32.xlu0 %v1686_v48, %s2617_s18  ;;  %v1771_v48 = vld [vmem:[%s3579_s11 + $0x28] sm:$0xff] }
 0x58f   : > { %1636 = vrot.lane.b32.xlu1 %v1628_v22, %s3608_s17  ;;  %v1770_v22 = vld [vmem:[%s3579_s11 + $0x20] sm:$0xff] }
 0x593   : > { %1653 = vrot.lane.b32.xlu2 %v1647_v6, %s2616_s19 }
 0x594   : > { %1655 = vrot.lane.b32.xlu0 %v1648_v21, %s2616_s19  ;;  %s3619_s19 = smov 118  }
 0x597   : > { %1694 = vrot.lane.b32.xlu1 %v1687_v0, %s2617_s18  ;;  %v1769_v0 = vld [vmem:[%s3579_s11 + $0x18] sm:$0xff]  ;;  %s3620_s18 = smov 119  }
 0x59b   : > { %1632 = vrot.lane.b32.xlu2 %v1626_v49, %s3608_s17 }
 0x59c   : > { %1634 = vrot.lane.b32.xlu0 %v1627_v25, %s3608_s17  ;;  %s2623_s17 = smov 124  }
 0x59f   : > { %1597 = vrot.lane.b32.xlu1 %v1589_v2, %s2603_s27  ;;  %v1525_v2 = vld [vmem:[%s3575_s7] sm:$0xff] }
 0x5a3   : > { %1593 = vrot.lane.b32.xlu2 %v1587_v3, %s2603_s27  ;;  %v1797_v3 = vld [vmem:[%s3579_s11 + $0xf8] sm:$0xff] }
 0x5a4   : > { %1595 = vrot.lane.b32.xlu0 %v1588_v8, %s2603_s27  ;;  %v1768_v8 = vld [vmem:[%s3579_s11 + $0x10] sm:$0xff] }
 0x5a7   : > { %1576 = vrot.lane.b32.xlu1 %v1568_v9, %s2609_s16  ;;  %v1796_v9 = vld [vmem:[%s3579_s11 + $0xf0] sm:$0xff] }
 0x5ab   : > { %1572 = vrot.lane.b32.xlu2 %v1566_v14, %s2609_s16  ;;  %v1767_v14 = vld [vmem:[%s3579_s11 + $0x8] sm:$0xff] }
 0x5ac   : > { %1574 = vrot.lane.b32.xlu0 %v1567_v50, %s2609_s16  ;;  %v1793_v50 = vld [vmem:[%s3579_s11 + $0xd8] sm:$0xff] }
 0x5b3   : > { %1551 = vrot.lane.b32.xlu2 %v1665_v42, %s3616_s28 }
 0x5b4   : > { %1553 = vrot.lane.b32.xlu0 %v1532_v36, %s3616_s28  ;;  %v1773_v36 = vld [vmem:[%s3579_s11 + $0x38] sm:$0xff] }
 0x5b5   : > { %1813 = vmatpush.msra.mxu2 %v1773_v36 }
 0x5b7   : > { %1814 = vmatpush.msra.mxu2 %v1772_v61 }
 0x5b9   : > { %1815 = vmatpush.msra.mxu2 %v1771_v48 }
 0x5bb   : > { %1555 = vrot.lane.b32.xlu2 %v1667_v12, %s3616_s28  ;;  %1816 = vmatpush.msra.mxu2 %v1770_v22 }
 0x5bc   : > { %1802 = vperm.xlu0 %2560, %v2505_v30   ;;  %v1792_v30 = vld [vmem:[%s3579_s11 + $0xd0] sm:$0xff] }
 0x5bd   : > { %1817 = vmatpush.msra.mxu2 %v1769_v0 }
 0x5bf   : > { %1818 = vmatpush.msra.mxu2 %v1768_v8 }
 0x5c1   : > { %1819 = vmatpush.msra.mxu2 %v1767_v14 }
 0x5c3   : > { %1912 = vrot.lane.b32.xlu2 %v2990_v51, %s3617_s21 }
 0x5dd   : > { %v1672_v31 = vpop.permute.xlu2 %1671 }
 0x5e1   : > { %v1676_v32 = vpop.permute.xlu1 %1675 }
 0x5e5   : > { %v1612_v38 = vpop.permute.xlu2 %1611 }
 0x5e9   : > { %v1616_v37 = vpop.permute.xlu1 %1615 }
 0x5ed   : > { %v1654_v54 = vpop.permute.xlu2 %1653 }
 0x5ee   : > { %v1674_v43 = vpop.permute.xlu0 %1673 }
 0x5ef   : > { %v1677_v4 = vsel %vm1184_vm4, %v1672_v31, %v1674_v43  ;;  %v1678_v52 = vsel %vm1184_vm4, %v1674_v43, %v1676_v32  ;;  %v1791_v31 = vld [vmem:[%s3579_s11 + $0xc8] sm:$0xff]  ;;  %v1790_v32 = vld [vmem:[%s3579_s11 + $0xc0] sm:$0xff] }
 0x5f0   : > { %1681 = vst [vmem:[#allocation5 + $0x70] sm:$0xff] %v1677_v4  ;;  %v1787_v43 = vld [vmem:[%s3579_s11 + $0xa8] sm:$0xff] }
 0x5f1   : > { %v1697_v34 = vpop.permute.xlu1 %1696 }
 0x5f5   : > { %v1633_v51 = vpop.permute.xlu2 %1632 }
 0x5f6   : > { %v1614_v63 = vpop.permute.xlu0 %1613 }
 0x5f7   : > { %v1617_v20 = vsel %vm1103_vm10, %v1612_v38, %v1614_v63  ;;  %v1618_v58 = vsel %vm1103_vm10, %v1614_v63, %v1616_v37  ;;  %v1789_v37 = vld [vmem:[%s3579_s11 + $0xb8] sm:$0xff]  ;;  %v1788_v38 = vld [vmem:[%s3579_s11 + $0xb0] sm:$0xff]  ;;  %v1783_v63 = vld [vmem:[%s3579_s11 + $0x88] sm:$0xff] }
 0x5f8   : > { %1621 = vst [vmem:[#allocation5 + $0x40] sm:$0xff] %v1617_v20 }
 0x5f9   : > { %v1658_v41 = vpop.permute.xlu1 %1657 }
 0x5fd   : > { %v1594_v28 = vpop.permute.xlu2 %1593 }
 0x5fe   : > { %v1693_v1 = vpop.permute.xlu0 %1692 }
 0x601   : > { %v1637_v56 = vpop.permute.xlu1 %1636 }
 0x605   : > { %v1573_v46 = vpop.permute.xlu2 %1572 }
 0x606   : > { %v1656_v60 = vpop.permute.xlu0 %1655 }
 0x607   : > { %v1659_v15 = vsel %vm1165_vm5, %v1654_v54, %v1656_v60  ;;  %v1660_v19 = vsel %vm1165_vm5, %v1656_v60, %v1658_v41  ;;  %v1784_v54 = vld [vmem:[%s3579_s11 + $0x90] sm:$0xff] }
 0x608   : > { %1663 = vst [vmem:[#allocation5 + $0x60] sm:$0xff] %v1659_v15 }
 0x609   : > { %v1695_v7 = vpop.permute.xlu1 %1694 }
 0x60a   : > { %v1698_v5 = vsel %vm1214_vm9, %v1693_v1, %v1695_v7  ;;  %v1699_v47 = vsel %vm1214_vm9, %v1695_v7, %v1697_v34  ;;  %v1785_v34 = vld [vmem:[%s3579_s11 + $0x98] sm:$0xff] }
 0x60b   : > { %1702 = vst [vmem:[#allocation5 + $0x80] sm:$0xff] %v1698_v5  ;;  %1733 = vmatpush.msra.mxu1 %v1698_v5  ;;  %1753 = vmatpush.msra.mxu3 %v1699_v47 }
 0x60d   : > { %1734 = vmatpush.msra.mxu1 %v1677_v4  ;;  %1754 = vmatpush.msra.mxu3 %v1678_v52  ;;  %v1552_v35 = vpop.permute.xlu2 %1551  ;;  %v1766_v4 = vld [vmem:[%s3579_s11] sm:$0xff] }
 0x60e   : > { %v1635_v33 = vpop.permute.xlu0 %1634  ;;  %v1786_v52 = vld [vmem:[%s3579_s11 + $0xa0] sm:$0xff]  ;;  %1820 = vmatpush.msra.mxu2 %v1766_v4 }
 0x60f   : > { %v1638_v16 = vsel %vm1134_vm6, %v1633_v51, %v1635_v33  ;;  %v1639_v62 = vsel %vm1134_vm6, %v1635_v33, %v1637_v56  ;;  %1735 = vmatpush.msra.mxu1 %v1659_v15  ;;  %1755 = vmatpush.msra.mxu3 %v1660_v19 }
 0x610   : > { %1642 = vst [vmem:[#allocation5 + $0x50] sm:$0xff] %v1638_v16 }
 0x611   : > { %1736 = vmatpush.msra.mxu1 %v1638_v16  ;;  %1756 = vmatpush.msra.mxu3 %v1639_v62  ;;  %v1598_v18 = vpop.permute.xlu1 %1597  ;;  %v3618_v62 = vld [vmem:[#allocation8_spill] sm:$0xff] }
 0x613   : > { %1737 = vmatpush.msra.mxu1 %v1617_v20  ;;  %1757 = vmatpush.msra.mxu3 %v1618_v58  ;;  %v1782_v20 = vld [vmem:[%s3579_s11 + $0x80] sm:$0xff] }
 0x615   : > { %v1556_v6 = vpop.permute.xlu2 %1555 }
 0x616   : > { %v1596_v44 = vpop.permute.xlu0 %1595 }
 0x617   : > { %v1599_v57 = vsel %vm1084_vm11, %v1594_v28, %v1596_v44  ;;  %v1600_v13 = vsel %vm1084_vm11, %v1596_v44, %v1598_v18 }
 0x618   : > { %1603 = vst [vmem:[#allocation5 + $0x30] sm:$0xff] %v1599_v57  ;;  %1738 = vmatpush.msra.mxu1 %v1599_v57  ;;  %1758 = vmatpush.msra.mxu3 %v1600_v13 }
 0x619   : > { %v1577_v12 = vpop.permute.xlu1 %1576 }
 0x61d   : > { %v1913_v7 = vpop.permute.xlu2 %1912 }
 0x61e   : > { %v1575_v55 = vpop.permute.xlu0 %1574 }
 0x61f   : > { %v1578_v39 = vsel %vm1052_vm12, %v1573_v46, %v1575_v55  ;;  %v1579_v42 = vsel %vm1052_vm12, %v1575_v55, %v1577_v12 }
 0x620   : > { %1582 = vst [vmem:[#allocation5 + $0x20] sm:$0xff] %v1578_v39  ;;  %1739 = vmatpush.msra.mxu1 %v1578_v39  ;;  %1759 = vmatpush.msra.mxu3 %v1579_v42 }
 0x626   : > { %v1554_v21 = vpop.permute.xlu0 %1553 }
 0x627   : > { %v1557_v49 = vsel %vm1019_vm13, %v1552_v35, %v1554_v21  ;;  %v1558_v25 = vsel %vm1019_vm13, %v1554_v21, %v1556_v6  ;;  %v2508_v35 = vld [vmem:[%s3576_s8 + $0x30] sm:$0xff] }
 0x628   : > { %1561 = vst [vmem:[#allocation5 + $0x10] sm:$0xff] %v1557_v49  ;;  %1740 = vmatpush.msra.mxu1 %v1557_v49  ;;  %1760 = vmatpush.msra.mxu3 %v1558_v25 }
 0x62a   : > { %1741 = vmatpush.msra.mxu1 %v3236_v59  ;;  %1761 = vmatpush.msra.mxu3 %v3230_v29  ;;  %v1795_v59 = vld [vmem:[%s3579_s11 + $0xe8] sm:$0xff]  ;;  %v1794_v29 = vld [vmem:[%s3579_s11 + $0xe0] sm:$0xff] }
 0x62b   : > { %2503 = vmatmul.msk.f32.vlgmr.msra.gmra.mxu1 %vm1722_vm14, %v1525_v2  ;;  %2504 = vmatmul.msk.f32.vlgmr.msra.gmra.mxu3 %vm1722_vm14, %v1525_v2 }
 0x62c   : > { %1825 = vmatpush.msrb.mxu1 %v1797_v3 }
 0x62e   : > { %1826 = vmatpush.msrb.mxu1 %v1796_v9  ;;  %v1803_v51 = vpop.permute.xlu0 %1802 }
 0x630   : > { %1827 = vmatpush.msrb.mxu1 %v1795_v59 }
 0x632   : > { %1828 = vmatpush.msrb.mxu1 %v1794_v29 }
 0x634   : > { %1829 = vmatpush.msrb.mxu1 %v1793_v50 }
 0x636   : > { %1830 = vmatpush.msrb.mxu1 %v1792_v30 }
 0x638   : > { %1831 = vmatpush.msrb.mxu1 %v1791_v31 }
 0x63a   : > { %1832 = vmatpush.msrb.mxu1 %v1790_v32 }
 0x63c   : > { %1833 = vmatpush.msrb.mxu1 %v1789_v37 }
 0x63e   : > { %1834 = vmatpush.msrb.mxu1 %v1788_v38 }
 0x640   : > { %1835 = vmatpush.msrb.mxu1 %v1787_v43 }
 0x642   : > { %1836 = vmatpush.msrb.mxu1 %v1786_v52 }
 0x644   : > { %1837 = vmatpush.msrb.mxu1 %v1785_v34 }
 0x646   : > { %1838 = vmatpush.msrb.mxu1 %v1784_v54 }
 0x648   : > { %1839 = vmatpush.msrb.mxu1 %v1783_v63 }
 0x64a   : > { %1840 = vmatpush.msrb.mxu1 %v1782_v20  ;;  %v2506_v20 = vld [vmem:[%s3574_s6 + $0x20] sm:$0xff] }
 0x6a8   : > { %v1743_v58 = vpop.f32.mrf.mxu1 }
 0x6a9   : > { %1821 = vmatmul.f32.vlgmr.msra.gmra.mxu2 %v1743_v58 }
 0x6ae   : > { %v1763_v41 = vpop.f32.mrf.mxu3 }
 0x6af   : > { %1841 = vmatmul.f32.vlgmr.msrb.gmra.mxu1 %v1763_v41  ;;  %v2507_v41 = vld [vmem:[%s3574_s6 + $0x28] sm:$0xff] }
 0x72c   : > { %v1822_v1 = vpop.f32.mrf.mxu2  ;;  %v1842_v56 = vpop.f32.mrf.mxu1 }
 0x72d   : > { %v1823_v60 = vadd.f32 %v1822_v1, %v1803_v51 }
 0x72f   : > { %v1843_v15 = vadd.f32 %v1842_v56, %v1823_v60 }
 0x731   : > { %v1845_v19 = vmax.f32 %v1843_v15, 0.0 }
 0x733   : > { %1852 = vrot.lane.b32.xlu1 %v1845_v19, %s3617_s21 }
 0x7a5   : > { %v1853_v28 = vpop.permute.xlu1 %1852 }
 0x7a6   : > { %1855 = vst.msk [vmem:[#allocation3] sm:$0xff] %vm718_vm7, %v1853_v28 }
 0x7ad   : > { %v1899_v5 = vld [vmem:[#allocation3] sm:$0xff] }
 0x7ae   : > { %1901 = vrot.lane.b32.xlu1 %v1899_v5, %s2606_s30  ;;  %v1893_v47 = vmul.f32 %v1899_v5, %v2765_v27  ;;  %1915 = vst.msk [vmem:[#allocation3] sm:$0xff] %vm718_vm7, %v1913_v7  ;;  %v1857_v33 = vmul.f32 %v1899_v5, %v2747_v17  ;;  %v1886_v46 = vmul.f32 %v1899_v5, %v3618_v62 }
 0x7af   : > { %v1873_v18 = vmul.f32 %v1899_v5, %v3621_v45  ;;  %v1866_v13 = vmul.f32 %v1899_v5, %v3622_v10  ;;  %v1906_v26 = vmul.f32 %v1899_v5, %v3624_v53 }
 0x7b0   : > { %1895 = vrot.lane.b32.xlu0 %v1893_v47, %s2603_s27  ;;  %1858 = vst.msk [vmem:[#allocation5] sm:$0xff] %vm722_vm8, %v1857_v33 }
 0x7b5   : > { %v1959_v24 = vld [vmem:[#allocation3] sm:$0xff] }
 0x7b6   : > { %v1953_v16 = vmul.f32 %v1959_v24, %v2765_v27  ;;  %v1946_v40 = vmul.f32 %v1959_v24, %v3618_v62  ;;  %v1917_v23 = vmul.f32 %v1959_v24, %v2747_v17  ;;  %v1933_v44 = vmul.f32 %v1959_v24, %v3621_v45 }
 0x7b7   : > { %v1926_v57 = vmul.f32 %v1959_v24, %v3622_v10  ;;  %v1966_v11 = vmul.f32 %v1959_v24, %v3624_v53  ;;  %v1972_v58 = vld [vmem:[#allocation5] sm:$0xff] }
 0x7b8   : > { %1961 = vrot.lane.b32.xlu0 %v1959_v24, %s2606_s30  ;;  %1955 = vrot.lane.b32.xlu2 %v1953_v16, %s2603_s27  ;;  %1918 = vst.msk [vmem:[#allocation5 + $0x10] sm:$0xff] %vm722_vm8, %v1917_v23 }
 0x7b9   : > { %1948 = vrot.lane.b32.xlu1 %v1946_v40, %s3619_s19 }
 0x7bf   : > { %v1973_v63 = vld [vmem:[#allocation5 + $0x10] sm:$0xff] }
 0x7c0   : > { %1888 = vrot.lane.b32.xlu2 %v1886_v46, %s3619_s19  ;;  %1941 = vrot.lane.b32.xlu0 %v1959_v24, %s3620_s18 }
 0x7c1   : > { %1881 = vrot.lane.b32.xlu1 %v1899_v5, %s3620_s18 }
 0x7c8   : > { %1875 = vrot.lane.b32.xlu0 %v1873_v18, %s3623_s23  ;;  %1935 = vrot.lane.b32.xlu2 %v1933_v44, %s3623_s23  ;;  %v2141_v44 = vld [vmem:[%s3580_s12 + $0x38] sm:$0xff] }
 0x7c9   : > { %1928 = vrot.lane.b32.xlu1 %v1926_v57, %s2609_s16  ;;  %2160 = vmatpush.msrb.mxu2 %v2141_v44 }
 0x7d0   : > { %1868 = vrot.lane.b32.xlu2 %v1866_v13, %s2609_s16  ;;  %1921 = vrot.lane.b32.xlu0 %v1959_v24, %s3616_s28  ;;  %v2139_v13 = vld [vmem:[%s3580_s12 + $0x28] sm:$0xff] }
 0x7d1   : > { %1861 = vrot.lane.b32.xlu1 %v1899_v5, %s3616_s28 }
 0x7d8   : > { %1968 = vrot.lane.b32.xlu2 %v1966_v11, %s3625_s15  ;;  %1908 = vrot.lane.b32.xlu0 %v1906_v26, %s3625_s15  ;;  %v2137_v11 = vld [vmem:[%s3580_s12 + $0x18] sm:$0xff]  ;;  %v2136_v26 = vld [vmem:[%s3580_s12 + $0x10] sm:$0xff] }
 0x7d9   : > { %1992 = vperm.xlu1 %2561, %v2508_v35  }
 0x812   : > { %v1956_v12 = vpop.permute.xlu2 %1955 }
 0x813   : > { %1958 = vst.msk [vmem:[#allocation5 + $0xd0] sm:$0xff] %vm722_vm8, %v1956_v12 }
 0x81a   : > { %v1889_v55 = vpop.permute.xlu2 %1888  ;;  %v1985_v2 = vld [vmem:[#allocation5 + $0xd0] sm:$0xff] }
 0x81b   : > { %1891 = vst.msk [vmem:[#allocation5 + $0xa0] sm:$0xff] %vm722_vm8, %v1889_v55 }
 0x820   : > { %v1902_v36 = vpop.permute.xlu1 %1901 }
 0x821   : > { %1904 = vst.msk [vmem:[#allocation5 + $0xe0] sm:$0xff] %vm722_vm8, %v1902_v36  ;;  %v2135_v36 = vld [vmem:[%s3580_s12 + $0x8] sm:$0xff] }
 0x822   : > { %v1896_v39 = vpop.permute.xlu0 %1895  ;;  %v1936_v42 = vpop.permute.xlu2 %1935  ;;  %v1982_v29 = vld [vmem:[#allocation5 + $0xa0] sm:$0xff] }
 0x823   : > { %1898 = vst.msk [vmem:[#allocation5 + $0xc0] sm:$0xff] %vm722_vm8, %v1896_v39 }
 0x824   : > { %1938 = vst.msk [vmem:[#allocation5 + $0x70] sm:$0xff] %vm722_vm8, %v1936_v42 }
 0x828   : > { %v1986_v25 = vld [vmem:[#allocation5 + $0xe0] sm:$0xff] }
 0x82a   : > { %v1962_v61 = vpop.permute.xlu0 %1961  ;;  %v1869_v48 = vpop.permute.xlu2 %1868  ;;  %v1984_v3 = vld [vmem:[#allocation5 + $0xc0] sm:$0xff] }
 0x82b   : > { %1964 = vst.msk [vmem:[#allocation5 + $0xf0] sm:$0xff] %vm722_vm8, %v1962_v61  ;;  %v1949_v22 = vpop.permute.xlu1 %1948  ;;  %v1979_v32 = vld [vmem:[#allocation5 + $0x70] sm:$0xff] }
 0x82c   : > { %1951 = vst.msk [vmem:[#allocation5 + $0xb0] sm:$0xff] %vm722_vm8, %v1949_v22 }
 0x82d   : > { %1871 = vst.msk [vmem:[#allocation5 + $0x40] sm:$0xff] %vm722_vm8, %v1869_v48 }
 0x832   : > { %v1942_v6 = vpop.permute.xlu0 %1941  ;;  %v1969_v21 = vpop.permute.xlu2 %1968  ;;  %v1987_v0 = vld [vmem:[#allocation5 + $0xf0] sm:$0xff] }
 0x833   : > { %v1882_v49 = vpop.permute.xlu1 %1881  ;;  %1944 = vst.msk [vmem:[#allocation5 + $0x90] sm:$0xff] %vm722_vm8, %v1942_v6  ;;  %1998 = vmatpush.msrb.mxu3 %v1987_v0  ;;  %v1983_v9 = vld [vmem:[#allocation5 + $0xb0] sm:$0xff] }
 0x834   : > { %1884 = vst.msk [vmem:[#allocation5 + $0x80] sm:$0xff] %vm722_vm8, %v1882_v49  ;;  %v1976_v4 = vld [vmem:[#allocation5 + $0x40] sm:$0xff] }
 0x835   : > { %1971 = vst.msk [vmem:[#allocation5 + $0x110] sm:$0xff] %vm722_vm8, %v1969_v21  ;;  %1999 = vmatpush.msrb.mxu3 %v1986_v25  ;;  %v2510_v25 = vld [vmem:[%s3575_s7 + $0x8] sm:$0xff] }
 0x837   : > { %2000 = vmatpush.msrb.mxu3 %v1985_v2 }
 0x839   : > { %2001 = vmatpush.msrb.mxu3 %v1984_v3  ;;  %v2134_v3 = vld [vmem:[%s3580_s12] sm:$0xff] }
 0x83a   : > { %v1876_v8 = vpop.permute.xlu0 %1875  ;;  %v1981_v50 = vld [vmem:[#allocation5 + $0x90] sm:$0xff] }
 0x83b   : > { %1878 = vst.msk [vmem:[#allocation5 + $0x60] sm:$0xff] %vm722_vm8, %v1876_v8  ;;  %v1929_v14 = vpop.permute.xlu1 %1928  ;;  %2002 = vmatpush.msrb.mxu3 %v1983_v9  ;;  %v1980_v30 = vld [vmem:[#allocation5 + $0x80] sm:$0xff] }
 0x83c   : > { %1931 = vst.msk [vmem:[#allocation5 + $0x50] sm:$0xff] %vm722_vm8, %v1929_v14  ;;  %v1989_v59 = vld [vmem:[#allocation5 + $0x110] sm:$0xff]  ;;  %v3628_v9 = vld [vmem:[#allocation6_spill] sm:$0xff] }
 0x83d   : > { %2032 = vmatpush.msrb.mxu0 %v1989_v59  ;;  %2003 = vmatpush.msrb.mxu3 %v1982_v29  ;;  %v541_v14 = vand.u32 3, %v3628_v9  ;;  %v3629_v59 = vmov 0.0  }
 0x83f   : > { %2004 = vmatpush.msrb.mxu3 %v1981_v50  ;;  %vm551_vm15 = vcmp.ne.s32.totalorder %v541_v14, 3 }
 0x840   : > { %v552_v50 = vsel %vm551_vm15, 1.0, %v3629_v59 }
 0x841   : > { %2005 = vmatpush.msrb.mxu3 %v1980_v30 }
 0x842   : > { %v1922_v31 = vpop.permute.xlu0 %1921  ;;  %v1978_v38 = vld [vmem:[#allocation5 + $0x60] sm:$0xff] }
 0x843   : > { %v1862_v37 = vpop.permute.xlu1 %1861  ;;  %1924 = vst.msk [vmem:[#allocation5 + $0x30] sm:$0xff] %vm722_vm8, %v1922_v31  ;;  %2006 = vmatpush.msrb.mxu3 %v1979_v32  ;;  %v1977_v43 = vld [vmem:[#allocation5 + $0x50] sm:$0xff] }
 0x844   : > { %1864 = vst.msk [vmem:[#allocation5 + $0x20] sm:$0xff] %vm722_vm8, %v1862_v37 }
 0x845   : > { %2007 = vmatpush.msrb.mxu3 %v1978_v38 }
 0x847   : > { %2008 = vmatpush.msrb.mxu3 %v1977_v43 }
 0x849   : > { %2009 = vmatpush.msrb.mxu3 %v1976_v4 }
 0x84a   : > { %v1909_v52 = vpop.permute.xlu0 %1908  ;;  %v1975_v34 = vld [vmem:[#allocation5 + $0x30] sm:$0xff] }
 0x84b   : > { %1911 = vst.msk [vmem:[#allocation5 + $0x100] sm:$0xff] %vm722_vm8, %v1909_v52  ;;  %2010 = vmatpush.msrb.mxu3 %v1975_v34  ;;  %v1974_v54 = vld [vmem:[#allocation5 + $0x20] sm:$0xff]  ;;  %v1993_v1 = vpop.permute.xlu1 %1992 }
 0x84d   : > { %2011 = vmatpush.msrb.mxu3 %v1974_v54 }
 0x84f   : > { %2012 = vmatpush.msrb.mxu3 %v1973_v63 }
 0x851   : > { %2013 = vmatpush.msrb.mxu3 %v1972_v58 }
 0x852   : > { %2014 = vmatmul.f32.vlgmr.msrb.gmra.mxu3 %v2506_v20  ;;  %v1988_v51 = vld [vmem:[#allocation5 + $0x100] sm:$0xff] }
 0x853   : > { %2033 = vmatpush.msrb.mxu0 %v1988_v51 }
 0x854   : > { %2509 = vmatmul.msk.f32.vlgmr.msrb.gmra.mxu0 %vm660_vm1, %v2507_v41 }
 0x8d1   : > { %v2035_v60 = vpop.f32.mrf.mxu0 }
 0x8d5   : > { %v2015_v56 = vpop.f32.mrf.mxu3 }
 0x8d6   : > { %v2016_v15 = vadd.f32 %v2015_v56, %v1993_v1 }
 0x8d8   : > { %v2036_v19 = vadd.f32 %v2035_v60, %v2016_v15 }
 0x8da   : > { %v2038_v28 = vmax.f32 %v2036_v19, 0.0 }
 0x8dc   : > { %2386 = vst.msk [vmem:[%s3216_s29 + $0x10] sm:$0xff] %vm722_vm8, %v2038_v28  ;;  %2042 = vrot.lane.b32.xlu2 %v2038_v28, %s3617_s21  ;;  %s2624_s21 = smov 64  }
 0x936   : > { %v2043_v7 = vpop.permute.xlu2 %2042 }
 0x937   : > { %2045 = vst.msk [vmem:[#allocation3] sm:$0xff] %vm718_vm7, %v2043_v7  ;;  %vm549_vm7 = vcmp.ne.s32.totalorder %v541_v14, 0  ;;  %v2515_v14 = vld [vmem:[%s3574_s6 + $0x38] sm:$0xff] }
 0x938   : > { %v550_v29 = vsel %vm549_vm7, 1.0, %v3629_v59 }
 0x93e   : > { %v2089_v5 = vld [vmem:[#allocation3] sm:$0xff] }
 0x93f   : > { %2091 = vrot.lane.b32.xlu1 %v2089_v5, %s2606_s30  ;;  %v2096_v47 = vmul.f32 %v2089_v5, %v3624_v53  ;;  %v2083_v33 = vmul.f32 %v2089_v5, %v2765_v27  ;;  %v2047_v24 = vmul.f32 %v2089_v5, %v2747_v17  ;;  %v2076_v16 = vmul.f32 %v2089_v5, %v3618_v62  ;;  %v2512_v17 = vld [vmem:[%s3576_s8 + $0x38] sm:$0xff]  ;;  %v2138_v53 = vld [vmem:[%s3580_s12 + $0x20] sm:$0xff] }
 0x940   : > { %v2063_v40 = vmul.f32 %v2089_v5, %v3621_v45  ;;  %v2056_v27 = vmul.f32 %v2089_v5, %v3622_v10  ;;  %v3626_v62 = vld [vmem:[#allocation7_spill] sm:$0xff]  ;;  %v2140_v10 = vld [vmem:[%s3580_s12 + $0x30] sm:$0xff] }
 0x941   : > { %2098 = vrot.lane.b32.xlu0 %v2096_v47, %s3625_s15  ;;  %2085 = vrot.lane.b32.xlu2 %v2083_v33, %s2603_s27  ;;  %2048 = vst.msk [vmem:[#allocation5] sm:$0xff] %vm722_vm8, %v2047_v24  ;;  %s2618_s27 = smov 5   ;;  %v3627_v23 = vmax.f32 %v3626_v62, 0.0  ;;  %s3631_s15 = smov 2   ;;  %v2516_v47 = vld [vmem:[%s3576_s8 + $0x40] sm:$0xff] }
 0x942   : > { %2161 = vmatpush.msrb.mxu2 %v2140_v10 }
 0x944   : > { %2162 = vmatpush.msrb.mxu2 %v2139_v13 }
 0x946   : > { %2163 = vmatpush.msrb.mxu2 %v2138_v53 }
 0x947   : > { %2071 = vrot.lane.b32.xlu1 %v2089_v5, %s3620_s18 }
 0x948   : > { %2164 = vmatpush.msrb.mxu2 %v2137_v11  ;;  %v2102_v2 = vld [vmem:[#allocation5] sm:$0xff] }
 0x949   : > { %2078 = vrot.lane.b32.xlu0 %v2076_v16, %s3619_s19  ;;  %2065 = vrot.lane.b32.xlu2 %v2063_v40, %s3623_s23 }
 0x94a   : > { %2165 = vmatpush.msrb.mxu2 %v2136_v26 }
 0x94c   : > { %2166 = vmatpush.msrb.mxu2 %v2135_v36 }
 0x94e   : > { %2167 = vmatpush.msrb.mxu2 %v2134_v3  ;;  %v2514_v3 = vld [vmem:[%s3574_s6 + $0x30] sm:$0xff] }
 0x94f   : > { %2051 = vrot.lane.b32.xlu1 %v2089_v5, %s3616_s28 }
 0x951   : > { %2146 = vperm.xlu2 %2562, %v2512_v17   ;;  %2058 = vrot.lane.b32.xlu0 %v2056_v27, %s2609_s16 }
 0x957   : > { %2257 = vrot.lane.b32.xlu1 %v3627_v23, %s2618_s27 }
 0x959   : > { %2232 = vrot.lane.b32.xlu2 %v550_v29, %s3630_s14 }
 0x95f   : > { %2206 = vrot.lane.b32.xlu1 %v550_v29, %s2619_s24 }
 0x961   : > { %2195 = vrot.lane.b32.xlu2 %v552_v50, %s3631_s15 }
 0x99b   : > { %v2086_v46 = vpop.permute.xlu2 %2085 }
 0x99c   : > { %2088 = vst.msk [vmem:[#allocation5 + $0x60] sm:$0xff] %vm722_vm8, %v2086_v46 }
 0x9a3   : > { %v2066_v45 = vpop.permute.xlu2 %2065  ;;  %v2108_v42 = vld [vmem:[#allocation5 + $0x60] sm:$0xff] }
 0x9a4   : > { %2068 = vst.msk [vmem:[#allocation5 + $0x30] sm:$0xff] %vm722_vm8, %v2066_v45 }
 0x9ab   : > { %v2105_v21 = vld [vmem:[#allocation5 + $0x30] sm:$0xff]  ;;  %v2147_v30 = vpop.permute.xlu2 %2146 }
 0x9b1   : > { %v2092_v18 = vpop.permute.xlu1 %2091 }
 0x9b2   : > { %2094 = vst.msk [vmem:[#allocation5 + $0x70] sm:$0xff] %vm722_vm8, %v2092_v18 }
 0x9b3   : > { %v2099_v57 = vpop.permute.xlu0 %2098  ;;  %v2233_v52 = vpop.permute.xlu2 %2232 }
 0x9b4   : > { %2101 = vst.msk [vmem:[#allocation5 + $0x80] sm:$0xff] %vm722_vm8, %v2099_v57 }
 0x9b9   : > { %v2072_v35 = vpop.permute.xlu1 %2071  ;;  %v2109_v39 = vld [vmem:[#allocation5 + $0x70] sm:$0xff] }
 0x9ba   : > { %2074 = vst.msk [vmem:[#allocation5 + $0x40] sm:$0xff] %vm722_vm8, %v2072_v35 }
 0x9bb   : > { %v2079_v12 = vpop.permute.xlu0 %2078  ;;  %v2110_v55 = vld [vmem:[#allocation5 + $0x80] sm:$0xff]  ;;  %v2196_v60 = vpop.permute.xlu2 %2195 }
 0x9bc   : > { %2081 = vst.msk [vmem:[#allocation5 + $0x50] sm:$0xff] %vm722_vm8, %v2079_v12  ;;  %2121 = vmatpush.msra.mxu0 %v2110_v55 }
 0x9be   : > { %2122 = vmatpush.msra.mxu0 %v2109_v39 }
 0x9c0   : > { %2123 = vmatpush.msra.mxu0 %v2108_v42 }
 0x9c1   : > { %v2052_v61 = vpop.permute.xlu1 %2051  ;;  %v2106_v6 = vld [vmem:[#allocation5 + $0x40] sm:$0xff] }
 0x9c2   : > { %2054 = vst.msk [vmem:[#allocation5 + $0x10] sm:$0xff] %vm722_vm8, %v2052_v61 }
 0x9c3   : > { %v2059_v48 = vpop.permute.xlu0 %2058  ;;  %v2107_v22 = vld [vmem:[#allocation5 + $0x50] sm:$0xff] }
 0x9c4   : > { %2061 = vst.msk [vmem:[#allocation5 + $0x20] sm:$0xff] %vm722_vm8, %v2059_v48  ;;  %2124 = vmatpush.msra.mxu0 %v2107_v22 }
 0x9c6   : > { %2125 = vmatpush.msra.mxu0 %v2106_v6 }
 0x9c8   : > { %2126 = vmatpush.msra.mxu0 %v2105_v21 }
 0x9c9   : > { %v2103_v49 = vld [vmem:[#allocation5 + $0x10] sm:$0xff]  ;;  %v2258_v43 = vpop.permute.xlu1 %2257 }
 0x9cb   : > { %v2104_v0 = vld [vmem:[#allocation5 + $0x20] sm:$0xff] }
 0x9cc   : > { %2127 = vmatpush.msra.mxu0 %v2104_v0 }
 0x9ce   : > { %2128 = vmatpush.msra.mxu0 %v2103_v49 }
 0x9d0   : > { %2129 = vmatpush.msra.mxu0 %v2102_v2 }
 0x9d1   : > { %2511 = vmatmul.msk.f32.vlgmr.msra.gmra.mxu0 %vm1722_vm14, %v2510_v25  ;;  %v2207_v56 = vpop.permute.xlu1 %2206 }
 0xa4e   : > { %v2131_v8 = vpop.f32.mrf.mxu0 }
 0xa4f   : > { %2513 = vmatmul.msk.f32.vlgmr.msrb.gmra.mxu2 %vm722_vm8, %v2131_v8  ;;  %vm484_vm8 = vcmask 211968  }
 0xa50   : > { %485 = vst.msk [vmem:[#allocation4] sm:$0xff] %vm484_vm8, %v3629_v59 }
 0xad2   : > { %v2169_v31 = vpop.f32.mrf.mxu2 }
 0xad3   : > { %v2170_v32 = vadd.f32 %v2169_v31, %v2147_v30 }
 0xad5   : > { %v2172_v37 = vmax.f32 %v2170_v32, 0.0 }
 0xad7   : > { %2179 = vrot.lane.b32.xlu0 %v2172_v37, %s2618_s27  ;;  %s2621_s27 = smov 122  }
 0xadf   : > { %2222 = vrot.lane.b32.xlu0 %v552_v50, %s2620_s20 }
 0xae7   : > { %2248 = vrot.lane.b32.xlu0 %v552_v50, %s3632_s26 }
 0xb49   : > { %v2180_v38 = vpop.permute.xlu0 %2179 }
 0xb4a   : > { %2183 = vst.msk [vmem:[#allocation4] sm:$0xff] %vm2182_vm0, %v2180_v38 }
 0xb51   : > { %v2184_v4 = vld [vmem:[#allocation4] sm:$0xff]  ;;  %v2223_v20 = vpop.permute.xlu0 %2222 }
 0xb52   : > { %v2185_v34 = vmul.f32 %v2184_v4, %v550_v29  ;;  %2260 = vst.msk [vmem:[#allocation4] sm:$0xff] %vm2182_vm0, %v2258_v43  ;;  %2243 = vrot.lane.b32.xlu2 %v2184_v4, %s3620_s18  ;;  %v2235_v54 = vmul.f32 %v2233_v52, %v2184_v4  ;;  %v2225_v1 = vmul.f32 %v2223_v20, %v2184_v4 }
 0xb53   : > { %v2209_v19 = vmul.f32 %v2207_v56, %v2184_v4  ;;  %v2198_v7 = vmul.f32 %v2196_v60, %v2184_v4 }
 0xb54   : > { %2186 = vst.msk [vmem:[#allocation5] sm:$0xff] %vm660_vm1, %v2185_v34  ;;  %2237 = vrot.lane.b32.xlu1 %v2235_v54, %s3623_s23 }
 0xb59   : > { %v2270_v63 = vld [vmem:[#allocation4] sm:$0xff]  ;;  %v2249_v5 = vpop.permute.xlu0 %2248 }
 0xb5a   : > { %v2291_v58 = vmul.f32 %v2270_v63, %v2223_v20  ;;  %v2298_v41 = vmul.f32 %v2270_v63, %v2233_v52  ;;  %v2262_v51 = vmul.f32 %v2270_v63, %v550_v29  ;;  %v2271_v15 = vmul.f32 %v2270_v63, %v2196_v60 }
 0xb5b   : > { %v2278_v28 = vmul.f32 %v2270_v63, %v2207_v56  ;;  %v2251_v33 = vmul.f32 %v2249_v5, %v2184_v4  ;;  %v2311_v24 = vmul.f32 %v2270_v63, %v2249_v5  ;;  %v2317_v8 = vld [vmem:[#allocation5] sm:$0xff] }
 0xb5c   : > { %2293 = vrot.lane.b32.xlu2 %v2291_v58, %s2621_s27  ;;  %2306 = vrot.lane.b32.xlu1 %v2270_v63, %s3620_s18  ;;  %2263 = vst.msk [vmem:[#allocation5 + $0x10] sm:$0xff] %vm660_vm1, %v2262_v51 }
 0xb5d   : > { %2300 = vrot.lane.b32.xlu0 %v2298_v41, %s3623_s23 }
 0xb63   : > { %v2318_v2 = vld [vmem:[#allocation5 + $0x10] sm:$0xff] }
 0xb64   : > { %2217 = vrot.lane.b32.xlu2 %v2184_v4, %s2622_s22  ;;  %2286 = vrot.lane.b32.xlu1 %v2270_v63, %s2622_s22 }
 0xb65   : > { %2227 = vrot.lane.b32.xlu0 %v2225_v1, %s2621_s27 }
 0xb6c   : > { %2273 = vrot.lane.b32.xlu2 %v2271_v15, %s2609_s16  ;;  %2211 = vrot.lane.b32.xlu1 %v2209_v19, %s2623_s17 }
 0xb6d   : > { %2280 = vrot.lane.b32.xlu0 %v2278_v28, %s2623_s17 }
 0xb74   : > { %2189 = vrot.lane.b32.xlu2 %v2184_v4, %s3616_s28  ;;  %2266 = vrot.lane.b32.xlu1 %v2270_v63, %s3616_s28 }
 0xb75   : > { %2200 = vrot.lane.b32.xlu0 %v2198_v7, %s2609_s16 }
 0xb7c   : > { %2337 = vperm.xlu2 %2562, %v2516_v47   ;;  %2253 = vrot.lane.b32.xlu1 %v2251_v33, %s3619_s19 }
 0xb7d   : > { %2313 = vrot.lane.b32.xlu0 %v2311_v24, %s3619_s19 }
 0xbac   : > { %v2244_v16 = vpop.permute.xlu2 %2243 }
 0xbad   : > { %2246 = vst.msk [vmem:[#allocation5 + $0xe0] sm:$0xff] %vm660_vm1, %v2244_v16 }
 0xbb4   : > { %v2331_v57 = vld [vmem:[#allocation5 + $0xe0] sm:$0xff] }
 0xbb6   : > { %v2294_v40 = vpop.permute.xlu2 %2293 }
 0xbb7   : > { %2296 = vst.msk [vmem:[#allocation5 + $0xb0] sm:$0xff] %vm660_vm1, %v2294_v40 }
 0xbbe   : > { %v2218_v17 = vpop.permute.xlu2 %2217  ;;  %v2328_v26 = vld [vmem:[#allocation5 + $0xb0] sm:$0xff] }
 0xbbf   : > { %2220 = vst.msk [vmem:[#allocation5 + $0x80] sm:$0xff] %vm660_vm1, %v2218_v17 }
 0xbc6   : > { %v2274_v27 = vpop.permute.xlu2 %2273  ;;  %v2238_v62 = vpop.permute.xlu1 %2237  ;;  %v2325_v36 = vld [vmem:[#allocation5 + $0x80] sm:$0xff] }
 0xbc7   : > { %2276 = vst.msk [vmem:[#allocation5 + $0x50] sm:$0xff] %vm660_vm1, %v2274_v27 }
 0xbc8   : > { %2240 = vst.msk [vmem:[#allocation5 + $0xc0] sm:$0xff] %vm660_vm1, %v2238_v62 }
 0xbce   : > { %v2190_v23 = vpop.permute.xlu2 %2189  ;;  %v2307_v46 = vpop.permute.xlu1 %2306  ;;  %v2322_v22 = vld [vmem:[#allocation5 + $0x50] sm:$0xff] }
 0xbcf   : > { %2192 = vst.msk [vmem:[#allocation5 + $0x20] sm:$0xff] %vm660_vm1, %v2190_v23  ;;  %v2301_v45 = vpop.permute.xlu0 %2300  ;;  %v2329_v53 = vld [vmem:[#allocation5 + $0xc0] sm:$0xff] }
 0xbd0   : > { %2309 = vst.msk [vmem:[#allocation5 + $0xf0] sm:$0xff] %vm660_vm1, %v2307_v46 }
 0xbd1   : > { %2303 = vst.msk [vmem:[#allocation5 + $0xd0] sm:$0xff] %vm660_vm1, %v2301_v45 }
 0xbd6   : > { %v2287_v18 = vpop.permute.xlu1 %2286  ;;  %v2319_v25 = vld [vmem:[#allocation5 + $0x20] sm:$0xff]  ;;  %v2338_v50 = vpop.permute.xlu2 %2337 }
 0xbd7   : > { %v2228_v44 = vpop.permute.xlu0 %2227  ;;  %v2332_v10 = vld [vmem:[#allocation5 + $0xf0] sm:$0xff]  ;;  %2289 = vst.msk [vmem:[#allocation5 + $0x90] sm:$0xff] %vm660_vm1, %v2287_v18 }
 0xbd8   : > { %2343 = vmatpush.msrb.mxu0 %v2332_v10  ;;  %2230 = vst.msk [vmem:[#allocation5 + $0xa0] sm:$0xff] %vm660_vm1, %v2228_v44  ;;  %v2330_v13 = vld [vmem:[#allocation5 + $0xd0] sm:$0xff] }
 0xbda   : > { %2344 = vmatpush.msrb.mxu0 %v2331_v57 }
 0xbdc   : > { %2345 = vmatpush.msrb.mxu0 %v2330_v13 }
 0xbde   : > { %2346 = vmatpush.msrb.mxu0 %v2329_v53  ;;  %v2212_v11 = vpop.permute.xlu1 %2211  ;;  %v2326_v55 = vld [vmem:[#allocation5 + $0x90] sm:$0xff] }
 0xbdf   : > { %v2281_v35 = vpop.permute.xlu0 %2280  ;;  %2214 = vst.msk [vmem:[#allocation5 + $0x60] sm:$0xff] %vm660_vm1, %v2212_v11  ;;  %v2327_v12 = vld [vmem:[#allocation5 + $0xa0] sm:$0xff] }
 0xbe0   : > { %2347 = vmatpush.msrb.mxu0 %v2328_v26  ;;  %2283 = vst.msk [vmem:[#allocation5 + $0x70] sm:$0xff] %vm660_vm1, %v2281_v35 }
 0xbe2   : > { %2348 = vmatpush.msrb.mxu0 %v2327_v12 }
 0xbe4   : > { %2349 = vmatpush.msrb.mxu0 %v2326_v55 }
 0xbe6   : > { %2350 = vmatpush.msrb.mxu0 %v2325_v36  ;;  %v2267_v39 = vpop.permute.xlu1 %2266  ;;  %v2323_v48 = vld [vmem:[#allocation5 + $0x60] sm:$0xff] }
 0xbe7   : > { %v2201_v42 = vpop.permute.xlu0 %2200  ;;  %2269 = vst.msk [vmem:[#allocation5 + $0x30] sm:$0xff] %vm660_vm1, %v2267_v39  ;;  %v2324_v61 = vld [vmem:[#allocation5 + $0x70] sm:$0xff] }
 0xbe8   : > { %2203 = vst.msk [vmem:[#allocation5 + $0x40] sm:$0xff] %vm660_vm1, %v2201_v42  ;;  %2351 = vmatpush.msrb.mxu0 %v2324_v61 }
 0xbea   : > { %2352 = vmatpush.msrb.mxu0 %v2323_v48 }
 0xbec   : > { %2353 = vmatpush.msrb.mxu0 %v2322_v22 }
 0xbee   : > { %v2254_v6 = vpop.permute.xlu1 %2253  ;;  %v2320_v49 = vld [vmem:[#allocation5 + $0x30] sm:$0xff] }
 0xbef   : > { %v2314_v21 = vpop.permute.xlu0 %2313  ;;  %2256 = vst.msk [vmem:[#allocation5 + $0x100] sm:$0xff] %vm660_vm1, %v2254_v6  ;;  %v2321_v0 = vld [vmem:[#allocation5 + $0x40] sm:$0xff] }
 0xbf0   : > { %2316 = vst.msk [vmem:[#allocation5 + $0x110] sm:$0xff] %vm660_vm1, %v2314_v21  ;;  %2354 = vmatpush.msrb.mxu0 %v2321_v0 }
 0xbf2   : > { %2355 = vmatpush.msrb.mxu0 %v2320_v49 }
 0xbf4   : > { %2356 = vmatpush.msrb.mxu0 %v2319_v25 }
 0xbf6   : > { %2357 = vmatpush.msrb.mxu0 %v2318_v2  ;;  %v2333_v29 = vld [vmem:[#allocation5 + $0x100] sm:$0xff] }
 0xbf7   : > { %v2334_v9 = vld [vmem:[#allocation5 + $0x110] sm:$0xff] }
 0xbf8   : > { %2358 = vmatpush.msrb.mxu0 %v2317_v8  ;;  %2377 = vmatpush.msra.mxu1 %v2334_v9 }
 0xbf9   : > { %2359 = vmatmul.f32.vlgmr.msrb.gmra.mxu0 %v2514_v3 }
 0xbfa   : > { %2378 = vmatpush.msra.mxu1 %v2333_v29 }
 0xbfb   : > { %2517 = vmatmul.msk.f32.vlgmr.msra.gmra.mxu1 %vm660_vm1, %v2515_v14 }
 0xc76   : > { %v2360_v30 = vpop.f32.mrf.mxu0 }
 0xc77   : > { %v2361_v31 = vadd.f32 %v2360_v30, %v2338_v50 }
 0xc78   : > { %v2380_v32 = vpop.f32.mrf.mxu1 }
 0xc79   : > { %v2381_v37 = vadd.f32 %v2380_v32, %v2361_v31 }
 0xc7b   : > { %v2383_v38 = vmax.f32 %v2381_v37, 0.0 }
 0xc7d   : > { %2388 = vrot.lane.b32.xlu0 %v2383_v38, %s2624_s21 }
 0xcef   : > { %v2389_v43 = vpop.permute.xlu0 %2388 }
 0xcf0   : > { %2392 = vst.msk [vmem:[%s3216_s29 + $0x10] sm:$0xff] %vm2391_vm2, %v2389_v43 }
 0xcf1   : > { %2394 = vst.msk [vmem:[%s3216_s29 + $0x10] sm:$0xff] %vm2393_vm3, %v3629_v59 }
 0xcf2 PF: > { %s23_s25 = sadd.s32 1, %s2594_s25  }
 0xcf3   : > { %p20_p4 = scmp.ge.s32.totalorder %s23_s25, 4  }
 0xcf5   :  { %22 = sbr.rel (!%p20_p4) target bundleno = 1 (0x1), region = 120 }

</bundles_post_ra>
